<compile_context>
chip_gen: v7x
topology: tpu7x:2x2x1
jax: 0.10.0
libtpu: 0.0.40
codegen_flags: <defaults>
</compile_context>

<pallas_src>
import functools

import jax
import jax.numpy as jnp
from jax import lax
from jax.experimental import pallas as pl
from jax.experimental.pallas import tpu as pltpu


# ------------------------------- Pallas kernel -------------------------------

def _decoder_kernel(xd_ref, w1_ref, w2_ref, bt_ref, bc_ref, sc_ref, sh_ref,
                    out_ref, mid_ref, *, bo, wo):
    # xd_ref : (1, H+1, Cin, Wo+4) bf16 -- W-dilated, padded input rows (whole image)
    # w1_ref : (9, Cmid, Cin)      bf16 -- flipped ConvTranspose taps, w1[3*dy+dx]
    # w2_ref : (9, Cout, Cmid)     bf16 -- Conv2d taps, w2[3*dy+dx]
    # bt/bc/sc/sh : (Cmid,1) / (Cout,1) f32 -- biases, BN scale/shift
    # out_ref: (1, Cout, bo, Wo)   f32  -- NCHW output rows [b*bo, b*bo+bo)
    # mid_ref: (bo+2, Cmid, Wo+2)  bf16 -- scratch: mid rows b*bo-1 .. b*bo+bo
    b = pl.program_id(1)
    nb = pl.num_programs(1)
    wm = wo + 2
    cmid = mid_ref.shape[1]
    cout = out_ref.shape[1]

    bt = bt_ref[...]                                        # (Cmid, 1)
    col = lax.broadcasted_iota(jnp.int32, (cmid, wm), 1)
    interior = (col >= 1) & (col <= wo)                     # zero the conv padding columns

    rbase = b * (bo // 2)                                   # first input row used by block

    def t_even(r):
        # mid row 2r: only kernel row dy=1 of the flipped 3x3 hits non-zero (dilated) rows.
        xr = xd_ref[0, r]                                   # (Cin, Wo+4)
        acc = jnp.zeros((cmid, wm), jnp.float32)
        for dx in range(3):
            acc = acc + jnp.dot(w1_ref[3 + dx], xr[:, dx:dx + wm],
                                preferred_element_type=jnp.float32)
        return acc

    def t_odd(r):
        # mid row 2r+1: dy=0 taps on input row r, dy=2 taps on input row r+1.
        xr0 = xd_ref[0, r]
        xr1 = xd_ref[0, r + 1]
        acc = jnp.zeros((cmid, wm), jnp.float32)
        for dx in range(3):
            acc = acc + jnp.dot(w1_ref[dx], xr0[:, dx:dx + wm],
                                preferred_element_type=jnp.float32)
            acc = acc + jnp.dot(w1_ref[6 + dx], xr1[:, dx:dx + wm],
                                preferred_element_type=jnp.float32)
        return acc

    def put_mid(i, acc):
        mid_ref[i] = jnp.where(interior, acc + bt, 0.0).astype(mid_ref.dtype)

    # mid rows covered: R0-1 .. R0+bo (R0 = b*bo); buffer row i <-> mid row R0-1+i.
    # Rows 0 / bo+1 double as the 3x3-conv zero-padding rows at image edges.
    zero_row = jnp.zeros((cmid, wm), mid_ref.dtype)
    mid_ref[0] = zero_row
    mid_ref[bo + 1] = zero_row

    @pl.when(b > 0)
    def _():                                                # mid row R0-1 (odd)
        put_mid(0, t_odd(rbase - 1))

    for i in range(1, bo + 1):
        if i % 2 == 0:                                      # mid row R0-1+i is odd
            put_mid(i, t_odd(rbase + i // 2 - 1))
        else:                                               # even mid row
            put_mid(i, t_even(rbase + (i - 1) // 2))

    @pl.when(b < nb - 1)
    def _():                                                # mid row R0+bo (even)
        put_mid(bo + 1, t_even(rbase + bo // 2))

    # ---- Conv2d(3x3, pad=1) + bias + ReLU + BatchNorm (eval) + Dropout (identity) ----
    bc = bc_ref[...]
    sc = sc_ref[...]
    sh = sh_ref[...]
    for lr in range(bo):
        acc = jnp.zeros((cout, wo), jnp.float32)
        for dy in range(3):
            row = mid_ref[lr + dy]                          # (Cmid, Wo+2)
            for dx in range(3):
                acc = acc + jnp.dot(w2_ref[3 * dy + dx], row[:, dx:dx + wo],
                                    preferred_element_type=jnp.float32)
        z = jnp.maximum(acc + bc, 0.0) * sc + sh
        out_ref[0, :, lr, :] = z.astype(out_ref.dtype)


# --------------------------------- wrapper ------------------------------------

def _pick_bo(ho):
    # output-row block: must divide Ho and be a multiple of 8 (or equal Ho).
    return 8 if ho % 8 == 0 else ho


def decoder_forward(x_nchw, params):
    n, cin, h, w = x_nchw.shape
    ho, wo = 2 * h, 2 * w
    wt, bt = params["wt"], params["bt"]          # ConvTranspose2d: (Cin, Cmid, 3, 3), (Cmid,)
    wc, bc = params["wc"], params["bc"]          # Conv2d:          (Cout, Cmid, 3, 3), (Cout,)
    gamma, beta = params["gamma"], params["beta"]
    rmean, rvar = params["rmean"], params["rvar"]
    cmid, cout = wt.shape[1], wc.shape[0]

    bo = _pick_bo(ho)
    nb = ho // bo
    wxt = wo + 4                                 # width of the dilated/padded input rows
    wm = wo + 2

    # Input rows, W-dilated for stride 2 and padded so every tap is a static lane slice:
    #   row r, lane 2 + 2*s holds x[n, :, r, s]; one extra all-zero row at the bottom.
    xt = jnp.transpose(x_nchw, (0, 2, 1, 3)).astype(jnp.bfloat16)          # (N, H, Cin, W)
    xd = lax.pad(xt, jnp.zeros((), jnp.bfloat16),
                 ((0, 0, 0), (0, 1, 0), (0, 0, 0), (2, 3, 1)))             # (N, H+1, Cin, Wo+4)

    # Stage-1 weights: w1[3*dy+dx] = flip(wt)[:, :, dy, dx]^T -> (Cmid, Cin)
    w1 = jnp.transpose(jnp.flip(wt, (2, 3)), (2, 3, 1, 0)).reshape(9, cmid, cin)
    w1 = w1.astype(jnp.bfloat16)
    # Stage-2 weights: w2[3*dy+dx] = wc[:, :, dy, dx] -> (Cout, Cmid)
    w2 = jnp.transpose(wc, (2, 3, 0, 1)).reshape(9, cout, cmid).astype(jnp.bfloat16)

    btc = bt.reshape(cmid, 1).astype(jnp.float32)
    bcc = bc.reshape(cout, 1).astype(jnp.float32)
    scale = (gamma / jnp.sqrt(rvar + 1e-5)).reshape(cout, 1).astype(jnp.float32)
    shift = (beta.reshape(cout, 1) - rmean.reshape(cout, 1) * scale).astype(jnp.float32)

    # VMEM budget: double-buffered in/out blocks + weights + mid scratch, with headroom,
    # capped below v7x's 64 MiB.
    est = (2 * ((h + 1) * cin * wxt * 2 + cout * bo * wo * 4)
           + 9 * cmid * cin * 2 + 9 * cout * cmid * 2
           + (bo + 2) * cmid * wm * 2)
    vmem_limit = int(min(56 * 2 ** 20, max(32 * 2 ** 20, 4 * est)))

    kernel = functools.partial(_decoder_kernel, bo=bo, wo=wo)
    out = pl.pallas_call(
        kernel,
        out_shape=jax.ShapeDtypeStruct((n, cout, ho, wo), jnp.float32),
        grid=(n, nb),
        in_specs=[
            pl.BlockSpec((1, h + 1, cin, wxt), lambda i, j: (i, 0, 0, 0)),  # xd (per image)
            pl.BlockSpec((9, cmid, cin), lambda i, j: (0, 0, 0)),           # w1
            pl.BlockSpec((9, cout, cmid), lambda i, j: (0, 0, 0)),          # w2
            pl.BlockSpec((cmid, 1), lambda i, j: (0, 0)),                   # bt
            pl.BlockSpec((cout, 1), lambda i, j: (0, 0)),                   # bc
            pl.BlockSpec((cout, 1), lambda i, j: (0, 0)),                   # scale
            pl.BlockSpec((cout, 1), lambda i, j: (0, 0)),                   # shift
        ],
        out_specs=pl.BlockSpec((1, cout, bo, wo), lambda i, j: (i, 0, j, 0)),
        scratch_shapes=[pltpu.VMEM((bo + 2, cmid, wm), jnp.bfloat16)],
        compiler_params=pltpu.CompilerParams(
            dimension_semantics=("parallel", "parallel"),
            vmem_limit_bytes=vmem_limit),
    )(xd, w1, w2, btc, bcc, scale, shift)
    return out


# ------------------------------ references ------------------------------------

def _ref_f32(x, params):
    """Pure-f32 reference with the exact PyTorch (eval) semantics."""
    wt, bt, wc, bc = params["wt"], params["bt"], params["wc"], params["bc"]
    gamma, beta = params["gamma"], params["beta"]
    rmean, rvar = params["rmean"], params["rvar"]
    w_eq = jnp.transpose(jnp.flip(wt, (2, 3)), (1, 0, 2, 3))            # (Cmid, Cin, 3, 3)
    mid = lax.conv_general_dilated(
        x, w_eq, window_strides=(1, 1), padding=((1, 2), (1, 2)),
        lhs_dilation=(2, 2), dimension_numbers=("NCHW", "OIHW", "NCHW"),
        precision=lax.Precision.HIGHEST) + bt[None, :, None, None]
    z = lax.conv_general_dilated(
        mid, wc, window_strides=(1, 1), padding=((1, 1), (1, 1)),
        dimension_numbers=("NCHW", "OIHW", "NCHW"),
        precision=lax.Precision.HIGHEST)
    z = jnp.maximum(z + bc[None, :, None, None], 0.0)
    scale = gamma / jnp.sqrt(rvar + 1e-5)
    shift = beta - rmean * scale
    return z * scale[None, :, None, None] + shift[None, :, None, None]


def _ref_bf16_operands(x, params):
    """Reference applying the same bf16 operand rounding the kernel uses
    (bf16 inputs/weights/mid, f32 accumulation and epilogue)."""
    q = lambda a: a.astype(jnp.bfloat16).astype(jnp.float32)
    wt, bt, wc, bc = q(params["wt"]), params["bt"], q(params["wc"]), params["bc"]
    gamma, beta = params["gamma"], params["beta"]
    rmean, rvar = params["rmean"], params["rvar"]
    w_eq = jnp.transpose(jnp.flip(wt, (2, 3)), (1, 0, 2, 3))
    mid = lax.conv_general_dilated(
        q(x), w_eq, window_strides=(1, 1), padding=((1, 2), (1, 2)),
        lhs_dilation=(2, 2), dimension_numbers=("NCHW", "OIHW", "NCHW"),
        precision=lax.Precision.HIGHEST) + bt[None, :, None, None]
    mid = q(mid)
    z = lax.conv_general_dilated(
        mid, wc, window_strides=(1, 1), padding=((1, 1), (1, 1)),
        dimension_numbers=("NCHW", "OIHW", "NCHW"),
        precision=lax.Precision.HIGHEST)
    z = jnp.maximum(z + bc[None, :, None, None], 0.0)
    scale = gamma / jnp.sqrt(rvar + 1e-5)
    shift = beta - rmean * scale
    return z * scale[None, :, None, None] + shift[None, :, None, None]


if __name__ == "__main__":
    key = jax.random.PRNGKey(0)
    kx, k1, k2, k3, k4, k5, k6 = jax.random.split(key, 7)
    N, Cin, H, W = 2, 8, 16, 16
    Cmid = Cout = 8   # mid_channels defaults to out_channels

    x = jax.random.normal(kx, (N, Cin, H, W), jnp.float32)
    params = dict(
        wt=0.1 * jax.random.normal(k1, (Cin, Cmid, 3, 3), jnp.float32),
        bt=0.1 * jax.random.normal(k2, (Cmid,), jnp.float32),
        wc=0.1 * jax.random.normal(k3, (Cout, Cmid, 3, 3), jnp.float32),
        bc=0.1 * jax.random.normal(k4, (Cout,), jnp.float32),
        gamma=1.0 + 0.1 * jax.random.normal(k5, (Cout,), jnp.float32),
        beta=0.1 * jax.random.normal(k6, (Cout,), jnp.float32),
        rmean=jnp.zeros((Cout,), jnp.float32),   # PyTorch BN default running stats
        rvar=jnp.ones((Cout,), jnp.float32),
    )

    y = jax.block_until_ready(decoder_forward(x, params))
    y_q = jax.block_until_ready(_ref_bf16_operands(x, params))
    y_f = jax.block_until_ready(_ref_f32(x, params))

    assert y.shape == (N, Cout, 2 * H, 2 * W), y.shape
    err_q = float(jnp.max(jnp.abs(y - y_q)))
    err_f = float(jnp.max(jnp.abs(y - y_f)))
    # Tight check vs. a reference with identical bf16 operand rounding (validates kernel logic).
    assert bool(jnp.allclose(y, y_q, rtol=1e-3, atol=1e-3)), f"bf16-ref max abs diff = {err_q}"
    # Looser check vs. the pure-f32 module semantics (difference = bf16 operand rounding only).
    assert bool(jnp.allclose(y, y_f, rtol=2e-2, atol=2e-2)), f"f32-ref max abs diff = {err_f}"
    print("KERNEL_OK")
</pallas_src>

<mosaic_0001>
module attributes {stable_mosaic.version = 11 : i64} {
  func.func @_decoder_kernel(%arg0: i32, %arg1: i32, %arg2: memref<1x17x8x36xbf16, #tpu.memory_space<vmem>>, %arg3: memref<9x8x8xbf16, #tpu.memory_space<vmem>>, %arg4: memref<9x8x8xbf16, #tpu.memory_space<vmem>>, %arg5: memref<8x1xf32, #tpu.memory_space<vmem>>, %arg6: memref<8x1xf32, #tpu.memory_space<vmem>>, %arg7: memref<8x1xf32, #tpu.memory_space<vmem>>, %arg8: memref<8x1xf32, #tpu.memory_space<vmem>>, %arg9: memref<1x8x8x32xf32, #tpu.memory_space<vmem>>, %arg10: memref<10x8x34xbf16, #tpu.memory_space<vmem>>) attributes {dimension_semantics = [#tpu.dimension_semantics<parallel>, #tpu.dimension_semantics<parallel>], iteration_bounds = array<i64: 2, 4>, scalar_prefetch = 0 : i64, scratch_operands = 1 : i64, tpu.core_type = #tpu.core_type<tc>, window_params = [{transform_indices = @transform_0, window_bounds = array<i64: 1, 17, 8, 36>}, {pipeline_mode = #tpu.pipeline_mode<synchronous>, transform_indices = @transform_1, window_bounds = array<i64: 9, 8, 8>}, {pipeline_mode = #tpu.pipeline_mode<synchronous>, transform_indices = @transform_2, window_bounds = array<i64: 9, 8, 8>}, {pipeline_mode = #tpu.pipeline_mode<synchronous>, transform_indices = @transform_3, window_bounds = array<i64: 8, 1>}, {pipeline_mode = #tpu.pipeline_mode<synchronous>, transform_indices = @transform_4, window_bounds = array<i64: 8, 1>}, {pipeline_mode = #tpu.pipeline_mode<synchronous>, transform_indices = @transform_5, window_bounds = array<i64: 8, 1>}, {pipeline_mode = #tpu.pipeline_mode<synchronous>, transform_indices = @transform_6, window_bounds = array<i64: 8, 1>}, {transform_indices = @transform_7, window_bounds = array<i64: 1, 8, 8, 32>}]} {
    %c0 = arith.constant 0 : index
    %c0_0 = arith.constant 0 : index
    %0 = vector.load %arg5[%c0, %c0_0] : memref<8x1xf32, #tpu.memory_space<vmem>>, vector<8x1xf32>
    %1 = tpu.iota {dimensions = array<i32: 1>} : vector<8x34xi32>
    %c1_i32 = arith.constant 1 : i32
    %2 = vector.broadcast %c1_i32 : i32 to vector<8x34xi32>
    %3 = arith.cmpi sge, %1, %2 : vector<8x34xi32>
    %c32_i32 = arith.constant 32 : i32
    %4 = vector.broadcast %c32_i32 : i32 to vector<8x34xi32>
    %5 = arith.cmpi sle, %1, %4 : vector<8x34xi32>
    %6 = arith.andi %3, %5 : vector<8x34xi1>
    %c4_i32 = arith.constant 4 : i32
    %7 = arith.muli %arg1, %c4_i32 : i32
    %cst = arith.constant 0.000000e+00 : bf16
    %8 = vector.broadcast %cst : bf16 to vector<8x34xbf16>
    %c0_1 = arith.constant 0 : index
    %c0_2 = arith.constant 0 : index
    %c0_3 = arith.constant 0 : index
    %9 = vector.load %arg10[%c0_1, %c0_2, %c0_3] : memref<10x8x34xbf16, #tpu.memory_space<vmem>>, vector<1x8x34xbf16>
    %10 = vector.shape_cast %9 : vector<1x8x34xbf16> to vector<8x34xbf16>
    %11 = vector.shape_cast %8 : vector<8x34xbf16> to vector<1x8x34xbf16>
    tpu.vector_store %arg10[%c0_1, %c0_2, %c0_3], %11 {strides = array<i32>} : memref<10x8x34xbf16, #tpu.memory_space<vmem>>, vector<1x8x34xbf16>,
    %c9 = arith.constant 9 : index
    %c0_4 = arith.constant 0 : index
    %c0_5 = arith.constant 0 : index
    %12 = vector.load %arg10[%c9, %c0_4, %c0_5] : memref<10x8x34xbf16, #tpu.memory_space<vmem>>, vector<1x8x34xbf16>
    %13 = vector.shape_cast %12 : vector<1x8x34xbf16> to vector<8x34xbf16>
    %14 = vector.shape_cast %8 : vector<8x34xbf16> to vector<1x8x34xbf16>
    tpu.vector_store %arg10[%c9, %c0_4, %c0_5], %14 {strides = array<i32>} : memref<10x8x34xbf16, #tpu.memory_space<vmem>>, vector<1x8x34xbf16>,
    %c0_i32 = arith.constant 0 : i32
    %15 = arith.cmpi sgt, %arg1, %c0_i32 : i32
    %16 = arith.extui %15 : i1 to i32
    %c0_i32_6 = arith.constant 0 : i32
    %17 = arith.cmpi ne, %16, %c0_i32_6 : i32
    scf.if %17 {
      %c1_i32_649 = arith.constant 1 : i32
      %832 = arith.subi %7, %c1_i32_649 : i32
      %c0_650 = arith.constant 0 : index
      %833 = arith.index_cast %832 : i32 to index
      %c0_651 = arith.constant 0 : index
      %c0_652 = arith.constant 0 : index
      %834 = vector.load %arg2[%c0_650, %833, %c0_651, %c0_652] : memref<1x17x8x36xbf16, #tpu.memory_space<vmem>>, vector<1x1x8x36xbf16>
      %835 = vector.shape_cast %834 : vector<1x1x8x36xbf16> to vector<8x36xbf16>
      %c1_i32_653 = arith.constant 1 : i32
      %836 = arith.addi %832, %c1_i32_653 : i32
      %c0_654 = arith.constant 0 : index
      %837 = arith.index_cast %836 : i32 to index
      %c0_655 = arith.constant 0 : index
      %c0_656 = arith.constant 0 : index
      %838 = vector.load %arg2[%c0_654, %837, %c0_655, %c0_656] : memref<1x17x8x36xbf16, #tpu.memory_space<vmem>>, vector<1x1x8x36xbf16>
      %839 = vector.shape_cast %838 : vector<1x1x8x36xbf16> to vector<8x36xbf16>
      %cst_657 = arith.constant 0.000000e+00 : f32
      %840 = vector.broadcast %cst_657 : f32 to vector<8x34xf32>
      %c0_658 = arith.constant 0 : index
      %c0_659 = arith.constant 0 : index
      %c0_660 = arith.constant 0 : index
      %841 = vector.load %arg3[%c0_658, %c0_659, %c0_660] : memref<9x8x8xbf16, #tpu.memory_space<vmem>>, vector<1x8x8xbf16>
      %842 = vector.shape_cast %841 : vector<1x8x8xbf16> to vector<8x8xbf16>
      %843 = vector.extract_strided_slice %835 {offsets = [0, 0], sizes = [8, 34], strides = [1, 1]} : vector<8x36xbf16> to vector<8x34xbf16>
      %cst_661 = arith.constant dense<0.000000e+00> : vector<8x34xf32>
      %844 = tpu.matmul %842, %843, %cst_661 {dimension_numbers = #tpu.dot_dimension_numbers<[1], [0], [0], [1], [0, 0, 1, 1], [], []>} : vector<8x8xbf16>, vector<8x34xbf16>, vector<8x34xf32> -> vector<8x34xf32>
      %845 = arith.addf %840, %844 : vector<8x34xf32>
      %c6_662 = arith.constant 6 : index
      %c0_663 = arith.constant 0 : index
      %c0_664 = arith.constant 0 : index
      %846 = vector.load %arg3[%c6_662, %c0_663, %c0_664] : memref<9x8x8xbf16, #tpu.memory_space<vmem>>, vector<1x8x8xbf16>
      %847 = vector.shape_cast %846 : vector<1x8x8xbf16> to vector<8x8xbf16>
      %848 = vector.extract_strided_slice %839 {offsets = [0, 0], sizes = [8, 34], strides = [1, 1]} : vector<8x36xbf16> to vector<8x34xbf16>
      %cst_665 = arith.constant dense<0.000000e+00> : vector<8x34xf32>
      %849 = tpu.matmul %847, %848, %cst_665 {dimension_numbers = #tpu.dot_dimension_numbers<[1], [0], [0], [1], [0, 0, 1, 1], [], []>} : vector<8x8xbf16>, vector<8x34xbf16>, vector<8x34xf32> -> vector<8x34xf32>
      %850 = arith.addf %845, %849 : vector<8x34xf32>
      %c1_666 = arith.constant 1 : index
      %c0_667 = arith.constant 0 : index
      %c0_668 = arith.constant 0 : index
      %851 = vector.load %arg3[%c1_666, %c0_667, %c0_668] : memref<9x8x8xbf16, #tpu.memory_space<vmem>>, vector<1x8x8xbf16>
      %852 = vector.shape_cast %851 : vector<1x8x8xbf16> to vector<8x8xbf16>
      %853 = vector.extract_strided_slice %835 {offsets = [0, 1], sizes = [8, 34], strides = [1, 1]} : vector<8x36xbf16> to vector<8x34xbf16>
      %cst_669 = arith.constant dense<0.000000e+00> : vector<8x34xf32>
      %854 = tpu.matmul %852, %853, %cst_669 {dimension_numbers = #tpu.dot_dimension_numbers<[1], [0], [0], [1], [0, 0, 1, 1], [], []>} : vector<8x8xbf16>, vector<8x34xbf16>, vector<8x34xf32> -> vector<8x34xf32>
      %855 = arith.addf %850, %854 : vector<8x34xf32>
      %c7_670 = arith.constant 7 : index
      %c0_671 = arith.constant 0 : index
      %c0_672 = arith.constant 0 : index
      %856 = vector.load %arg3[%c7_670, %c0_671, %c0_672] : memref<9x8x8xbf16, #tpu.memory_space<vmem>>, vector<1x8x8xbf16>
      %857 = vector.shape_cast %856 : vector<1x8x8xbf16> to vector<8x8xbf16>
      %858 = vector.extract_strided_slice %839 {offsets = [0, 1], sizes = [8, 34], strides = [1, 1]} : vector<8x36xbf16> to vector<8x34xbf16>
      %cst_673 = arith.constant dense<0.000000e+00> : vector<8x34xf32>
      %859 = tpu.matmul %857, %858, %cst_673 {dimension_numbers = #tpu.dot_dimension_numbers<[1], [0], [0], [1], [0, 0, 1, 1], [], []>} : vector<8x8xbf16>, vector<8x34xbf16>, vector<8x34xf32> -> vector<8x34xf32>
      %860 = arith.addf %855, %859 : vector<8x34xf32>
      %c2_674 = arith.constant 2 : index
      %c0_675 = arith.constant 0 : index
      %c0_676 = arith.constant 0 : index
      %861 = vector.load %arg3[%c2_674, %c0_675, %c0_676] : memref<9x8x8xbf16, #tpu.memory_space<vmem>>, vector<1x8x8xbf16>
      %862 = vector.shape_cast %861 : vector<1x8x8xbf16> to vector<8x8xbf16>
      %863 = vector.extract_strided_slice %835 {offsets = [0, 2], sizes = [8, 34], strides = [1, 1]} : vector<8x36xbf16> to vector<8x34xbf16>
      %cst_677 = arith.constant dense<0.000000e+00> : vector<8x34xf32>
      %864 = tpu.matmul %862, %863, %cst_677 {dimension_numbers = #tpu.dot_dimension_numbers<[1], [0], [0], [1], [0, 0, 1, 1], [], []>} : vector<8x8xbf16>, vector<8x34xbf16>, vector<8x34xf32> -> vector<8x34xf32>
      %865 = arith.addf %860, %864 : vector<8x34xf32>
      %c8_678 = arith.constant 8 : index
      %c0_679 = arith.constant 0 : index
      %c0_680 = arith.constant 0 : index
      %866 = vector.load %arg3[%c8_678, %c0_679, %c0_680] : memref<9x8x8xbf16, #tpu.memory_space<vmem>>, vector<1x8x8xbf16>
      %867 = vector.shape_cast %866 : vector<1x8x8xbf16> to vector<8x8xbf16>
      %868 = vector.extract_strided_slice %839 {offsets = [0, 2], sizes = [8, 34], strides = [1, 1]} : vector<8x36xbf16> to vector<8x34xbf16>
      %cst_681 = arith.constant dense<0.000000e+00> : vector<8x34xf32>
      %869 = tpu.matmul %867, %868, %cst_681 {dimension_numbers = #tpu.dot_dimension_numbers<[1], [0], [0], [1], [0, 0, 1, 1], [], []>} : vector<8x8xbf16>, vector<8x34xbf16>, vector<8x34xf32> -> vector<8x34xf32>
      %870 = arith.addf %865, %869 : vector<8x34xf32>
      %871 = vector.broadcast %0 : vector<8x1xf32> to vector<8x34xf32>
      %872 = arith.addf %870, %871 : vector<8x34xf32>
      %cst_682 = arith.constant 0.000000e+00 : f32
      %873 = vector.broadcast %cst_682 : f32 to vector<8x34xf32>
      %874 = arith.select %6, %872, %873 : vector<8x34xi1>, vector<8x34xf32>
      %875 = arith.truncf %874 : vector<8x34xf32> to vector<8x34xbf16>
      %c0_683 = arith.constant 0 : index
      %c0_684 = arith.constant 0 : index
      %c0_685 = arith.constant 0 : index
      %876 = vector.load %arg10[%c0_683, %c0_684, %c0_685] : memref<10x8x34xbf16, #tpu.memory_space<vmem>>, vector<1x8x34xbf16>
      %877 = vector.shape_cast %876 : vector<1x8x34xbf16> to vector<8x34xbf16>
      %878 = vector.shape_cast %875 : vector<8x34xbf16> to vector<1x8x34xbf16>
      tpu.vector_store %arg10[%c0_683, %c0_684, %c0_685], %878 {strides = array<i32>} : memref<10x8x34xbf16, #tpu.memory_space<vmem>>, vector<1x8x34xbf16>,
    } else {
    }
    %c0_i32_7 = arith.constant 0 : i32
    %18 = arith.addi %7, %c0_i32_7 : i32
    %c0_8 = arith.constant 0 : index
    %19 = arith.index_cast %18 : i32 to index
    %c0_9 = arith.constant 0 : index
    %c0_10 = arith.constant 0 : index
    %20 = vector.load %arg2[%c0_8, %19, %c0_9, %c0_10] : memref<1x17x8x36xbf16, #tpu.memory_space<vmem>>, vector<1x1x8x36xbf16>
    %21 = vector.shape_cast %20 : vector<1x1x8x36xbf16> to vector<8x36xbf16>
    %cst_11 = arith.constant 0.000000e+00 : f32
    %22 = vector.broadcast %cst_11 : f32 to vector<8x34xf32>
    %c3 = arith.constant 3 : index
    %c0_12 = arith.constant 0 : index
    %c0_13 = arith.constant 0 : index
    %23 = vector.load %arg3[%c3, %c0_12, %c0_13] : memref<9x8x8xbf16, #tpu.memory_space<vmem>>, vector<1x8x8xbf16>
    %24 = vector.shape_cast %23 : vector<1x8x8xbf16> to vector<8x8xbf16>
    %25 = vector.extract_strided_slice %21 {offsets = [0, 0], sizes = [8, 34], strides = [1, 1]} : vector<8x36xbf16> to vector<8x34xbf16>
    %cst_14 = arith.constant dense<0.000000e+00> : vector<8x34xf32>
    %26 = tpu.matmul %24, %25, %cst_14 {dimension_numbers = #tpu.dot_dimension_numbers<[1], [0], [0], [1], [0, 0, 1, 1], [], []>} : vector<8x8xbf16>, vector<8x34xbf16>, vector<8x34xf32> -> vector<8x34xf32>
    %27 = arith.addf %22, %26 : vector<8x34xf32>
    %c4 = arith.constant 4 : index
    %c0_15 = arith.constant 0 : index
    %c0_16 = arith.constant 0 : index
    %28 = vector.load %arg3[%c4, %c0_15, %c0_16] : memref<9x8x8xbf16, #tpu.memory_space<vmem>>, vector<1x8x8xbf16>
    %29 = vector.shape_cast %28 : vector<1x8x8xbf16> to vector<8x8xbf16>
    %30 = vector.extract_strided_slice %21 {offsets = [0, 1], sizes = [8, 34], strides = [1, 1]} : vector<8x36xbf16> to vector<8x34xbf16>
    %cst_17 = arith.constant dense<0.000000e+00> : vector<8x34xf32>
    %31 = tpu.matmul %29, %30, %cst_17 {dimension_numbers = #tpu.dot_dimension_numbers<[1], [0], [0], [1], [0, 0, 1, 1], [], []>} : vector<8x8xbf16>, vector<8x34xbf16>, vector<8x34xf32> -> vector<8x34xf32>
    %32 = arith.addf %27, %31 : vector<8x34xf32>
    %c5 = arith.constant 5 : index
    %c0_18 = arith.constant 0 : index
    %c0_19 = arith.constant 0 : index
    %33 = vector.load %arg3[%c5, %c0_18, %c0_19] : memref<9x8x8xbf16, #tpu.memory_space<vmem>>, vector<1x8x8xbf16>
    %34 = vector.shape_cast %33 : vector<1x8x8xbf16> to vector<8x8xbf16>
    %35 = vector.extract_strided_slice %21 {offsets = [0, 2], sizes = [8, 34], strides = [1, 1]} : vector<8x36xbf16> to vector<8x34xbf16>
    %cst_20 = arith.constant dense<0.000000e+00> : vector<8x34xf32>
    %36 = tpu.matmul %34, %35, %cst_20 {dimension_numbers = #tpu.dot_dimension_numbers<[1], [0], [0], [1], [0, 0, 1, 1], [], []>} : vector<8x8xbf16>, vector<8x34xbf16>, vector<8x34xf32> -> vector<8x34xf32>
    %37 = arith.addf %32, %36 : vector<8x34xf32>
    %38 = vector.broadcast %0 : vector<8x1xf32> to vector<8x34xf32>
    %39 = arith.addf %37, %38 : vector<8x34xf32>
    %cst_21 = arith.constant 0.000000e+00 : f32
    %40 = vector.broadcast %cst_21 : f32 to vector<8x34xf32>
    %41 = arith.select %6, %39, %40 : vector<8x34xi1>, vector<8x34xf32>
    %42 = arith.truncf %41 : vector<8x34xf32> to vector<8x34xbf16>
    %c1 = arith.constant 1 : index
    %c0_22 = arith.constant 0 : index
    %c0_23 = arith.constant 0 : index
    %43 = vector.load %arg10[%c1, %c0_22, %c0_23] : memref<10x8x34xbf16, #tpu.memory_space<vmem>>, vector<1x8x34xbf16>
    %44 = vector.shape_cast %43 : vector<1x8x34xbf16> to vector<8x34xbf16>
    %45 = vector.shape_cast %42 : vector<8x34xbf16> to vector<1x8x34xbf16>
    tpu.vector_store %arg10[%c1, %c0_22, %c0_23], %45 {strides = array<i32>} : memref<10x8x34xbf16, #tpu.memory_space<vmem>>, vector<1x8x34xbf16>,
    %c1_i32_24 = arith.constant 1 : i32
    %46 = arith.addi %7, %c1_i32_24 : i32
    %c1_i32_25 = arith.constant 1 : i32
    %47 = arith.subi %46, %c1_i32_25 : i32
    %c0_26 = arith.constant 0 : index
    %48 = arith.index_cast %47 : i32 to index
    %c0_27 = arith.constant 0 : index
    %c0_28 = arith.constant 0 : index
    %49 = vector.load %arg2[%c0_26, %48, %c0_27, %c0_28] : memref<1x17x8x36xbf16, #tpu.memory_space<vmem>>, vector<1x1x8x36xbf16>
    %50 = vector.shape_cast %49 : vector<1x1x8x36xbf16> to vector<8x36xbf16>
    %c1_i32_29 = arith.constant 1 : i32
    %51 = arith.addi %47, %c1_i32_29 : i32
    %c0_30 = arith.constant 0 : index
    %52 = arith.index_cast %51 : i32 to index
    %c0_31 = arith.constant 0 : index
    %c0_32 = arith.constant 0 : index
    %53 = vector.load %arg2[%c0_30, %52, %c0_31, %c0_32] : memref<1x17x8x36xbf16, #tpu.memory_space<vmem>>, vector<1x1x8x36xbf16>
    %54 = vector.shape_cast %53 : vector<1x1x8x36xbf16> to vector<8x36xbf16>
    %cst_33 = arith.constant 0.000000e+00 : f32
    %55 = vector.broadcast %cst_33 : f32 to vector<8x34xf32>
    %c0_34 = arith.constant 0 : index
    %c0_35 = arith.constant 0 : index
    %c0_36 = arith.constant 0 : index
    %56 = vector.load %arg3[%c0_34, %c0_35, %c0_36] : memref<9x8x8xbf16, #tpu.memory_space<vmem>>, vector<1x8x8xbf16>
    %57 = vector.shape_cast %56 : vector<1x8x8xbf16> to vector<8x8xbf16>
    %58 = vector.extract_strided_slice %50 {offsets = [0, 0], sizes = [8, 34], strides = [1, 1]} : vector<8x36xbf16> to vector<8x34xbf16>
    %cst_37 = arith.constant dense<0.000000e+00> : vector<8x34xf32>
    %59 = tpu.matmul %57, %58, %cst_37 {dimension_numbers = #tpu.dot_dimension_numbers<[1], [0], [0], [1], [0, 0, 1, 1], [], []>} : vector<8x8xbf16>, vector<8x34xbf16>, vector<8x34xf32> -> vector<8x34xf32>
    %60 = arith.addf %55, %59 : vector<8x34xf32>
    %c6 = arith.constant 6 : index
    %c0_38 = arith.constant 0 : index
    %c0_39 = arith.constant 0 : index
    %61 = vector.load %arg3[%c6, %c0_38, %c0_39] : memref<9x8x8xbf16, #tpu.memory_space<vmem>>, vector<1x8x8xbf16>
    %62 = vector.shape_cast %61 : vector<1x8x8xbf16> to vector<8x8xbf16>
    %63 = vector.extract_strided_slice %54 {offsets = [0, 0], sizes = [8, 34], strides = [1, 1]} : vector<8x36xbf16> to vector<8x34xbf16>
    %cst_40 = arith.constant dense<0.000000e+00> : vector<8x34xf32>
    %64 = tpu.matmul %62, %63, %cst_40 {dimension_numbers = #tpu.dot_dimension_numbers<[1], [0], [0], [1], [0, 0, 1, 1], [], []>} : vector<8x8xbf16>, vector<8x34xbf16>, vector<8x34xf32> -> vector<8x34xf32>
    %65 = arith.addf %60, %64 : vector<8x34xf32>
    %c1_41 = arith.constant 1 : index
    %c0_42 = arith.constant 0 : index
    %c0_43 = arith.constant 0 : index
    %66 = vector.load %arg3[%c1_41, %c0_42, %c0_43] : memref<9x8x8xbf16, #tpu.memory_space<vmem>>, vector<1x8x8xbf16>
    %67 = vector.shape_cast %66 : vector<1x8x8xbf16> to vector<8x8xbf16>
    %68 = vector.extract_strided_slice %50 {offsets = [0, 1], sizes = [8, 34], strides = [1, 1]} : vector<8x36xbf16> to vector<8x34xbf16>
    %cst_44 = arith.constant dense<0.000000e+00> : vector<8x34xf32>
    %69 = tpu.matmul %67, %68, %cst_44 {dimension_numbers = #tpu.dot_dimension_numbers<[1], [0], [0], [1], [0, 0, 1, 1], [], []>} : vector<8x8xbf16>, vector<8x34xbf16>, vector<8x34xf32> -> vector<8x34xf32>
    %70 = arith.addf %65, %69 : vector<8x34xf32>
    %c7 = arith.constant 7 : index
    %c0_45 = arith.constant 0 : index
    %c0_46 = arith.constant 0 : index
    %71 = vector.load %arg3[%c7, %c0_45, %c0_46] : memref<9x8x8xbf16, #tpu.memory_space<vmem>>, vector<1x8x8xbf16>
    %72 = vector.shape_cast %71 : vector<1x8x8xbf16> to vector<8x8xbf16>
    %73 = vector.extract_strided_slice %54 {offsets = [0, 1], sizes = [8, 34], strides = [1, 1]} : vector<8x36xbf16> to vector<8x34xbf16>
    %cst_47 = arith.constant dense<0.000000e+00> : vector<8x34xf32>
    %74 = tpu.matmul %72, %73, %cst_47 {dimension_numbers = #tpu.dot_dimension_numbers<[1], [0], [0], [1], [0, 0, 1, 1], [], []>} : vector<8x8xbf16>, vector<8x34xbf16>, vector<8x34xf32> -> vector<8x34xf32>
    %75 = arith.addf %70, %74 : vector<8x34xf32>
    %c2 = arith.constant 2 : index
    %c0_48 = arith.constant 0 : index
    %c0_49 = arith.constant 0 : index
    %76 = vector.load %arg3[%c2, %c0_48, %c0_49] : memref<9x8x8xbf16, #tpu.memory_space<vmem>>, vector<1x8x8xbf16>
    %77 = vector.shape_cast %76 : vector<1x8x8xbf16> to vector<8x8xbf16>
    %78 = vector.extract_strided_slice %50 {offsets = [0, 2], sizes = [8, 34], strides = [1, 1]} : vector<8x36xbf16> to vector<8x34xbf16>
    %cst_50 = arith.constant dense<0.000000e+00> : vector<8x34xf32>
    %79 = tpu.matmul %77, %78, %cst_50 {dimension_numbers = #tpu.dot_dimension_numbers<[1], [0], [0], [1], [0, 0, 1, 1], [], []>} : vector<8x8xbf16>, vector<8x34xbf16>, vector<8x34xf32> -> vector<8x34xf32>
    %80 = arith.addf %75, %79 : vector<8x34xf32>
    %c8 = arith.constant 8 : index
    %c0_51 = arith.constant 0 : index
    %c0_52 = arith.constant 0 : index
    %81 = vector.load %arg3[%c8, %c0_51, %c0_52] : memref<9x8x8xbf16, #tpu.memory_space<vmem>>, vector<1x8x8xbf16>
    %82 = vector.shape_cast %81 : vector<1x8x8xbf16> to vector<8x8xbf16>
    %83 = vector.extract_strided_slice %54 {offsets = [0, 2], sizes = [8, 34], strides = [1, 1]} : vector<8x36xbf16> to vector<8x34xbf16>
    %cst_53 = arith.constant dense<0.000000e+00> : vector<8x34xf32>
    %84 = tpu.matmul %82, %83, %cst_53 {dimension_numbers = #tpu.dot_dimension_numbers<[1], [0], [0], [1], [0, 0, 1, 1], [], []>} : vector<8x8xbf16>, vector<8x34xbf16>, vector<8x34xf32> -> vector<8x34xf32>
    %85 = arith.addf %80, %84 : vector<8x34xf32>
    %86 = vector.broadcast %0 : vector<8x1xf32> to vector<8x34xf32>
    %87 = arith.addf %85, %86 : vector<8x34xf32>
    %cst_54 = arith.constant 0.000000e+00 : f32
    %88 = vector.broadcast %cst_54 : f32 to vector<8x34xf32>
    %89 = arith.select %6, %87, %88 : vector<8x34xi1>, vector<8x34xf32>
    %90 = arith.truncf %89 : vector<8x34xf32> to vector<8x34xbf16>
    %c2_55 = arith.constant 2 : index
    %c0_56 = arith.constant 0 : index
    %c0_57 = arith.constant 0 : index
    %91 = vector.load %arg10[%c2_55, %c0_56, %c0_57] : memref<10x8x34xbf16, #tpu.memory_space<vmem>>, vector<1x8x34xbf16>
    %92 = vector.shape_cast %91 : vector<1x8x34xbf16> to vector<8x34xbf16>
    %93 = vector.shape_cast %90 : vector<8x34xbf16> to vector<1x8x34xbf16>
    tpu.vector_store %arg10[%c2_55, %c0_56, %c0_57], %93 {strides = array<i32>} : memref<10x8x34xbf16, #tpu.memory_space<vmem>>, vector<1x8x34xbf16>,
    %c1_i32_58 = arith.constant 1 : i32
    %94 = arith.addi %7, %c1_i32_58 : i32
    %c0_59 = arith.constant 0 : index
    %95 = arith.index_cast %94 : i32 to index
    %c0_60 = arith.constant 0 : index
    %c0_61 = arith.constant 0 : index
    %96 = vector.load %arg2[%c0_59, %95, %c0_60, %c0_61] : memref<1x17x8x36xbf16, #tpu.memory_space<vmem>>, vector<1x1x8x36xbf16>
    %97 = vector.shape_cast %96 : vector<1x1x8x36xbf16> to vector<8x36xbf16>
    %cst_62 = arith.constant 0.000000e+00 : f32
    %98 = vector.broadcast %cst_62 : f32 to vector<8x34xf32>
    %c3_63 = arith.constant 3 : index
    %c0_64 = arith.constant 0 : index
    %c0_65 = arith.constant 0 : index
    %99 = vector.load %arg3[%c3_63, %c0_64, %c0_65] : memref<9x8x8xbf16, #tpu.memory_space<vmem>>, vector<1x8x8xbf16>
    %100 = vector.shape_cast %99 : vector<1x8x8xbf16> to vector<8x8xbf16>
    %101 = vector.extract_strided_slice %97 {offsets = [0, 0], sizes = [8, 34], strides = [1, 1]} : vector<8x36xbf16> to vector<8x34xbf16>
    %cst_66 = arith.constant dense<0.000000e+00> : vector<8x34xf32>
    %102 = tpu.matmul %100, %101, %cst_66 {dimension_numbers = #tpu.dot_dimension_numbers<[1], [0], [0], [1], [0, 0, 1, 1], [], []>} : vector<8x8xbf16>, vector<8x34xbf16>, vector<8x34xf32> -> vector<8x34xf32>
    %103 = arith.addf %98, %102 : vector<8x34xf32>
    %c4_67 = arith.constant 4 : index
    %c0_68 = arith.constant 0 : index
    %c0_69 = arith.constant 0 : index
    %104 = vector.load %arg3[%c4_67, %c0_68, %c0_69] : memref<9x8x8xbf16, #tpu.memory_space<vmem>>, vector<1x8x8xbf16>
    %105 = vector.shape_cast %104 : vector<1x8x8xbf16> to vector<8x8xbf16>
    %106 = vector.extract_strided_slice %97 {offsets = [0, 1], sizes = [8, 34], strides = [1, 1]} : vector<8x36xbf16> to vector<8x34xbf16>
    %cst_70 = arith.constant dense<0.000000e+00> : vector<8x34xf32>
    %107 = tpu.matmul %105, %106, %cst_70 {dimension_numbers = #tpu.dot_dimension_numbers<[1], [0], [0], [1], [0, 0, 1, 1], [], []>} : vector<8x8xbf16>, vector<8x34xbf16>, vector<8x34xf32> -> vector<8x34xf32>
    %108 = arith.addf %103, %107 : vector<8x34xf32>
    %c5_71 = arith.constant 5 : index
    %c0_72 = arith.constant 0 : index
    %c0_73 = arith.constant 0 : index
    %109 = vector.load %arg3[%c5_71, %c0_72, %c0_73] : memref<9x8x8xbf16, #tpu.memory_space<vmem>>, vector<1x8x8xbf16>
    %110 = vector.shape_cast %109 : vector<1x8x8xbf16> to vector<8x8xbf16>
    %111 = vector.extract_strided_slice %97 {offsets = [0, 2], sizes = [8, 34], strides = [1, 1]} : vector<8x36xbf16> to vector<8x34xbf16>
    %cst_74 = arith.constant dense<0.000000e+00> : vector<8x34xf32>
    %112 = tpu.matmul %110, %111, %cst_74 {dimension_numbers = #tpu.dot_dimension_numbers<[1], [0], [0], [1], [0, 0, 1, 1], [], []>} : vector<8x8xbf16>, vector<8x34xbf16>, vector<8x34xf32> -> vector<8x34xf32>
    %113 = arith.addf %108, %112 : vector<8x34xf32>
    %114 = vector.broadcast %0 : vector<8x1xf32> to vector<8x34xf32>
    %115 = arith.addf %113, %114 : vector<8x34xf32>
    %cst_75 = arith.constant 0.000000e+00 : f32
    %116 = vector.broadcast %cst_75 : f32 to vector<8x34xf32>
    %117 = arith.select %6, %115, %116 : vector<8x34xi1>, vector<8x34xf32>
    %118 = arith.truncf %117 : vector<8x34xf32> to vector<8x34xbf16>
    %c3_76 = arith.constant 3 : index
    %c0_77 = arith.constant 0 : index
    %c0_78 = arith.constant 0 : index
    %119 = vector.load %arg10[%c3_76, %c0_77, %c0_78] : memref<10x8x34xbf16, #tpu.memory_space<vmem>>, vector<1x8x34xbf16>
    %120 = vector.shape_cast %119 : vector<1x8x34xbf16> to vector<8x34xbf16>
    %121 = vector.shape_cast %118 : vector<8x34xbf16> to vector<1x8x34xbf16>
    tpu.vector_store %arg10[%c3_76, %c0_77, %c0_78], %121 {strides = array<i32>} : memref<10x8x34xbf16, #tpu.memory_space<vmem>>, vector<1x8x34xbf16>,
    %c2_i32 = arith.constant 2 : i32
    %122 = arith.addi %7, %c2_i32 : i32
    %c1_i32_79 = arith.constant 1 : i32
    %123 = arith.subi %122, %c1_i32_79 : i32
    %c0_80 = arith.constant 0 : index
    %124 = arith.index_cast %123 : i32 to index
    %c0_81 = arith.constant 0 : index
    %c0_82 = arith.constant 0 : index
    %125 = vector.load %arg2[%c0_80, %124, %c0_81, %c0_82] : memref<1x17x8x36xbf16, #tpu.memory_space<vmem>>, vector<1x1x8x36xbf16>
    %126 = vector.shape_cast %125 : vector<1x1x8x36xbf16> to vector<8x36xbf16>
    %c1_i32_83 = arith.constant 1 : i32
    %127 = arith.addi %123, %c1_i32_83 : i32
    %c0_84 = arith.constant 0 : index
    %128 = arith.index_cast %127 : i32 to index
    %c0_85 = arith.constant 0 : index
    %c0_86 = arith.constant 0 : index
    %129 = vector.load %arg2[%c0_84, %128, %c0_85, %c0_86] : memref<1x17x8x36xbf16, #tpu.memory_space<vmem>>, vector<1x1x8x36xbf16>
    %130 = vector.shape_cast %129 : vector<1x1x8x36xbf16> to vector<8x36xbf16>
    %cst_87 = arith.constant 0.000000e+00 : f32
    %131 = vector.broadcast %cst_87 : f32 to vector<8x34xf32>
    %c0_88 = arith.constant 0 : index
    %c0_89 = arith.constant 0 : index
    %c0_90 = arith.constant 0 : index
    %132 = vector.load %arg3[%c0_88, %c0_89, %c0_90] : memref<9x8x8xbf16, #tpu.memory_space<vmem>>, vector<1x8x8xbf16>
    %133 = vector.shape_cast %132 : vector<1x8x8xbf16> to vector<8x8xbf16>
    %134 = vector.extract_strided_slice %126 {offsets = [0, 0], sizes = [8, 34], strides = [1, 1]} : vector<8x36xbf16> to vector<8x34xbf16>
    %cst_91 = arith.constant dense<0.000000e+00> : vector<8x34xf32>
    %135 = tpu.matmul %133, %134, %cst_91 {dimension_numbers = #tpu.dot_dimension_numbers<[1], [0], [0], [1], [0, 0, 1, 1], [], []>} : vector<8x8xbf16>, vector<8x34xbf16>, vector<8x34xf32> -> vector<8x34xf32>
    %136 = arith.addf %131, %135 : vector<8x34xf32>
    %c6_92 = arith.constant 6 : index
    %c0_93 = arith.constant 0 : index
    %c0_94 = arith.constant 0 : index
    %137 = vector.load %arg3[%c6_92, %c0_93, %c0_94] : memref<9x8x8xbf16, #tpu.memory_space<vmem>>, vector<1x8x8xbf16>
    %138 = vector.shape_cast %137 : vector<1x8x8xbf16> to vector<8x8xbf16>
    %139 = vector.extract_strided_slice %130 {offsets = [0, 0], sizes = [8, 34], strides = [1, 1]} : vector<8x36xbf16> to vector<8x34xbf16>
    %cst_95 = arith.constant dense<0.000000e+00> : vector<8x34xf32>
    %140 = tpu.matmul %138, %139, %cst_95 {dimension_numbers = #tpu.dot_dimension_numbers<[1], [0], [0], [1], [0, 0, 1, 1], [], []>} : vector<8x8xbf16>, vector<8x34xbf16>, vector<8x34xf32> -> vector<8x34xf32>
    %141 = arith.addf %136, %140 : vector<8x34xf32>
    %c1_96 = arith.constant 1 : index
    %c0_97 = arith.constant 0 : index
    %c0_98 = arith.constant 0 : index
    %142 = vector.load %arg3[%c1_96, %c0_97, %c0_98] : memref<9x8x8xbf16, #tpu.memory_space<vmem>>, vector<1x8x8xbf16>
    %143 = vector.shape_cast %142 : vector<1x8x8xbf16> to vector<8x8xbf16>
    %144 = vector.extract_strided_slice %126 {offsets = [0, 1], sizes = [8, 34], strides = [1, 1]} : vector<8x36xbf16> to vector<8x34xbf16>
    %cst_99 = arith.constant dense<0.000000e+00> : vector<8x34xf32>
    %145 = tpu.matmul %143, %144, %cst_99 {dimension_numbers = #tpu.dot_dimension_numbers<[1], [0], [0], [1], [0, 0, 1, 1], [], []>} : vector<8x8xbf16>, vector<8x34xbf16>, vector<8x34xf32> -> vector<8x34xf32>
    %146 = arith.addf %141, %145 : vector<8x34xf32>
    %c7_100 = arith.constant 7 : index
    %c0_101 = arith.constant 0 : index
    %c0_102 = arith.constant 0 : index
    %147 = vector.load %arg3[%c7_100, %c0_101, %c0_102] : memref<9x8x8xbf16, #tpu.memory_space<vmem>>, vector<1x8x8xbf16>
    %148 = vector.shape_cast %147 : vector<1x8x8xbf16> to vector<8x8xbf16>
    %149 = vector.extract_strided_slice %130 {offsets = [0, 1], sizes = [8, 34], strides = [1, 1]} : vector<8x36xbf16> to vector<8x34xbf16>
    %cst_103 = arith.constant dense<0.000000e+00> : vector<8x34xf32>
    %150 = tpu.matmul %148, %149, %cst_103 {dimension_numbers = #tpu.dot_dimension_numbers<[1], [0], [0], [1], [0, 0, 1, 1], [], []>} : vector<8x8xbf16>, vector<8x34xbf16>, vector<8x34xf32> -> vector<8x34xf32>
    %151 = arith.addf %146, %150 : vector<8x34xf32>
    %c2_104 = arith.constant 2 : index
    %c0_105 = arith.constant 0 : index
    %c0_106 = arith.constant 0 : index
    %152 = vector.load %arg3[%c2_104, %c0_105, %c0_106] : memref<9x8x8xbf16, #tpu.memory_space<vmem>>, vector<1x8x8xbf16>
    %153 = vector.shape_cast %152 : vector<1x8x8xbf16> to vector<8x8xbf16>
    %154 = vector.extract_strided_slice %126 {offsets = [0, 2], sizes = [8, 34], strides = [1, 1]} : vector<8x36xbf16> to vector<8x34xbf16>
    %cst_107 = arith.constant dense<0.000000e+00> : vector<8x34xf32>
    %155 = tpu.matmul %153, %154, %cst_107 {dimension_numbers = #tpu.dot_dimension_numbers<[1], [0], [0], [1], [0, 0, 1, 1], [], []>} : vector<8x8xbf16>, vector<8x34xbf16>, vector<8x34xf32> -> vector<8x34xf32>
    %156 = arith.addf %151, %155 : vector<8x34xf32>
    %c8_108 = arith.constant 8 : index
    %c0_109 = arith.constant 0 : index
    %c0_110 = arith.constant 0 : index
    %157 = vector.load %arg3[%c8_108, %c0_109, %c0_110] : memref<9x8x8xbf16, #tpu.memory_space<vmem>>, vector<1x8x8xbf16>
    %158 = vector.shape_cast %157 : vector<1x8x8xbf16> to vector<8x8xbf16>
    %159 = vector.extract_strided_slice %130 {offsets = [0, 2], sizes = [8, 34], strides = [1, 1]} : vector<8x36xbf16> to vector<8x34xbf16>
    %cst_111 = arith.constant dense<0.000000e+00> : vector<8x34xf32>
    %160 = tpu.matmul %158, %159, %cst_111 {dimension_numbers = #tpu.dot_dimension_numbers<[1], [0], [0], [1], [0, 0, 1, 1], [], []>} : vector<8x8xbf16>, vector<8x34xbf16>, vector<8x34xf32> -> vector<8x34xf32>
    %161 = arith.addf %156, %160 : vector<8x34xf32>
    %162 = vector.broadcast %0 : vector<8x1xf32> to vector<8x34xf32>
    %163 = arith.addf %161, %162 : vector<8x34xf32>
    %cst_112 = arith.constant 0.000000e+00 : f32
    %164 = vector.broadcast %cst_112 : f32 to vector<8x34xf32>
    %165 = arith.select %6, %163, %164 : vector<8x34xi1>, vector<8x34xf32>
    %166 = arith.truncf %165 : vector<8x34xf32> to vector<8x34xbf16>
    %c4_113 = arith.constant 4 : index
    %c0_114 = arith.constant 0 : index
    %c0_115 = arith.constant 0 : index
    %167 = vector.load %arg10[%c4_113, %c0_114, %c0_115] : memref<10x8x34xbf16, #tpu.memory_space<vmem>>, vector<1x8x34xbf16>
    %168 = vector.shape_cast %167 : vector<1x8x34xbf16> to vector<8x34xbf16>
    %169 = vector.shape_cast %166 : vector<8x34xbf16> to vector<1x8x34xbf16>
    tpu.vector_store %arg10[%c4_113, %c0_114, %c0_115], %169 {strides = array<i32>} : memref<10x8x34xbf16, #tpu.memory_space<vmem>>, vector<1x8x34xbf16>,
    %c2_i32_116 = arith.constant 2 : i32
    %170 = arith.addi %7, %c2_i32_116 : i32
    %c0_117 = arith.constant 0 : index
    %171 = arith.index_cast %170 : i32 to index
    %c0_118 = arith.constant 0 : index
    %c0_119 = arith.constant 0 : index
    %172 = vector.load %arg2[%c0_117, %171, %c0_118, %c0_119] : memref<1x17x8x36xbf16, #tpu.memory_space<vmem>>, vector<1x1x8x36xbf16>
    %173 = vector.shape_cast %172 : vector<1x1x8x36xbf16> to vector<8x36xbf16>
    %cst_120 = arith.constant 0.000000e+00 : f32
    %174 = vector.broadcast %cst_120 : f32 to vector<8x34xf32>
    %c3_121 = arith.constant 3 : index
    %c0_122 = arith.constant 0 : index
    %c0_123 = arith.constant 0 : index
    %175 = vector.load %arg3[%c3_121, %c0_122, %c0_123] : memref<9x8x8xbf16, #tpu.memory_space<vmem>>, vector<1x8x8xbf16>
    %176 = vector.shape_cast %175 : vector<1x8x8xbf16> to vector<8x8xbf16>
    %177 = vector.extract_strided_slice %173 {offsets = [0, 0], sizes = [8, 34], strides = [1, 1]} : vector<8x36xbf16> to vector<8x34xbf16>
    %cst_124 = arith.constant dense<0.000000e+00> : vector<8x34xf32>
    %178 = tpu.matmul %176, %177, %cst_124 {dimension_numbers = #tpu.dot_dimension_numbers<[1], [0], [0], [1], [0, 0, 1, 1], [], []>} : vector<8x8xbf16>, vector<8x34xbf16>, vector<8x34xf32> -> vector<8x34xf32>
    %179 = arith.addf %174, %178 : vector<8x34xf32>
    %c4_125 = arith.constant 4 : index
    %c0_126 = arith.constant 0 : index
    %c0_127 = arith.constant 0 : index
    %180 = vector.load %arg3[%c4_125, %c0_126, %c0_127] : memref<9x8x8xbf16, #tpu.memory_space<vmem>>, vector<1x8x8xbf16>
    %181 = vector.shape_cast %180 : vector<1x8x8xbf16> to vector<8x8xbf16>
    %182 = vector.extract_strided_slice %173 {offsets = [0, 1], sizes = [8, 34], strides = [1, 1]} : vector<8x36xbf16> to vector<8x34xbf16>
    %cst_128 = arith.constant dense<0.000000e+00> : vector<8x34xf32>
    %183 = tpu.matmul %181, %182, %cst_128 {dimension_numbers = #tpu.dot_dimension_numbers<[1], [0], [0], [1], [0, 0, 1, 1], [], []>} : vector<8x8xbf16>, vector<8x34xbf16>, vector<8x34xf32> -> vector<8x34xf32>
    %184 = arith.addf %179, %183 : vector<8x34xf32>
    %c5_129 = arith.constant 5 : index
    %c0_130 = arith.constant 0 : index
    %c0_131 = arith.constant 0 : index
    %185 = vector.load %arg3[%c5_129, %c0_130, %c0_131] : memref<9x8x8xbf16, #tpu.memory_space<vmem>>, vector<1x8x8xbf16>
    %186 = vector.shape_cast %185 : vector<1x8x8xbf16> to vector<8x8xbf16>
    %187 = vector.extract_strided_slice %173 {offsets = [0, 2], sizes = [8, 34], strides = [1, 1]} : vector<8x36xbf16> to vector<8x34xbf16>
    %cst_132 = arith.constant dense<0.000000e+00> : vector<8x34xf32>
    %188 = tpu.matmul %186, %187, %cst_132 {dimension_numbers = #tpu.dot_dimension_numbers<[1], [0], [0], [1], [0, 0, 1, 1], [], []>} : vector<8x8xbf16>, vector<8x34xbf16>, vector<8x34xf32> -> vector<8x34xf32>
    %189 = arith.addf %184, %188 : vector<8x34xf32>
    %190 = vector.broadcast %0 : vector<8x1xf32> to vector<8x34xf32>
    %191 = arith.addf %189, %190 : vector<8x34xf32>
    %cst_133 = arith.constant 0.000000e+00 : f32
    %192 = vector.broadcast %cst_133 : f32 to vector<8x34xf32>
    %193 = arith.select %6, %191, %192 : vector<8x34xi1>, vector<8x34xf32>
    %194 = arith.truncf %193 : vector<8x34xf32> to vector<8x34xbf16>
    %c5_134 = arith.constant 5 : index
    %c0_135 = arith.constant 0 : index
    %c0_136 = arith.constant 0 : index
    %195 = vector.load %arg10[%c5_134, %c0_135, %c0_136] : memref<10x8x34xbf16, #tpu.memory_space<vmem>>, vector<1x8x34xbf16>
    %196 = vector.shape_cast %195 : vector<1x8x34xbf16> to vector<8x34xbf16>
    %197 = vector.shape_cast %194 : vector<8x34xbf16> to vector<1x8x34xbf16>
    tpu.vector_store %arg10[%c5_134, %c0_135, %c0_136], %197 {strides = array<i32>} : memref<10x8x34xbf16, #tpu.memory_space<vmem>>, vector<1x8x34xbf16>,
    %c3_i32 = arith.constant 3 : i32
    %198 = arith.addi %7, %c3_i32 : i32
    %c1_i32_137 = arith.constant 1 : i32
    %199 = arith.subi %198, %c1_i32_137 : i32
    %c0_138 = arith.constant 0 : index
    %200 = arith.index_cast %199 : i32 to index
    %c0_139 = arith.constant 0 : index
    %c0_140 = arith.constant 0 : index
    %201 = vector.load %arg2[%c0_138, %200, %c0_139, %c0_140] : memref<1x17x8x36xbf16, #tpu.memory_space<vmem>>, vector<1x1x8x36xbf16>
    %202 = vector.shape_cast %201 : vector<1x1x8x36xbf16> to vector<8x36xbf16>
    %c1_i32_141 = arith.constant 1 : i32
    %203 = arith.addi %199, %c1_i32_141 : i32
    %c0_142 = arith.constant 0 : index
    %204 = arith.index_cast %203 : i32 to index
    %c0_143 = arith.constant 0 : index
    %c0_144 = arith.constant 0 : index
    %205 = vector.load %arg2[%c0_142, %204, %c0_143, %c0_144] : memref<1x17x8x36xbf16, #tpu.memory_space<vmem>>, vector<1x1x8x36xbf16>
    %206 = vector.shape_cast %205 : vector<1x1x8x36xbf16> to vector<8x36xbf16>
    %cst_145 = arith.constant 0.000000e+00 : f32
    %207 = vector.broadcast %cst_145 : f32 to vector<8x34xf32>
    %c0_146 = arith.constant 0 : index
    %c0_147 = arith.constant 0 : index
    %c0_148 = arith.constant 0 : index
    %208 = vector.load %arg3[%c0_146, %c0_147, %c0_148] : memref<9x8x8xbf16, #tpu.memory_space<vmem>>, vector<1x8x8xbf16>
    %209 = vector.shape_cast %208 : vector<1x8x8xbf16> to vector<8x8xbf16>
    %210 = vector.extract_strided_slice %202 {offsets = [0, 0], sizes = [8, 34], strides = [1, 1]} : vector<8x36xbf16> to vector<8x34xbf16>
    %cst_149 = arith.constant dense<0.000000e+00> : vector<8x34xf32>
    %211 = tpu.matmul %209, %210, %cst_149 {dimension_numbers = #tpu.dot_dimension_numbers<[1], [0], [0], [1], [0, 0, 1, 1], [], []>} : vector<8x8xbf16>, vector<8x34xbf16>, vector<8x34xf32> -> vector<8x34xf32>
    %212 = arith.addf %207, %211 : vector<8x34xf32>
    %c6_150 = arith.constant 6 : index
    %c0_151 = arith.constant 0 : index
    %c0_152 = arith.constant 0 : index
    %213 = vector.load %arg3[%c6_150, %c0_151, %c0_152] : memref<9x8x8xbf16, #tpu.memory_space<vmem>>, vector<1x8x8xbf16>
    %214 = vector.shape_cast %213 : vector<1x8x8xbf16> to vector<8x8xbf16>
    %215 = vector.extract_strided_slice %206 {offsets = [0, 0], sizes = [8, 34], strides = [1, 1]} : vector<8x36xbf16> to vector<8x34xbf16>
    %cst_153 = arith.constant dense<0.000000e+00> : vector<8x34xf32>
    %216 = tpu.matmul %214, %215, %cst_153 {dimension_numbers = #tpu.dot_dimension_numbers<[1], [0], [0], [1], [0, 0, 1, 1], [], []>} : vector<8x8xbf16>, vector<8x34xbf16>, vector<8x34xf32> -> vector<8x34xf32>
    %217 = arith.addf %212, %216 : vector<8x34xf32>
    %c1_154 = arith.constant 1 : index
    %c0_155 = arith.constant 0 : index
    %c0_156 = arith.constant 0 : index
    %218 = vector.load %arg3[%c1_154, %c0_155, %c0_156] : memref<9x8x8xbf16, #tpu.memory_space<vmem>>, vector<1x8x8xbf16>
    %219 = vector.shape_cast %218 : vector<1x8x8xbf16> to vector<8x8xbf16>
    %220 = vector.extract_strided_slice %202 {offsets = [0, 1], sizes = [8, 34], strides = [1, 1]} : vector<8x36xbf16> to vector<8x34xbf16>
    %cst_157 = arith.constant dense<0.000000e+00> : vector<8x34xf32>
    %221 = tpu.matmul %219, %220, %cst_157 {dimension_numbers = #tpu.dot_dimension_numbers<[1], [0], [0], [1], [0, 0, 1, 1], [], []>} : vector<8x8xbf16>, vector<8x34xbf16>, vector<8x34xf32> -> vector<8x34xf32>
    %222 = arith.addf %217, %221 : vector<8x34xf32>
    %c7_158 = arith.constant 7 : index
    %c0_159 = arith.constant 0 : index
    %c0_160 = arith.constant 0 : index
    %223 = vector.load %arg3[%c7_158, %c0_159, %c0_160] : memref<9x8x8xbf16, #tpu.memory_space<vmem>>, vector<1x8x8xbf16>
    %224 = vector.shape_cast %223 : vector<1x8x8xbf16> to vector<8x8xbf16>
    %225 = vector.extract_strided_slice %206 {offsets = [0, 1], sizes = [8, 34], strides = [1, 1]} : vector<8x36xbf16> to vector<8x34xbf16>
    %cst_161 = arith.constant dense<0.000000e+00> : vector<8x34xf32>
    %226 = tpu.matmul %224, %225, %cst_161 {dimension_numbers = #tpu.dot_dimension_numbers<[1], [0], [0], [1], [0, 0, 1, 1], [], []>} : vector<8x8xbf16>, vector<8x34xbf16>, vector<8x34xf32> -> vector<8x34xf32>
    %227 = arith.addf %222, %226 : vector<8x34xf32>
    %c2_162 = arith.constant 2 : index
    %c0_163 = arith.constant 0 : index
    %c0_164 = arith.constant 0 : index
    %228 = vector.load %arg3[%c2_162, %c0_163, %c0_164] : memref<9x8x8xbf16, #tpu.memory_space<vmem>>, vector<1x8x8xbf16>
    %229 = vector.shape_cast %228 : vector<1x8x8xbf16> to vector<8x8xbf16>
    %230 = vector.extract_strided_slice %202 {offsets = [0, 2], sizes = [8, 34], strides = [1, 1]} : vector<8x36xbf16> to vector<8x34xbf16>
    %cst_165 = arith.constant dense<0.000000e+00> : vector<8x34xf32>
    %231 = tpu.matmul %229, %230, %cst_165 {dimension_numbers = #tpu.dot_dimension_numbers<[1], [0], [0], [1], [0, 0, 1, 1], [], []>} : vector<8x8xbf16>, vector<8x34xbf16>, vector<8x34xf32> -> vector<8x34xf32>
    %232 = arith.addf %227, %231 : vector<8x34xf32>
    %c8_166 = arith.constant 8 : index
    %c0_167 = arith.constant 0 : index
    %c0_168 = arith.constant 0 : index
    %233 = vector.load %arg3[%c8_166, %c0_167, %c0_168] : memref<9x8x8xbf16, #tpu.memory_space<vmem>>, vector<1x8x8xbf16>
    %234 = vector.shape_cast %233 : vector<1x8x8xbf16> to vector<8x8xbf16>
    %235 = vector.extract_strided_slice %206 {offsets = [0, 2], sizes = [8, 34], strides = [1, 1]} : vector<8x36xbf16> to vector<8x34xbf16>
    %cst_169 = arith.constant dense<0.000000e+00> : vector<8x34xf32>
    %236 = tpu.matmul %234, %235, %cst_169 {dimension_numbers = #tpu.dot_dimension_numbers<[1], [0], [0], [1], [0, 0, 1, 1], [], []>} : vector<8x8xbf16>, vector<8x34xbf16>, vector<8x34xf32> -> vector<8x34xf32>
    %237 = arith.addf %232, %236 : vector<8x34xf32>
    %238 = vector.broadcast %0 : vector<8x1xf32> to vector<8x34xf32>
    %239 = arith.addf %237, %238 : vector<8x34xf32>
    %cst_170 = arith.constant 0.000000e+00 : f32
    %240 = vector.broadcast %cst_170 : f32 to vector<8x34xf32>
    %241 = arith.select %6, %239, %240 : vector<8x34xi1>, vector<8x34xf32>
    %242 = arith.truncf %241 : vector<8x34xf32> to vector<8x34xbf16>
    %c6_171 = arith.constant 6 : index
    %c0_172 = arith.constant 0 : index
    %c0_173 = arith.constant 0 : index
    %243 = vector.load %arg10[%c6_171, %c0_172, %c0_173] : memref<10x8x34xbf16, #tpu.memory_space<vmem>>, vector<1x8x34xbf16>
    %244 = vector.shape_cast %243 : vector<1x8x34xbf16> to vector<8x34xbf16>
    %245 = vector.shape_cast %242 : vector<8x34xbf16> to vector<1x8x34xbf16>
    tpu.vector_store %arg10[%c6_171, %c0_172, %c0_173], %245 {strides = array<i32>} : memref<10x8x34xbf16, #tpu.memory_space<vmem>>, vector<1x8x34xbf16>,
    %c3_i32_174 = arith.constant 3 : i32
    %246 = arith.addi %7, %c3_i32_174 : i32
    %c0_175 = arith.constant 0 : index
    %247 = arith.index_cast %246 : i32 to index
    %c0_176 = arith.constant 0 : index
    %c0_177 = arith.constant 0 : index
    %248 = vector.load %arg2[%c0_175, %247, %c0_176, %c0_177] : memref<1x17x8x36xbf16, #tpu.memory_space<vmem>>, vector<1x1x8x36xbf16>
    %249 = vector.shape_cast %248 : vector<1x1x8x36xbf16> to vector<8x36xbf16>
    %cst_178 = arith.constant 0.000000e+00 : f32
    %250 = vector.broadcast %cst_178 : f32 to vector<8x34xf32>
    %c3_179 = arith.constant 3 : index
    %c0_180 = arith.constant 0 : index
    %c0_181 = arith.constant 0 : index
    %251 = vector.load %arg3[%c3_179, %c0_180, %c0_181] : memref<9x8x8xbf16, #tpu.memory_space<vmem>>, vector<1x8x8xbf16>
    %252 = vector.shape_cast %251 : vector<1x8x8xbf16> to vector<8x8xbf16>
    %253 = vector.extract_strided_slice %249 {offsets = [0, 0], sizes = [8, 34], strides = [1, 1]} : vector<8x36xbf16> to vector<8x34xbf16>
    %cst_182 = arith.constant dense<0.000000e+00> : vector<8x34xf32>
    %254 = tpu.matmul %252, %253, %cst_182 {dimension_numbers = #tpu.dot_dimension_numbers<[1], [0], [0], [1], [0, 0, 1, 1], [], []>} : vector<8x8xbf16>, vector<8x34xbf16>, vector<8x34xf32> -> vector<8x34xf32>
    %255 = arith.addf %250, %254 : vector<8x34xf32>
    %c4_183 = arith.constant 4 : index
    %c0_184 = arith.constant 0 : index
    %c0_185 = arith.constant 0 : index
    %256 = vector.load %arg3[%c4_183, %c0_184, %c0_185] : memref<9x8x8xbf16, #tpu.memory_space<vmem>>, vector<1x8x8xbf16>
    %257 = vector.shape_cast %256 : vector<1x8x8xbf16> to vector<8x8xbf16>
    %258 = vector.extract_strided_slice %249 {offsets = [0, 1], sizes = [8, 34], strides = [1, 1]} : vector<8x36xbf16> to vector<8x34xbf16>
    %cst_186 = arith.constant dense<0.000000e+00> : vector<8x34xf32>
    %259 = tpu.matmul %257, %258, %cst_186 {dimension_numbers = #tpu.dot_dimension_numbers<[1], [0], [0], [1], [0, 0, 1, 1], [], []>} : vector<8x8xbf16>, vector<8x34xbf16>, vector<8x34xf32> -> vector<8x34xf32>
    %260 = arith.addf %255, %259 : vector<8x34xf32>
    %c5_187 = arith.constant 5 : index
    %c0_188 = arith.constant 0 : index
    %c0_189 = arith.constant 0 : index
    %261 = vector.load %arg3[%c5_187, %c0_188, %c0_189] : memref<9x8x8xbf16, #tpu.memory_space<vmem>>, vector<1x8x8xbf16>
    %262 = vector.shape_cast %261 : vector<1x8x8xbf16> to vector<8x8xbf16>
    %263 = vector.extract_strided_slice %249 {offsets = [0, 2], sizes = [8, 34], strides = [1, 1]} : vector<8x36xbf16> to vector<8x34xbf16>
    %cst_190 = arith.constant dense<0.000000e+00> : vector<8x34xf32>
    %264 = tpu.matmul %262, %263, %cst_190 {dimension_numbers = #tpu.dot_dimension_numbers<[1], [0], [0], [1], [0, 0, 1, 1], [], []>} : vector<8x8xbf16>, vector<8x34xbf16>, vector<8x34xf32> -> vector<8x34xf32>
    %265 = arith.addf %260, %264 : vector<8x34xf32>
    %266 = vector.broadcast %0 : vector<8x1xf32> to vector<8x34xf32>
    %267 = arith.addf %265, %266 : vector<8x34xf32>
    %cst_191 = arith.constant 0.000000e+00 : f32
    %268 = vector.broadcast %cst_191 : f32 to vector<8x34xf32>
    %269 = arith.select %6, %267, %268 : vector<8x34xi1>, vector<8x34xf32>
    %270 = arith.truncf %269 : vector<8x34xf32> to vector<8x34xbf16>
    %c7_192 = arith.constant 7 : index
    %c0_193 = arith.constant 0 : index
    %c0_194 = arith.constant 0 : index
    %271 = vector.load %arg10[%c7_192, %c0_193, %c0_194] : memref<10x8x34xbf16, #tpu.memory_space<vmem>>, vector<1x8x34xbf16>
    %272 = vector.shape_cast %271 : vector<1x8x34xbf16> to vector<8x34xbf16>
    %273 = vector.shape_cast %270 : vector<8x34xbf16> to vector<1x8x34xbf16>
    tpu.vector_store %arg10[%c7_192, %c0_193, %c0_194], %273 {strides = array<i32>} : memref<10x8x34xbf16, #tpu.memory_space<vmem>>, vector<1x8x34xbf16>,
    %c4_i32_195 = arith.constant 4 : i32
    %274 = arith.addi %7, %c4_i32_195 : i32
    %c1_i32_196 = arith.constant 1 : i32
    %275 = arith.subi %274, %c1_i32_196 : i32
    %c0_197 = arith.constant 0 : index
    %276 = arith.index_cast %275 : i32 to index
    %c0_198 = arith.constant 0 : index
    %c0_199 = arith.constant 0 : index
    %277 = vector.load %arg2[%c0_197, %276, %c0_198, %c0_199] : memref<1x17x8x36xbf16, #tpu.memory_space<vmem>>, vector<1x1x8x36xbf16>
    %278 = vector.shape_cast %277 : vector<1x1x8x36xbf16> to vector<8x36xbf16>
    %c1_i32_200 = arith.constant 1 : i32
    %279 = arith.addi %275, %c1_i32_200 : i32
    %c0_201 = arith.constant 0 : index
    %280 = arith.index_cast %279 : i32 to index
    %c0_202 = arith.constant 0 : index
    %c0_203 = arith.constant 0 : index
    %281 = vector.load %arg2[%c0_201, %280, %c0_202, %c0_203] : memref<1x17x8x36xbf16, #tpu.memory_space<vmem>>, vector<1x1x8x36xbf16>
    %282 = vector.shape_cast %281 : vector<1x1x8x36xbf16> to vector<8x36xbf16>
    %cst_204 = arith.constant 0.000000e+00 : f32
    %283 = vector.broadcast %cst_204 : f32 to vector<8x34xf32>
    %c0_205 = arith.constant 0 : index
    %c0_206 = arith.constant 0 : index
    %c0_207 = arith.constant 0 : index
    %284 = vector.load %arg3[%c0_205, %c0_206, %c0_207] : memref<9x8x8xbf16, #tpu.memory_space<vmem>>, vector<1x8x8xbf16>
    %285 = vector.shape_cast %284 : vector<1x8x8xbf16> to vector<8x8xbf16>
    %286 = vector.extract_strided_slice %278 {offsets = [0, 0], sizes = [8, 34], strides = [1, 1]} : vector<8x36xbf16> to vector<8x34xbf16>
    %cst_208 = arith.constant dense<0.000000e+00> : vector<8x34xf32>
    %287 = tpu.matmul %285, %286, %cst_208 {dimension_numbers = #tpu.dot_dimension_numbers<[1], [0], [0], [1], [0, 0, 1, 1], [], []>} : vector<8x8xbf16>, vector<8x34xbf16>, vector<8x34xf32> -> vector<8x34xf32>
    %288 = arith.addf %283, %287 : vector<8x34xf32>
    %c6_209 = arith.constant 6 : index
    %c0_210 = arith.constant 0 : index
    %c0_211 = arith.constant 0 : index
    %289 = vector.load %arg3[%c6_209, %c0_210, %c0_211] : memref<9x8x8xbf16, #tpu.memory_space<vmem>>, vector<1x8x8xbf16>
    %290 = vector.shape_cast %289 : vector<1x8x8xbf16> to vector<8x8xbf16>
    %291 = vector.extract_strided_slice %282 {offsets = [0, 0], sizes = [8, 34], strides = [1, 1]} : vector<8x36xbf16> to vector<8x34xbf16>
    %cst_212 = arith.constant dense<0.000000e+00> : vector<8x34xf32>
    %292 = tpu.matmul %290, %291, %cst_212 {dimension_numbers = #tpu.dot_dimension_numbers<[1], [0], [0], [1], [0, 0, 1, 1], [], []>} : vector<8x8xbf16>, vector<8x34xbf16>, vector<8x34xf32> -> vector<8x34xf32>
    %293 = arith.addf %288, %292 : vector<8x34xf32>
    %c1_213 = arith.constant 1 : index
    %c0_214 = arith.constant 0 : index
    %c0_215 = arith.constant 0 : index
    %294 = vector.load %arg3[%c1_213, %c0_214, %c0_215] : memref<9x8x8xbf16, #tpu.memory_space<vmem>>, vector<1x8x8xbf16>
    %295 = vector.shape_cast %294 : vector<1x8x8xbf16> to vector<8x8xbf16>
    %296 = vector.extract_strided_slice %278 {offsets = [0, 1], sizes = [8, 34], strides = [1, 1]} : vector<8x36xbf16> to vector<8x34xbf16>
    %cst_216 = arith.constant dense<0.000000e+00> : vector<8x34xf32>
    %297 = tpu.matmul %295, %296, %cst_216 {dimension_numbers = #tpu.dot_dimension_numbers<[1], [0], [0], [1], [0, 0, 1, 1], [], []>} : vector<8x8xbf16>, vector<8x34xbf16>, vector<8x34xf32> -> vector<8x34xf32>
    %298 = arith.addf %293, %297 : vector<8x34xf32>
    %c7_217 = arith.constant 7 : index
    %c0_218 = arith.constant 0 : index
    %c0_219 = arith.constant 0 : index
    %299 = vector.load %arg3[%c7_217, %c0_218, %c0_219] : memref<9x8x8xbf16, #tpu.memory_space<vmem>>, vector<1x8x8xbf16>
    %300 = vector.shape_cast %299 : vector<1x8x8xbf16> to vector<8x8xbf16>
    %301 = vector.extract_strided_slice %282 {offsets = [0, 1], sizes = [8, 34], strides = [1, 1]} : vector<8x36xbf16> to vector<8x34xbf16>
    %cst_220 = arith.constant dense<0.000000e+00> : vector<8x34xf32>
    %302 = tpu.matmul %300, %301, %cst_220 {dimension_numbers = #tpu.dot_dimension_numbers<[1], [0], [0], [1], [0, 0, 1, 1], [], []>} : vector<8x8xbf16>, vector<8x34xbf16>, vector<8x34xf32> -> vector<8x34xf32>
    %303 = arith.addf %298, %302 : vector<8x34xf32>
    %c2_221 = arith.constant 2 : index
    %c0_222 = arith.constant 0 : index
    %c0_223 = arith.constant 0 : index
    %304 = vector.load %arg3[%c2_221, %c0_222, %c0_223] : memref<9x8x8xbf16, #tpu.memory_space<vmem>>, vector<1x8x8xbf16>
    %305 = vector.shape_cast %304 : vector<1x8x8xbf16> to vector<8x8xbf16>
    %306 = vector.extract_strided_slice %278 {offsets = [0, 2], sizes = [8, 34], strides = [1, 1]} : vector<8x36xbf16> to vector<8x34xbf16>
    %cst_224 = arith.constant dense<0.000000e+00> : vector<8x34xf32>
    %307 = tpu.matmul %305, %306, %cst_224 {dimension_numbers = #tpu.dot_dimension_numbers<[1], [0], [0], [1], [0, 0, 1, 1], [], []>} : vector<8x8xbf16>, vector<8x34xbf16>, vector<8x34xf32> -> vector<8x34xf32>
    %308 = arith.addf %303, %307 : vector<8x34xf32>
    %c8_225 = arith.constant 8 : index
    %c0_226 = arith.constant 0 : index
    %c0_227 = arith.constant 0 : index
    %309 = vector.load %arg3[%c8_225, %c0_226, %c0_227] : memref<9x8x8xbf16, #tpu.memory_space<vmem>>, vector<1x8x8xbf16>
    %310 = vector.shape_cast %309 : vector<1x8x8xbf16> to vector<8x8xbf16>
    %311 = vector.extract_strided_slice %282 {offsets = [0, 2], sizes = [8, 34], strides = [1, 1]} : vector<8x36xbf16> to vector<8x34xbf16>
    %cst_228 = arith.constant dense<0.000000e+00> : vector<8x34xf32>
    %312 = tpu.matmul %310, %311, %cst_228 {dimension_numbers = #tpu.dot_dimension_numbers<[1], [0], [0], [1], [0, 0, 1, 1], [], []>} : vector<8x8xbf16>, vector<8x34xbf16>, vector<8x34xf32> -> vector<8x34xf32>
    %313 = arith.addf %308, %312 : vector<8x34xf32>
    %314 = vector.broadcast %0 : vector<8x1xf32> to vector<8x34xf32>
    %315 = arith.addf %313, %314 : vector<8x34xf32>
    %cst_229 = arith.constant 0.000000e+00 : f32
    %316 = vector.broadcast %cst_229 : f32 to vector<8x34xf32>
    %317 = arith.select %6, %315, %316 : vector<8x34xi1>, vector<8x34xf32>
    %318 = arith.truncf %317 : vector<8x34xf32> to vector<8x34xbf16>
    %c8_230 = arith.constant 8 : index
    %c0_231 = arith.constant 0 : index
    %c0_232 = arith.constant 0 : index
    %319 = vector.load %arg10[%c8_230, %c0_231, %c0_232] : memref<10x8x34xbf16, #tpu.memory_space<vmem>>, vector<1x8x34xbf16>
    %320 = vector.shape_cast %319 : vector<1x8x34xbf16> to vector<8x34xbf16>
    %321 = vector.shape_cast %318 : vector<8x34xbf16> to vector<1x8x34xbf16>
    tpu.vector_store %arg10[%c8_230, %c0_231, %c0_232], %321 {strides = array<i32>} : memref<10x8x34xbf16, #tpu.memory_space<vmem>>, vector<1x8x34xbf16>,
    %c3_i32_233 = arith.constant 3 : i32
    %322 = arith.cmpi slt, %arg1, %c3_i32_233 : i32
    %323 = arith.extui %322 : i1 to i32
    %c0_i32_234 = arith.constant 0 : i32
    %324 = arith.cmpi ne, %323, %c0_i32_234 : i32
    scf.if %324 {
      %c4_i32_649 = arith.constant 4 : i32
      %832 = arith.addi %7, %c4_i32_649 : i32
      %c0_650 = arith.constant 0 : index
      %833 = arith.index_cast %832 : i32 to index
      %c0_651 = arith.constant 0 : index
      %c0_652 = arith.constant 0 : index
      %834 = vector.load %arg2[%c0_650, %833, %c0_651, %c0_652] : memref<1x17x8x36xbf16, #tpu.memory_space<vmem>>, vector<1x1x8x36xbf16>
      %835 = vector.shape_cast %834 : vector<1x1x8x36xbf16> to vector<8x36xbf16>
      %cst_653 = arith.constant 0.000000e+00 : f32
      %836 = vector.broadcast %cst_653 : f32 to vector<8x34xf32>
      %c3_654 = arith.constant 3 : index
      %c0_655 = arith.constant 0 : index
      %c0_656 = arith.constant 0 : index
      %837 = vector.load %arg3[%c3_654, %c0_655, %c0_656] : memref<9x8x8xbf16, #tpu.memory_space<vmem>>, vector<1x8x8xbf16>
      %838 = vector.shape_cast %837 : vector<1x8x8xbf16> to vector<8x8xbf16>
      %839 = vector.extract_strided_slice %835 {offsets = [0, 0], sizes = [8, 34], strides = [1, 1]} : vector<8x36xbf16> to vector<8x34xbf16>
      %cst_657 = arith.constant dense<0.000000e+00> : vector<8x34xf32>
      %840 = tpu.matmul %838, %839, %cst_657 {dimension_numbers = #tpu.dot_dimension_numbers<[1], [0], [0], [1], [0, 0, 1, 1], [], []>} : vector<8x8xbf16>, vector<8x34xbf16>, vector<8x34xf32> -> vector<8x34xf32>
      %841 = arith.addf %836, %840 : vector<8x34xf32>
      %c4_658 = arith.constant 4 : index
      %c0_659 = arith.constant 0 : index
      %c0_660 = arith.constant 0 : index
      %842 = vector.load %arg3[%c4_658, %c0_659, %c0_660] : memref<9x8x8xbf16, #tpu.memory_space<vmem>>, vector<1x8x8xbf16>
      %843 = vector.shape_cast %842 : vector<1x8x8xbf16> to vector<8x8xbf16>
      %844 = vector.extract_strided_slice %835 {offsets = [0, 1], sizes = [8, 34], strides = [1, 1]} : vector<8x36xbf16> to vector<8x34xbf16>
      %cst_661 = arith.constant dense<0.000000e+00> : vector<8x34xf32>
      %845 = tpu.matmul %843, %844, %cst_661 {dimension_numbers = #tpu.dot_dimension_numbers<[1], [0], [0], [1], [0, 0, 1, 1], [], []>} : vector<8x8xbf16>, vector<8x34xbf16>, vector<8x34xf32> -> vector<8x34xf32>
      %846 = arith.addf %841, %845 : vector<8x34xf32>
      %c5_662 = arith.constant 5 : index
      %c0_663 = arith.constant 0 : index
      %c0_664 = arith.constant 0 : index
      %847 = vector.load %arg3[%c5_662, %c0_663, %c0_664] : memref<9x8x8xbf16, #tpu.memory_space<vmem>>, vector<1x8x8xbf16>
      %848 = vector.shape_cast %847 : vector<1x8x8xbf16> to vector<8x8xbf16>
      %849 = vector.extract_strided_slice %835 {offsets = [0, 2], sizes = [8, 34], strides = [1, 1]} : vector<8x36xbf16> to vector<8x34xbf16>
      %cst_665 = arith.constant dense<0.000000e+00> : vector<8x34xf32>
      %850 = tpu.matmul %848, %849, %cst_665 {dimension_numbers = #tpu.dot_dimension_numbers<[1], [0], [0], [1], [0, 0, 1, 1], [], []>} : vector<8x8xbf16>, vector<8x34xbf16>, vector<8x34xf32> -> vector<8x34xf32>
      %851 = arith.addf %846, %850 : vector<8x34xf32>
      %852 = vector.broadcast %0 : vector<8x1xf32> to vector<8x34xf32>
      %853 = arith.addf %851, %852 : vector<8x34xf32>
      %cst_666 = arith.constant 0.000000e+00 : f32
      %854 = vector.broadcast %cst_666 : f32 to vector<8x34xf32>
      %855 = arith.select %6, %853, %854 : vector<8x34xi1>, vector<8x34xf32>
      %856 = arith.truncf %855 : vector<8x34xf32> to vector<8x34xbf16>
      %c9_667 = arith.constant 9 : index
      %c0_668 = arith.constant 0 : index
      %c0_669 = arith.constant 0 : index
      %857 = vector.load %arg10[%c9_667, %c0_668, %c0_669] : memref<10x8x34xbf16, #tpu.memory_space<vmem>>, vector<1x8x34xbf16>
      %858 = vector.shape_cast %857 : vector<1x8x34xbf16> to vector<8x34xbf16>
      %859 = vector.shape_cast %856 : vector<8x34xbf16> to vector<1x8x34xbf16>
      tpu.vector_store %arg10[%c9_667, %c0_668, %c0_669], %859 {strides = array<i32>} : memref<10x8x34xbf16, #tpu.memory_space<vmem>>, vector<1x8x34xbf16>,
    } else {
    }
    %c0_235 = arith.constant 0 : index
    %c0_236 = arith.constant 0 : index
    %325 = vector.load %arg6[%c0_235, %c0_236] : memref<8x1xf32, #tpu.memory_space<vmem>>, vector<8x1xf32>
    %c0_237 = arith.constant 0 : index
    %c0_238 = arith.constant 0 : index
    %326 = vector.load %arg7[%c0_237, %c0_238] : memref<8x1xf32, #tpu.memory_space<vmem>>, vector<8x1xf32>
    %c0_239 = arith.constant 0 : index
    %c0_240 = arith.constant 0 : index
    %327 = vector.load %arg8[%c0_239, %c0_240] : memref<8x1xf32, #tpu.memory_space<vmem>>, vector<8x1xf32>
    %cst_241 = arith.constant 0.000000e+00 : f32
    %328 = vector.broadcast %cst_241 : f32 to vector<8x32xf32>
    %c0_242 = arith.constant 0 : index
    %c0_243 = arith.constant 0 : index
    %c0_244 = arith.constant 0 : index
    %329 = vector.load %arg10[%c0_242, %c0_243, %c0_244] : memref<10x8x34xbf16, #tpu.memory_space<vmem>>, vector<1x8x34xbf16>
    %330 = vector.shape_cast %329 : vector<1x8x34xbf16> to vector<8x34xbf16>
    %c0_245 = arith.constant 0 : index
    %c0_246 = arith.constant 0 : index
    %c0_247 = arith.constant 0 : index
    %331 = vector.load %arg4[%c0_245, %c0_246, %c0_247] : memref<9x8x8xbf16, #tpu.memory_space<vmem>>, vector<1x8x8xbf16>
    %332 = vector.shape_cast %331 : vector<1x8x8xbf16> to vector<8x8xbf16>
    %333 = vector.extract_strided_slice %330 {offsets = [0, 0], sizes = [8, 32], strides = [1, 1]} : vector<8x34xbf16> to vector<8x32xbf16>
    %cst_248 = arith.constant dense<0.000000e+00> : vector<8x32xf32>
    %334 = tpu.matmul %332, %333, %cst_248 {dimension_numbers = #tpu.dot_dimension_numbers<[1], [0], [0], [1], [0, 0, 1, 1], [], []>} : vector<8x8xbf16>, vector<8x32xbf16>, vector<8x32xf32> -> vector<8x32xf32>
    %335 = arith.addf %328, %334 : vector<8x32xf32>
    %c1_249 = arith.constant 1 : index
    %c0_250 = arith.constant 0 : index
    %c0_251 = arith.constant 0 : index
    %336 = vector.load %arg4[%c1_249, %c0_250, %c0_251] : memref<9x8x8xbf16, #tpu.memory_space<vmem>>, vector<1x8x8xbf16>
    %337 = vector.shape_cast %336 : vector<1x8x8xbf16> to vector<8x8xbf16>
    %338 = vector.extract_strided_slice %330 {offsets = [0, 1], sizes = [8, 32], strides = [1, 1]} : vector<8x34xbf16> to vector<8x32xbf16>
    %cst_252 = arith.constant dense<0.000000e+00> : vector<8x32xf32>
    %339 = tpu.matmul %337, %338, %cst_252 {dimension_numbers = #tpu.dot_dimension_numbers<[1], [0], [0], [1], [0, 0, 1, 1], [], []>} : vector<8x8xbf16>, vector<8x32xbf16>, vector<8x32xf32> -> vector<8x32xf32>
    %340 = arith.addf %335, %339 : vector<8x32xf32>
    %c2_253 = arith.constant 2 : index
    %c0_254 = arith.constant 0 : index
    %c0_255 = arith.constant 0 : index
    %341 = vector.load %arg4[%c2_253, %c0_254, %c0_255] : memref<9x8x8xbf16, #tpu.memory_space<vmem>>, vector<1x8x8xbf16>
    %342 = vector.shape_cast %341 : vector<1x8x8xbf16> to vector<8x8xbf16>
    %343 = vector.extract_strided_slice %330 {offsets = [0, 2], sizes = [8, 32], strides = [1, 1]} : vector<8x34xbf16> to vector<8x32xbf16>
    %cst_256 = arith.constant dense<0.000000e+00> : vector<8x32xf32>
    %344 = tpu.matmul %342, %343, %cst_256 {dimension_numbers = #tpu.dot_dimension_numbers<[1], [0], [0], [1], [0, 0, 1, 1], [], []>} : vector<8x8xbf16>, vector<8x32xbf16>, vector<8x32xf32> -> vector<8x32xf32>
    %345 = arith.addf %340, %344 : vector<8x32xf32>
    %c1_257 = arith.constant 1 : index
    %c0_258 = arith.constant 0 : index
    %c0_259 = arith.constant 0 : index
    %346 = vector.load %arg10[%c1_257, %c0_258, %c0_259] : memref<10x8x34xbf16, #tpu.memory_space<vmem>>, vector<1x8x34xbf16>
    %347 = vector.shape_cast %346 : vector<1x8x34xbf16> to vector<8x34xbf16>
    %c3_260 = arith.constant 3 : index
    %c0_261 = arith.constant 0 : index
    %c0_262 = arith.constant 0 : index
    %348 = vector.load %arg4[%c3_260, %c0_261, %c0_262] : memref<9x8x8xbf16, #tpu.memory_space<vmem>>, vector<1x8x8xbf16>
    %349 = vector.shape_cast %348 : vector<1x8x8xbf16> to vector<8x8xbf16>
    %350 = vector.extract_strided_slice %347 {offsets = [0, 0], sizes = [8, 32], strides = [1, 1]} : vector<8x34xbf16> to vector<8x32xbf16>
    %cst_263 = arith.constant dense<0.000000e+00> : vector<8x32xf32>
    %351 = tpu.matmul %349, %350, %cst_263 {dimension_numbers = #tpu.dot_dimension_numbers<[1], [0], [0], [1], [0, 0, 1, 1], [], []>} : vector<8x8xbf16>, vector<8x32xbf16>, vector<8x32xf32> -> vector<8x32xf32>
    %352 = arith.addf %345, %351 : vector<8x32xf32>
    %c4_264 = arith.constant 4 : index
    %c0_265 = arith.constant 0 : index
    %c0_266 = arith.constant 0 : index
    %353 = vector.load %arg4[%c4_264, %c0_265, %c0_266] : memref<9x8x8xbf16, #tpu.memory_space<vmem>>, vector<1x8x8xbf16>
    %354 = vector.shape_cast %353 : vector<1x8x8xbf16> to vector<8x8xbf16>
    %355 = vector.extract_strided_slice %347 {offsets = [0, 1], sizes = [8, 32], strides = [1, 1]} : vector<8x34xbf16> to vector<8x32xbf16>
    %cst_267 = arith.constant dense<0.000000e+00> : vector<8x32xf32>
    %356 = tpu.matmul %354, %355, %cst_267 {dimension_numbers = #tpu.dot_dimension_numbers<[1], [0], [0], [1], [0, 0, 1, 1], [], []>} : vector<8x8xbf16>, vector<8x32xbf16>, vector<8x32xf32> -> vector<8x32xf32>
    %357 = arith.addf %352, %356 : vector<8x32xf32>
    %c5_268 = arith.constant 5 : index
    %c0_269 = arith.constant 0 : index
    %c0_270 = arith.constant 0 : index
    %358 = vector.load %arg4[%c5_268, %c0_269, %c0_270] : memref<9x8x8xbf16, #tpu.memory_space<vmem>>, vector<1x8x8xbf16>
    %359 = vector.shape_cast %358 : vector<1x8x8xbf16> to vector<8x8xbf16>
    %360 = vector.extract_strided_slice %347 {offsets = [0, 2], sizes = [8, 32], strides = [1, 1]} : vector<8x34xbf16> to vector<8x32xbf16>
    %cst_271 = arith.constant dense<0.000000e+00> : vector<8x32xf32>
    %361 = tpu.matmul %359, %360, %cst_271 {dimension_numbers = #tpu.dot_dimension_numbers<[1], [0], [0], [1], [0, 0, 1, 1], [], []>} : vector<8x8xbf16>, vector<8x32xbf16>, vector<8x32xf32> -> vector<8x32xf32>
    %362 = arith.addf %357, %361 : vector<8x32xf32>
    %c2_272 = arith.constant 2 : index
    %c0_273 = arith.constant 0 : index
    %c0_274 = arith.constant 0 : index
    %363 = vector.load %arg10[%c2_272, %c0_273, %c0_274] : memref<10x8x34xbf16, #tpu.memory_space<vmem>>, vector<1x8x34xbf16>
    %364 = vector.shape_cast %363 : vector<1x8x34xbf16> to vector<8x34xbf16>
    %c6_275 = arith.constant 6 : index
    %c0_276 = arith.constant 0 : index
    %c0_277 = arith.constant 0 : index
    %365 = vector.load %arg4[%c6_275, %c0_276, %c0_277] : memref<9x8x8xbf16, #tpu.memory_space<vmem>>, vector<1x8x8xbf16>
    %366 = vector.shape_cast %365 : vector<1x8x8xbf16> to vector<8x8xbf16>
    %367 = vector.extract_strided_slice %364 {offsets = [0, 0], sizes = [8, 32], strides = [1, 1]} : vector<8x34xbf16> to vector<8x32xbf16>
    %cst_278 = arith.constant dense<0.000000e+00> : vector<8x32xf32>
    %368 = tpu.matmul %366, %367, %cst_278 {dimension_numbers = #tpu.dot_dimension_numbers<[1], [0], [0], [1], [0, 0, 1, 1], [], []>} : vector<8x8xbf16>, vector<8x32xbf16>, vector<8x32xf32> -> vector<8x32xf32>
    %369 = arith.addf %362, %368 : vector<8x32xf32>
    %c7_279 = arith.constant 7 : index
    %c0_280 = arith.constant 0 : index
    %c0_281 = arith.constant 0 : index
    %370 = vector.load %arg4[%c7_279, %c0_280, %c0_281] : memref<9x8x8xbf16, #tpu.memory_space<vmem>>, vector<1x8x8xbf16>
    %371 = vector.shape_cast %370 : vector<1x8x8xbf16> to vector<8x8xbf16>
    %372 = vector.extract_strided_slice %364 {offsets = [0, 1], sizes = [8, 32], strides = [1, 1]} : vector<8x34xbf16> to vector<8x32xbf16>
    %cst_282 = arith.constant dense<0.000000e+00> : vector<8x32xf32>
    %373 = tpu.matmul %371, %372, %cst_282 {dimension_numbers = #tpu.dot_dimension_numbers<[1], [0], [0], [1], [0, 0, 1, 1], [], []>} : vector<8x8xbf16>, vector<8x32xbf16>, vector<8x32xf32> -> vector<8x32xf32>
    %374 = arith.addf %369, %373 : vector<8x32xf32>
    %c8_283 = arith.constant 8 : index
    %c0_284 = arith.constant 0 : index
    %c0_285 = arith.constant 0 : index
    %375 = vector.load %arg4[%c8_283, %c0_284, %c0_285] : memref<9x8x8xbf16, #tpu.memory_space<vmem>>, vector<1x8x8xbf16>
    %376 = vector.shape_cast %375 : vector<1x8x8xbf16> to vector<8x8xbf16>
    %377 = vector.extract_strided_slice %364 {offsets = [0, 2], sizes = [8, 32], strides = [1, 1]} : vector<8x34xbf16> to vector<8x32xbf16>
    %cst_286 = arith.constant dense<0.000000e+00> : vector<8x32xf32>
    %378 = tpu.matmul %376, %377, %cst_286 {dimension_numbers = #tpu.dot_dimension_numbers<[1], [0], [0], [1], [0, 0, 1, 1], [], []>} : vector<8x8xbf16>, vector<8x32xbf16>, vector<8x32xf32> -> vector<8x32xf32>
    %379 = arith.addf %374, %378 : vector<8x32xf32>
    %380 = vector.broadcast %325 : vector<8x1xf32> to vector<8x32xf32>
    %381 = arith.addf %379, %380 : vector<8x32xf32>
    %cst_287 = arith.constant 0.000000e+00 : f32
    %382 = vector.broadcast %cst_287 : f32 to vector<8x32xf32>
    %383 = arith.maximumf %381, %382 : vector<8x32xf32>
    %384 = vector.broadcast %326 : vector<8x1xf32> to vector<8x32xf32>
    %385 = arith.mulf %383, %384 : vector<8x32xf32>
    %386 = vector.broadcast %327 : vector<8x1xf32> to vector<8x32xf32>
    %387 = arith.addf %385, %386 : vector<8x32xf32>
    %c0_288 = arith.constant 0 : index
    %c0_289 = arith.constant 0 : index
    %c0_290 = arith.constant 0 : index
    %c0_291 = arith.constant 0 : index
    %388 = vector.load %arg9[%c0_288, %c0_289, %c0_290, %c0_291] : memref<1x8x8x32xf32, #tpu.memory_space<vmem>>, vector<1x8x1x32xf32>
    %389 = vector.shape_cast %388 : vector<1x8x1x32xf32> to vector<8x32xf32>
    %390 = vector.shape_cast %387 : vector<8x32xf32> to vector<1x8x1x32xf32>
    tpu.vector_store %arg9[%c0_288, %c0_289, %c0_290, %c0_291], %390 {strides = array<i32>} : memref<1x8x8x32xf32, #tpu.memory_space<vmem>>, vector<1x8x1x32xf32>,
    %cst_292 = arith.constant 0.000000e+00 : f32
    %391 = vector.broadcast %cst_292 : f32 to vector<8x32xf32>
    %c1_293 = arith.constant 1 : index
    %c0_294 = arith.constant 0 : index
    %c0_295 = arith.constant 0 : index
    %392 = vector.load %arg10[%c1_293, %c0_294, %c0_295] : memref<10x8x34xbf16, #tpu.memory_space<vmem>>, vector<1x8x34xbf16>
    %393 = vector.shape_cast %392 : vector<1x8x34xbf16> to vector<8x34xbf16>
    %c0_296 = arith.constant 0 : index
    %c0_297 = arith.constant 0 : index
    %c0_298 = arith.constant 0 : index
    %394 = vector.load %arg4[%c0_296, %c0_297, %c0_298] : memref<9x8x8xbf16, #tpu.memory_space<vmem>>, vector<1x8x8xbf16>
    %395 = vector.shape_cast %394 : vector<1x8x8xbf16> to vector<8x8xbf16>
    %396 = vector.extract_strided_slice %393 {offsets = [0, 0], sizes = [8, 32], strides = [1, 1]} : vector<8x34xbf16> to vector<8x32xbf16>
    %cst_299 = arith.constant dense<0.000000e+00> : vector<8x32xf32>
    %397 = tpu.matmul %395, %396, %cst_299 {dimension_numbers = #tpu.dot_dimension_numbers<[1], [0], [0], [1], [0, 0, 1, 1], [], []>} : vector<8x8xbf16>, vector<8x32xbf16>, vector<8x32xf32> -> vector<8x32xf32>
    %398 = arith.addf %391, %397 : vector<8x32xf32>
    %c1_300 = arith.constant 1 : index
    %c0_301 = arith.constant 0 : index
    %c0_302 = arith.constant 0 : index
    %399 = vector.load %arg4[%c1_300, %c0_301, %c0_302] : memref<9x8x8xbf16, #tpu.memory_space<vmem>>, vector<1x8x8xbf16>
    %400 = vector.shape_cast %399 : vector<1x8x8xbf16> to vector<8x8xbf16>
    %401 = vector.extract_strided_slice %393 {offsets = [0, 1], sizes = [8, 32], strides = [1, 1]} : vector<8x34xbf16> to vector<8x32xbf16>
    %cst_303 = arith.constant dense<0.000000e+00> : vector<8x32xf32>
    %402 = tpu.matmul %400, %401, %cst_303 {dimension_numbers = #tpu.dot_dimension_numbers<[1], [0], [0], [1], [0, 0, 1, 1], [], []>} : vector<8x8xbf16>, vector<8x32xbf16>, vector<8x32xf32> -> vector<8x32xf32>
    %403 = arith.addf %398, %402 : vector<8x32xf32>
    %c2_304 = arith.constant 2 : index
    %c0_305 = arith.constant 0 : index
    %c0_306 = arith.constant 0 : index
    %404 = vector.load %arg4[%c2_304, %c0_305, %c0_306] : memref<9x8x8xbf16, #tpu.memory_space<vmem>>, vector<1x8x8xbf16>
    %405 = vector.shape_cast %404 : vector<1x8x8xbf16> to vector<8x8xbf16>
    %406 = vector.extract_strided_slice %393 {offsets = [0, 2], sizes = [8, 32], strides = [1, 1]} : vector<8x34xbf16> to vector<8x32xbf16>
    %cst_307 = arith.constant dense<0.000000e+00> : vector<8x32xf32>
    %407 = tpu.matmul %405, %406, %cst_307 {dimension_numbers = #tpu.dot_dimension_numbers<[1], [0], [0], [1], [0, 0, 1, 1], [], []>} : vector<8x8xbf16>, vector<8x32xbf16>, vector<8x32xf32> -> vector<8x32xf32>
    %408 = arith.addf %403, %407 : vector<8x32xf32>
    %c2_308 = arith.constant 2 : index
    %c0_309 = arith.constant 0 : index
    %c0_310 = arith.constant 0 : index
    %409 = vector.load %arg10[%c2_308, %c0_309, %c0_310] : memref<10x8x34xbf16, #tpu.memory_space<vmem>>, vector<1x8x34xbf16>
    %410 = vector.shape_cast %409 : vector<1x8x34xbf16> to vector<8x34xbf16>
    %c3_311 = arith.constant 3 : index
    %c0_312 = arith.constant 0 : index
    %c0_313 = arith.constant 0 : index
    %411 = vector.load %arg4[%c3_311, %c0_312, %c0_313] : memref<9x8x8xbf16, #tpu.memory_space<vmem>>, vector<1x8x8xbf16>
    %412 = vector.shape_cast %411 : vector<1x8x8xbf16> to vector<8x8xbf16>
    %413 = vector.extract_strided_slice %410 {offsets = [0, 0], sizes = [8, 32], strides = [1, 1]} : vector<8x34xbf16> to vector<8x32xbf16>
    %cst_314 = arith.constant dense<0.000000e+00> : vector<8x32xf32>
    %414 = tpu.matmul %412, %413, %cst_314 {dimension_numbers = #tpu.dot_dimension_numbers<[1], [0], [0], [1], [0, 0, 1, 1], [], []>} : vector<8x8xbf16>, vector<8x32xbf16>, vector<8x32xf32> -> vector<8x32xf32>
    %415 = arith.addf %408, %414 : vector<8x32xf32>
    %c4_315 = arith.constant 4 : index
    %c0_316 = arith.constant 0 : index
    %c0_317 = arith.constant 0 : index
    %416 = vector.load %arg4[%c4_315, %c0_316, %c0_317] : memref<9x8x8xbf16, #tpu.memory_space<vmem>>, vector<1x8x8xbf16>
    %417 = vector.shape_cast %416 : vector<1x8x8xbf16> to vector<8x8xbf16>
    %418 = vector.extract_strided_slice %410 {offsets = [0, 1], sizes = [8, 32], strides = [1, 1]} : vector<8x34xbf16> to vector<8x32xbf16>
    %cst_318 = arith.constant dense<0.000000e+00> : vector<8x32xf32>
    %419 = tpu.matmul %417, %418, %cst_318 {dimension_numbers = #tpu.dot_dimension_numbers<[1], [0], [0], [1], [0, 0, 1, 1], [], []>} : vector<8x8xbf16>, vector<8x32xbf16>, vector<8x32xf32> -> vector<8x32xf32>
    %420 = arith.addf %415, %419 : vector<8x32xf32>
    %c5_319 = arith.constant 5 : index
    %c0_320 = arith.constant 0 : index
    %c0_321 = arith.constant 0 : index
    %421 = vector.load %arg4[%c5_319, %c0_320, %c0_321] : memref<9x8x8xbf16, #tpu.memory_space<vmem>>, vector<1x8x8xbf16>
    %422 = vector.shape_cast %421 : vector<1x8x8xbf16> to vector<8x8xbf16>
    %423 = vector.extract_strided_slice %410 {offsets = [0, 2], sizes = [8, 32], strides = [1, 1]} : vector<8x34xbf16> to vector<8x32xbf16>
    %cst_322 = arith.constant dense<0.000000e+00> : vector<8x32xf32>
    %424 = tpu.matmul %422, %423, %cst_322 {dimension_numbers = #tpu.dot_dimension_numbers<[1], [0], [0], [1], [0, 0, 1, 1], [], []>} : vector<8x8xbf16>, vector<8x32xbf16>, vector<8x32xf32> -> vector<8x32xf32>
    %425 = arith.addf %420, %424 : vector<8x32xf32>
    %c3_323 = arith.constant 3 : index
    %c0_324 = arith.constant 0 : index
    %c0_325 = arith.constant 0 : index
    %426 = vector.load %arg10[%c3_323, %c0_324, %c0_325] : memref<10x8x34xbf16, #tpu.memory_space<vmem>>, vector<1x8x34xbf16>
    %427 = vector.shape_cast %426 : vector<1x8x34xbf16> to vector<8x34xbf16>
    %c6_326 = arith.constant 6 : index
    %c0_327 = arith.constant 0 : index
    %c0_328 = arith.constant 0 : index
    %428 = vector.load %arg4[%c6_326, %c0_327, %c0_328] : memref<9x8x8xbf16, #tpu.memory_space<vmem>>, vector<1x8x8xbf16>
    %429 = vector.shape_cast %428 : vector<1x8x8xbf16> to vector<8x8xbf16>
    %430 = vector.extract_strided_slice %427 {offsets = [0, 0], sizes = [8, 32], strides = [1, 1]} : vector<8x34xbf16> to vector<8x32xbf16>
    %cst_329 = arith.constant dense<0.000000e+00> : vector<8x32xf32>
    %431 = tpu.matmul %429, %430, %cst_329 {dimension_numbers = #tpu.dot_dimension_numbers<[1], [0], [0], [1], [0, 0, 1, 1], [], []>} : vector<8x8xbf16>, vector<8x32xbf16>, vector<8x32xf32> -> vector<8x32xf32>
    %432 = arith.addf %425, %431 : vector<8x32xf32>
    %c7_330 = arith.constant 7 : index
    %c0_331 = arith.constant 0 : index
    %c0_332 = arith.constant 0 : index
    %433 = vector.load %arg4[%c7_330, %c0_331, %c0_332] : memref<9x8x8xbf16, #tpu.memory_space<vmem>>, vector<1x8x8xbf16>
    %434 = vector.shape_cast %433 : vector<1x8x8xbf16> to vector<8x8xbf16>
    %435 = vector.extract_strided_slice %427 {offsets = [0, 1], sizes = [8, 32], strides = [1, 1]} : vector<8x34xbf16> to vector<8x32xbf16>
    %cst_333 = arith.constant dense<0.000000e+00> : vector<8x32xf32>
    %436 = tpu.matmul %434, %435, %cst_333 {dimension_numbers = #tpu.dot_dimension_numbers<[1], [0], [0], [1], [0, 0, 1, 1], [], []>} : vector<8x8xbf16>, vector<8x32xbf16>, vector<8x32xf32> -> vector<8x32xf32>
    %437 = arith.addf %432, %436 : vector<8x32xf32>
    %c8_334 = arith.constant 8 : index
    %c0_335 = arith.constant 0 : index
    %c0_336 = arith.constant 0 : index
    %438 = vector.load %arg4[%c8_334, %c0_335, %c0_336] : memref<9x8x8xbf16, #tpu.memory_space<vmem>>, vector<1x8x8xbf16>
    %439 = vector.shape_cast %438 : vector<1x8x8xbf16> to vector<8x8xbf16>
    %440 = vector.extract_strided_slice %427 {offsets = [0, 2], sizes = [8, 32], strides = [1, 1]} : vector<8x34xbf16> to vector<8x32xbf16>
    %cst_337 = arith.constant dense<0.000000e+00> : vector<8x32xf32>
    %441 = tpu.matmul %439, %440, %cst_337 {dimension_numbers = #tpu.dot_dimension_numbers<[1], [0], [0], [1], [0, 0, 1, 1], [], []>} : vector<8x8xbf16>, vector<8x32xbf16>, vector<8x32xf32> -> vector<8x32xf32>
    %442 = arith.addf %437, %441 : vector<8x32xf32>
    %443 = vector.broadcast %325 : vector<8x1xf32> to vector<8x32xf32>
    %444 = arith.addf %442, %443 : vector<8x32xf32>
    %cst_338 = arith.constant 0.000000e+00 : f32
    %445 = vector.broadcast %cst_338 : f32 to vector<8x32xf32>
    %446 = arith.maximumf %444, %445 : vector<8x32xf32>
    %447 = vector.broadcast %326 : vector<8x1xf32> to vector<8x32xf32>
    %448 = arith.mulf %446, %447 : vector<8x32xf32>
    %449 = vector.broadcast %327 : vector<8x1xf32> to vector<8x32xf32>
    %450 = arith.addf %448, %449 : vector<8x32xf32>
    %c0_339 = arith.constant 0 : index
    %c0_340 = arith.constant 0 : index
    %c1_341 = arith.constant 1 : index
    %c0_342 = arith.constant 0 : index
    %451 = vector.load %arg9[%c0_339, %c0_340, %c1_341, %c0_342] : memref<1x8x8x32xf32, #tpu.memory_space<vmem>>, vector<1x8x1x32xf32>
    %452 = vector.shape_cast %451 : vector<1x8x1x32xf32> to vector<8x32xf32>
    %453 = vector.shape_cast %450 : vector<8x32xf32> to vector<1x8x1x32xf32>
    tpu.vector_store %arg9[%c0_339, %c0_340, %c1_341, %c0_342], %453 {strides = array<i32>} : memref<1x8x8x32xf32, #tpu.memory_space<vmem>>, vector<1x8x1x32xf32>,
    %cst_343 = arith.constant 0.000000e+00 : f32
    %454 = vector.broadcast %cst_343 : f32 to vector<8x32xf32>
    %c2_344 = arith.constant 2 : index
    %c0_345 = arith.constant 0 : index
    %c0_346 = arith.constant 0 : index
    %455 = vector.load %arg10[%c2_344, %c0_345, %c0_346] : memref<10x8x34xbf16, #tpu.memory_space<vmem>>, vector<1x8x34xbf16>
    %456 = vector.shape_cast %455 : vector<1x8x34xbf16> to vector<8x34xbf16>
    %c0_347 = arith.constant 0 : index
    %c0_348 = arith.constant 0 : index
    %c0_349 = arith.constant 0 : index
    %457 = vector.load %arg4[%c0_347, %c0_348, %c0_349] : memref<9x8x8xbf16, #tpu.memory_space<vmem>>, vector<1x8x8xbf16>
    %458 = vector.shape_cast %457 : vector<1x8x8xbf16> to vector<8x8xbf16>
    %459 = vector.extract_strided_slice %456 {offsets = [0, 0], sizes = [8, 32], strides = [1, 1]} : vector<8x34xbf16> to vector<8x32xbf16>
    %cst_350 = arith.constant dense<0.000000e+00> : vector<8x32xf32>
    %460 = tpu.matmul %458, %459, %cst_350 {dimension_numbers = #tpu.dot_dimension_numbers<[1], [0], [0], [1], [0, 0, 1, 1], [], []>} : vector<8x8xbf16>, vector<8x32xbf16>, vector<8x32xf32> -> vector<8x32xf32>
    %461 = arith.addf %454, %460 : vector<8x32xf32>
    %c1_351 = arith.constant 1 : index
    %c0_352 = arith.constant 0 : index
    %c0_353 = arith.constant 0 : index
    %462 = vector.load %arg4[%c1_351, %c0_352, %c0_353] : memref<9x8x8xbf16, #tpu.memory_space<vmem>>, vector<1x8x8xbf16>
    %463 = vector.shape_cast %462 : vector<1x8x8xbf16> to vector<8x8xbf16>
    %464 = vector.extract_strided_slice %456 {offsets = [0, 1], sizes = [8, 32], strides = [1, 1]} : vector<8x34xbf16> to vector<8x32xbf16>
    %cst_354 = arith.constant dense<0.000000e+00> : vector<8x32xf32>
    %465 = tpu.matmul %463, %464, %cst_354 {dimension_numbers = #tpu.dot_dimension_numbers<[1], [0], [0], [1], [0, 0, 1, 1], [], []>} : vector<8x8xbf16>, vector<8x32xbf16>, vector<8x32xf32> -> vector<8x32xf32>
    %466 = arith.addf %461, %465 : vector<8x32xf32>
    %c2_355 = arith.constant 2 : index
    %c0_356 = arith.constant 0 : index
    %c0_357 = arith.constant 0 : index
    %467 = vector.load %arg4[%c2_355, %c0_356, %c0_357] : memref<9x8x8xbf16, #tpu.memory_space<vmem>>, vector<1x8x8xbf16>
    %468 = vector.shape_cast %467 : vector<1x8x8xbf16> to vector<8x8xbf16>
    %469 = vector.extract_strided_slice %456 {offsets = [0, 2], sizes = [8, 32], strides = [1, 1]} : vector<8x34xbf16> to vector<8x32xbf16>
    %cst_358 = arith.constant dense<0.000000e+00> : vector<8x32xf32>
    %470 = tpu.matmul %468, %469, %cst_358 {dimension_numbers = #tpu.dot_dimension_numbers<[1], [0], [0], [1], [0, 0, 1, 1], [], []>} : vector<8x8xbf16>, vector<8x32xbf16>, vector<8x32xf32> -> vector<8x32xf32>
    %471 = arith.addf %466, %470 : vector<8x32xf32>
    %c3_359 = arith.constant 3 : index
    %c0_360 = arith.constant 0 : index
    %c0_361 = arith.constant 0 : index
    %472 = vector.load %arg10[%c3_359, %c0_360, %c0_361] : memref<10x8x34xbf16, #tpu.memory_space<vmem>>, vector<1x8x34xbf16>
    %473 = vector.shape_cast %472 : vector<1x8x34xbf16> to vector<8x34xbf16>
    %c3_362 = arith.constant 3 : index
    %c0_363 = arith.constant 0 : index
    %c0_364 = arith.constant 0 : index
    %474 = vector.load %arg4[%c3_362, %c0_363, %c0_364] : memref<9x8x8xbf16, #tpu.memory_space<vmem>>, vector<1x8x8xbf16>
    %475 = vector.shape_cast %474 : vector<1x8x8xbf16> to vector<8x8xbf16>
    %476 = vector.extract_strided_slice %473 {offsets = [0, 0], sizes = [8, 32], strides = [1, 1]} : vector<8x34xbf16> to vector<8x32xbf16>
    %cst_365 = arith.constant dense<0.000000e+00> : vector<8x32xf32>
    %477 = tpu.matmul %475, %476, %cst_365 {dimension_numbers = #tpu.dot_dimension_numbers<[1], [0], [0], [1], [0, 0, 1, 1], [], []>} : vector<8x8xbf16>, vector<8x32xbf16>, vector<8x32xf32> -> vector<8x32xf32>
    %478 = arith.addf %471, %477 : vector<8x32xf32>
    %c4_366 = arith.constant 4 : index
    %c0_367 = arith.constant 0 : index
    %c0_368 = arith.constant 0 : index
    %479 = vector.load %arg4[%c4_366, %c0_367, %c0_368] : memref<9x8x8xbf16, #tpu.memory_space<vmem>>, vector<1x8x8xbf16>
    %480 = vector.shape_cast %479 : vector<1x8x8xbf16> to vector<8x8xbf16>
    %481 = vector.extract_strided_slice %473 {offsets = [0, 1], sizes = [8, 32], strides = [1, 1]} : vector<8x34xbf16> to vector<8x32xbf16>
    %cst_369 = arith.constant dense<0.000000e+00> : vector<8x32xf32>
    %482 = tpu.matmul %480, %481, %cst_369 {dimension_numbers = #tpu.dot_dimension_numbers<[1], [0], [0], [1], [0, 0, 1, 1], [], []>} : vector<8x8xbf16>, vector<8x32xbf16>, vector<8x32xf32> -> vector<8x32xf32>
    %483 = arith.addf %478, %482 : vector<8x32xf32>
    %c5_370 = arith.constant 5 : index
    %c0_371 = arith.constant 0 : index
    %c0_372 = arith.constant 0 : index
    %484 = vector.load %arg4[%c5_370, %c0_371, %c0_372] : memref<9x8x8xbf16, #tpu.memory_space<vmem>>, vector<1x8x8xbf16>
    %485 = vector.shape_cast %484 : vector<1x8x8xbf16> to vector<8x8xbf16>
    %486 = vector.extract_strided_slice %473 {offsets = [0, 2], sizes = [8, 32], strides = [1, 1]} : vector<8x34xbf16> to vector<8x32xbf16>
    %cst_373 = arith.constant dense<0.000000e+00> : vector<8x32xf32>
    %487 = tpu.matmul %485, %486, %cst_373 {dimension_numbers = #tpu.dot_dimension_numbers<[1], [0], [0], [1], [0, 0, 1, 1], [], []>} : vector<8x8xbf16>, vector<8x32xbf16>, vector<8x32xf32> -> vector<8x32xf32>
    %488 = arith.addf %483, %487 : vector<8x32xf32>
    %c4_374 = arith.constant 4 : index
    %c0_375 = arith.constant 0 : index
    %c0_376 = arith.constant 0 : index
    %489 = vector.load %arg10[%c4_374, %c0_375, %c0_376] : memref<10x8x34xbf16, #tpu.memory_space<vmem>>, vector<1x8x34xbf16>
    %490 = vector.shape_cast %489 : vector<1x8x34xbf16> to vector<8x34xbf16>
    %c6_377 = arith.constant 6 : index
    %c0_378 = arith.constant 0 : index
    %c0_379 = arith.constant 0 : index
    %491 = vector.load %arg4[%c6_377, %c0_378, %c0_379] : memref<9x8x8xbf16, #tpu.memory_space<vmem>>, vector<1x8x8xbf16>
    %492 = vector.shape_cast %491 : vector<1x8x8xbf16> to vector<8x8xbf16>
    %493 = vector.extract_strided_slice %490 {offsets = [0, 0], sizes = [8, 32], strides = [1, 1]} : vector<8x34xbf16> to vector<8x32xbf16>
    %cst_380 = arith.constant dense<0.000000e+00> : vector<8x32xf32>
    %494 = tpu.matmul %492, %493, %cst_380 {dimension_numbers = #tpu.dot_dimension_numbers<[1], [0], [0], [1], [0, 0, 1, 1], [], []>} : vector<8x8xbf16>, vector<8x32xbf16>, vector<8x32xf32> -> vector<8x32xf32>
    %495 = arith.addf %488, %494 : vector<8x32xf32>
    %c7_381 = arith.constant 7 : index
    %c0_382 = arith.constant 0 : index
    %c0_383 = arith.constant 0 : index
    %496 = vector.load %arg4[%c7_381, %c0_382, %c0_383] : memref<9x8x8xbf16, #tpu.memory_space<vmem>>, vector<1x8x8xbf16>
    %497 = vector.shape_cast %496 : vector<1x8x8xbf16> to vector<8x8xbf16>
    %498 = vector.extract_strided_slice %490 {offsets = [0, 1], sizes = [8, 32], strides = [1, 1]} : vector<8x34xbf16> to vector<8x32xbf16>
    %cst_384 = arith.constant dense<0.000000e+00> : vector<8x32xf32>
    %499 = tpu.matmul %497, %498, %cst_384 {dimension_numbers = #tpu.dot_dimension_numbers<[1], [0], [0], [1], [0, 0, 1, 1], [], []>} : vector<8x8xbf16>, vector<8x32xbf16>, vector<8x32xf32> -> vector<8x32xf32>
    %500 = arith.addf %495, %499 : vector<8x32xf32>
    %c8_385 = arith.constant 8 : index
    %c0_386 = arith.constant 0 : index
    %c0_387 = arith.constant 0 : index
    %501 = vector.load %arg4[%c8_385, %c0_386, %c0_387] : memref<9x8x8xbf16, #tpu.memory_space<vmem>>, vector<1x8x8xbf16>
    %502 = vector.shape_cast %501 : vector<1x8x8xbf16> to vector<8x8xbf16>
    %503 = vector.extract_strided_slice %490 {offsets = [0, 2], sizes = [8, 32], strides = [1, 1]} : vector<8x34xbf16> to vector<8x32xbf16>
    %cst_388 = arith.constant dense<0.000000e+00> : vector<8x32xf32>
    %504 = tpu.matmul %502, %503, %cst_388 {dimension_numbers = #tpu.dot_dimension_numbers<[1], [0], [0], [1], [0, 0, 1, 1], [], []>} : vector<8x8xbf16>, vector<8x32xbf16>, vector<8x32xf32> -> vector<8x32xf32>
    %505 = arith.addf %500, %504 : vector<8x32xf32>
    %506 = vector.broadcast %325 : vector<8x1xf32> to vector<8x32xf32>
    %507 = arith.addf %505, %506 : vector<8x32xf32>
    %cst_389 = arith.constant 0.000000e+00 : f32
    %508 = vector.broadcast %cst_389 : f32 to vector<8x32xf32>
    %509 = arith.maximumf %507, %508 : vector<8x32xf32>
    %510 = vector.broadcast %326 : vector<8x1xf32> to vector<8x32xf32>
    %511 = arith.mulf %509, %510 : vector<8x32xf32>
    %512 = vector.broadcast %327 : vector<8x1xf32> to vector<8x32xf32>
    %513 = arith.addf %511, %512 : vector<8x32xf32>
    %c0_390 = arith.constant 0 : index
    %c0_391 = arith.constant 0 : index
    %c2_392 = arith.constant 2 : index
    %c0_393 = arith.constant 0 : index
    %514 = vector.load %arg9[%c0_390, %c0_391, %c2_392, %c0_393] : memref<1x8x8x32xf32, #tpu.memory_space<vmem>>, vector<1x8x1x32xf32>
    %515 = vector.shape_cast %514 : vector<1x8x1x32xf32> to vector<8x32xf32>
    %516 = vector.shape_cast %513 : vector<8x32xf32> to vector<1x8x1x32xf32>
    tpu.vector_store %arg9[%c0_390, %c0_391, %c2_392, %c0_393], %516 {strides = array<i32>} : memref<1x8x8x32xf32, #tpu.memory_space<vmem>>, vector<1x8x1x32xf32>,
    %cst_394 = arith.constant 0.000000e+00 : f32
    %517 = vector.broadcast %cst_394 : f32 to vector<8x32xf32>
    %c3_395 = arith.constant 3 : index
    %c0_396 = arith.constant 0 : index
    %c0_397 = arith.constant 0 : index
    %518 = vector.load %arg10[%c3_395, %c0_396, %c0_397] : memref<10x8x34xbf16, #tpu.memory_space<vmem>>, vector<1x8x34xbf16>
    %519 = vector.shape_cast %518 : vector<1x8x34xbf16> to vector<8x34xbf16>
    %c0_398 = arith.constant 0 : index
    %c0_399 = arith.constant 0 : index
    %c0_400 = arith.constant 0 : index
    %520 = vector.load %arg4[%c0_398, %c0_399, %c0_400] : memref<9x8x8xbf16, #tpu.memory_space<vmem>>, vector<1x8x8xbf16>
    %521 = vector.shape_cast %520 : vector<1x8x8xbf16> to vector<8x8xbf16>
    %522 = vector.extract_strided_slice %519 {offsets = [0, 0], sizes = [8, 32], strides = [1, 1]} : vector<8x34xbf16> to vector<8x32xbf16>
    %cst_401 = arith.constant dense<0.000000e+00> : vector<8x32xf32>
    %523 = tpu.matmul %521, %522, %cst_401 {dimension_numbers = #tpu.dot_dimension_numbers<[1], [0], [0], [1], [0, 0, 1, 1], [], []>} : vector<8x8xbf16>, vector<8x32xbf16>, vector<8x32xf32> -> vector<8x32xf32>
    %524 = arith.addf %517, %523 : vector<8x32xf32>
    %c1_402 = arith.constant 1 : index
    %c0_403 = arith.constant 0 : index
    %c0_404 = arith.constant 0 : index
    %525 = vector.load %arg4[%c1_402, %c0_403, %c0_404] : memref<9x8x8xbf16, #tpu.memory_space<vmem>>, vector<1x8x8xbf16>
    %526 = vector.shape_cast %525 : vector<1x8x8xbf16> to vector<8x8xbf16>
    %527 = vector.extract_strided_slice %519 {offsets = [0, 1], sizes = [8, 32], strides = [1, 1]} : vector<8x34xbf16> to vector<8x32xbf16>
    %cst_405 = arith.constant dense<0.000000e+00> : vector<8x32xf32>
    %528 = tpu.matmul %526, %527, %cst_405 {dimension_numbers = #tpu.dot_dimension_numbers<[1], [0], [0], [1], [0, 0, 1, 1], [], []>} : vector<8x8xbf16>, vector<8x32xbf16>, vector<8x32xf32> -> vector<8x32xf32>
    %529 = arith.addf %524, %528 : vector<8x32xf32>
    %c2_406 = arith.constant 2 : index
    %c0_407 = arith.constant 0 : index
    %c0_408 = arith.constant 0 : index
    %530 = vector.load %arg4[%c2_406, %c0_407, %c0_408] : memref<9x8x8xbf16, #tpu.memory_space<vmem>>, vector<1x8x8xbf16>
    %531 = vector.shape_cast %530 : vector<1x8x8xbf16> to vector<8x8xbf16>
    %532 = vector.extract_strided_slice %519 {offsets = [0, 2], sizes = [8, 32], strides = [1, 1]} : vector<8x34xbf16> to vector<8x32xbf16>
    %cst_409 = arith.constant dense<0.000000e+00> : vector<8x32xf32>
    %533 = tpu.matmul %531, %532, %cst_409 {dimension_numbers = #tpu.dot_dimension_numbers<[1], [0], [0], [1], [0, 0, 1, 1], [], []>} : vector<8x8xbf16>, vector<8x32xbf16>, vector<8x32xf32> -> vector<8x32xf32>
    %534 = arith.addf %529, %533 : vector<8x32xf32>
    %c4_410 = arith.constant 4 : index
    %c0_411 = arith.constant 0 : index
    %c0_412 = arith.constant 0 : index
    %535 = vector.load %arg10[%c4_410, %c0_411, %c0_412] : memref<10x8x34xbf16, #tpu.memory_space<vmem>>, vector<1x8x34xbf16>
    %536 = vector.shape_cast %535 : vector<1x8x34xbf16> to vector<8x34xbf16>
    %c3_413 = arith.constant 3 : index
    %c0_414 = arith.constant 0 : index
    %c0_415 = arith.constant 0 : index
    %537 = vector.load %arg4[%c3_413, %c0_414, %c0_415] : memref<9x8x8xbf16, #tpu.memory_space<vmem>>, vector<1x8x8xbf16>
    %538 = vector.shape_cast %537 : vector<1x8x8xbf16> to vector<8x8xbf16>
    %539 = vector.extract_strided_slice %536 {offsets = [0, 0], sizes = [8, 32], strides = [1, 1]} : vector<8x34xbf16> to vector<8x32xbf16>
    %cst_416 = arith.constant dense<0.000000e+00> : vector<8x32xf32>
    %540 = tpu.matmul %538, %539, %cst_416 {dimension_numbers = #tpu.dot_dimension_numbers<[1], [0], [0], [1], [0, 0, 1, 1], [], []>} : vector<8x8xbf16>, vector<8x32xbf16>, vector<8x32xf32> -> vector<8x32xf32>
    %541 = arith.addf %534, %540 : vector<8x32xf32>
    %c4_417 = arith.constant 4 : index
    %c0_418 = arith.constant 0 : index
    %c0_419 = arith.constant 0 : index
    %542 = vector.load %arg4[%c4_417, %c0_418, %c0_419] : memref<9x8x8xbf16, #tpu.memory_space<vmem>>, vector<1x8x8xbf16>
    %543 = vector.shape_cast %542 : vector<1x8x8xbf16> to vector<8x8xbf16>
    %544 = vector.extract_strided_slice %536 {offsets = [0, 1], sizes = [8, 32], strides = [1, 1]} : vector<8x34xbf16> to vector<8x32xbf16>
    %cst_420 = arith.constant dense<0.000000e+00> : vector<8x32xf32>
    %545 = tpu.matmul %543, %544, %cst_420 {dimension_numbers = #tpu.dot_dimension_numbers<[1], [0], [0], [1], [0, 0, 1, 1], [], []>} : vector<8x8xbf16>, vector<8x32xbf16>, vector<8x32xf32> -> vector<8x32xf32>
    %546 = arith.addf %541, %545 : vector<8x32xf32>
    %c5_421 = arith.constant 5 : index
    %c0_422 = arith.constant 0 : index
    %c0_423 = arith.constant 0 : index
    %547 = vector.load %arg4[%c5_421, %c0_422, %c0_423] : memref<9x8x8xbf16, #tpu.memory_space<vmem>>, vector<1x8x8xbf16>
    %548 = vector.shape_cast %547 : vector<1x8x8xbf16> to vector<8x8xbf16>
    %549 = vector.extract_strided_slice %536 {offsets = [0, 2], sizes = [8, 32], strides = [1, 1]} : vector<8x34xbf16> to vector<8x32xbf16>
    %cst_424 = arith.constant dense<0.000000e+00> : vector<8x32xf32>
    %550 = tpu.matmul %548, %549, %cst_424 {dimension_numbers = #tpu.dot_dimension_numbers<[1], [0], [0], [1], [0, 0, 1, 1], [], []>} : vector<8x8xbf16>, vector<8x32xbf16>, vector<8x32xf32> -> vector<8x32xf32>
    %551 = arith.addf %546, %550 : vector<8x32xf32>
    %c5_425 = arith.constant 5 : index
    %c0_426 = arith.constant 0 : index
    %c0_427 = arith.constant 0 : index
    %552 = vector.load %arg10[%c5_425, %c0_426, %c0_427] : memref<10x8x34xbf16, #tpu.memory_space<vmem>>, vector<1x8x34xbf16>
    %553 = vector.shape_cast %552 : vector<1x8x34xbf16> to vector<8x34xbf16>
    %c6_428 = arith.constant 6 : index
    %c0_429 = arith.constant 0 : index
    %c0_430 = arith.constant 0 : index
    %554 = vector.load %arg4[%c6_428, %c0_429, %c0_430] : memref<9x8x8xbf16, #tpu.memory_space<vmem>>, vector<1x8x8xbf16>
    %555 = vector.shape_cast %554 : vector<1x8x8xbf16> to vector<8x8xbf16>
    %556 = vector.extract_strided_slice %553 {offsets = [0, 0], sizes = [8, 32], strides = [1, 1]} : vector<8x34xbf16> to vector<8x32xbf16>
    %cst_431 = arith.constant dense<0.000000e+00> : vector<8x32xf32>
    %557 = tpu.matmul %555, %556, %cst_431 {dimension_numbers = #tpu.dot_dimension_numbers<[1], [0], [0], [1], [0, 0, 1, 1], [], []>} : vector<8x8xbf16>, vector<8x32xbf16>, vector<8x32xf32> -> vector<8x32xf32>
    %558 = arith.addf %551, %557 : vector<8x32xf32>
    %c7_432 = arith.constant 7 : index
    %c0_433 = arith.constant 0 : index
    %c0_434 = arith.constant 0 : index
    %559 = vector.load %arg4[%c7_432, %c0_433, %c0_434] : memref<9x8x8xbf16, #tpu.memory_space<vmem>>, vector<1x8x8xbf16>
    %560 = vector.shape_cast %559 : vector<1x8x8xbf16> to vector<8x8xbf16>
    %561 = vector.extract_strided_slice %553 {offsets = [0, 1], sizes = [8, 32], strides = [1, 1]} : vector<8x34xbf16> to vector<8x32xbf16>
    %cst_435 = arith.constant dense<0.000000e+00> : vector<8x32xf32>
    %562 = tpu.matmul %560, %561, %cst_435 {dimension_numbers = #tpu.dot_dimension_numbers<[1], [0], [0], [1], [0, 0, 1, 1], [], []>} : vector<8x8xbf16>, vector<8x32xbf16>, vector<8x32xf32> -> vector<8x32xf32>
    %563 = arith.addf %558, %562 : vector<8x32xf32>
    %c8_436 = arith.constant 8 : index
    %c0_437 = arith.constant 0 : index
    %c0_438 = arith.constant 0 : index
    %564 = vector.load %arg4[%c8_436, %c0_437, %c0_438] : memref<9x8x8xbf16, #tpu.memory_space<vmem>>, vector<1x8x8xbf16>
    %565 = vector.shape_cast %564 : vector<1x8x8xbf16> to vector<8x8xbf16>
    %566 = vector.extract_strided_slice %553 {offsets = [0, 2], sizes = [8, 32], strides = [1, 1]} : vector<8x34xbf16> to vector<8x32xbf16>
    %cst_439 = arith.constant dense<0.000000e+00> : vector<8x32xf32>
    %567 = tpu.matmul %565, %566, %cst_439 {dimension_numbers = #tpu.dot_dimension_numbers<[1], [0], [0], [1], [0, 0, 1, 1], [], []>} : vector<8x8xbf16>, vector<8x32xbf16>, vector<8x32xf32> -> vector<8x32xf32>
    %568 = arith.addf %563, %567 : vector<8x32xf32>
    %569 = vector.broadcast %325 : vector<8x1xf32> to vector<8x32xf32>
    %570 = arith.addf %568, %569 : vector<8x32xf32>
    %cst_440 = arith.constant 0.000000e+00 : f32
    %571 = vector.broadcast %cst_440 : f32 to vector<8x32xf32>
    %572 = arith.maximumf %570, %571 : vector<8x32xf32>
    %573 = vector.broadcast %326 : vector<8x1xf32> to vector<8x32xf32>
    %574 = arith.mulf %572, %573 : vector<8x32xf32>
    %575 = vector.broadcast %327 : vector<8x1xf32> to vector<8x32xf32>
    %576 = arith.addf %574, %575 : vector<8x32xf32>
    %c0_441 = arith.constant 0 : index
    %c0_442 = arith.constant 0 : index
    %c3_443 = arith.constant 3 : index
    %c0_444 = arith.constant 0 : index
    %577 = vector.load %arg9[%c0_441, %c0_442, %c3_443, %c0_444] : memref<1x8x8x32xf32, #tpu.memory_space<vmem>>, vector<1x8x1x32xf32>
    %578 = vector.shape_cast %577 : vector<1x8x1x32xf32> to vector<8x32xf32>
    %579 = vector.shape_cast %576 : vector<8x32xf32> to vector<1x8x1x32xf32>
    tpu.vector_store %arg9[%c0_441, %c0_442, %c3_443, %c0_444], %579 {strides = array<i32>} : memref<1x8x8x32xf32, #tpu.memory_space<vmem>>, vector<1x8x1x32xf32>,
    %cst_445 = arith.constant 0.000000e+00 : f32
    %580 = vector.broadcast %cst_445 : f32 to vector<8x32xf32>
    %c4_446 = arith.constant 4 : index
    %c0_447 = arith.constant 0 : index
    %c0_448 = arith.constant 0 : index
    %581 = vector.load %arg10[%c4_446, %c0_447, %c0_448] : memref<10x8x34xbf16, #tpu.memory_space<vmem>>, vector<1x8x34xbf16>
    %582 = vector.shape_cast %581 : vector<1x8x34xbf16> to vector<8x34xbf16>
    %c0_449 = arith.constant 0 : index
    %c0_450 = arith.constant 0 : index
    %c0_451 = arith.constant 0 : index
    %583 = vector.load %arg4[%c0_449, %c0_450, %c0_451] : memref<9x8x8xbf16, #tpu.memory_space<vmem>>, vector<1x8x8xbf16>
    %584 = vector.shape_cast %583 : vector<1x8x8xbf16> to vector<8x8xbf16>
    %585 = vector.extract_strided_slice %582 {offsets = [0, 0], sizes = [8, 32], strides = [1, 1]} : vector<8x34xbf16> to vector<8x32xbf16>
    %cst_452 = arith.constant dense<0.000000e+00> : vector<8x32xf32>
    %586 = tpu.matmul %584, %585, %cst_452 {dimension_numbers = #tpu.dot_dimension_numbers<[1], [0], [0], [1], [0, 0, 1, 1], [], []>} : vector<8x8xbf16>, vector<8x32xbf16>, vector<8x32xf32> -> vector<8x32xf32>
    %587 = arith.addf %580, %586 : vector<8x32xf32>
    %c1_453 = arith.constant 1 : index
    %c0_454 = arith.constant 0 : index
    %c0_455 = arith.constant 0 : index
    %588 = vector.load %arg4[%c1_453, %c0_454, %c0_455] : memref<9x8x8xbf16, #tpu.memory_space<vmem>>, vector<1x8x8xbf16>
    %589 = vector.shape_cast %588 : vector<1x8x8xbf16> to vector<8x8xbf16>
    %590 = vector.extract_strided_slice %582 {offsets = [0, 1], sizes = [8, 32], strides = [1, 1]} : vector<8x34xbf16> to vector<8x32xbf16>
    %cst_456 = arith.constant dense<0.000000e+00> : vector<8x32xf32>
    %591 = tpu.matmul %589, %590, %cst_456 {dimension_numbers = #tpu.dot_dimension_numbers<[1], [0], [0], [1], [0, 0, 1, 1], [], []>} : vector<8x8xbf16>, vector<8x32xbf16>, vector<8x32xf32> -> vector<8x32xf32>
    %592 = arith.addf %587, %591 : vector<8x32xf32>
    %c2_457 = arith.constant 2 : index
    %c0_458 = arith.constant 0 : index
    %c0_459 = arith.constant 0 : index
    %593 = vector.load %arg4[%c2_457, %c0_458, %c0_459] : memref<9x8x8xbf16, #tpu.memory_space<vmem>>, vector<1x8x8xbf16>
    %594 = vector.shape_cast %593 : vector<1x8x8xbf16> to vector<8x8xbf16>
    %595 = vector.extract_strided_slice %582 {offsets = [0, 2], sizes = [8, 32], strides = [1, 1]} : vector<8x34xbf16> to vector<8x32xbf16>
    %cst_460 = arith.constant dense<0.000000e+00> : vector<8x32xf32>
    %596 = tpu.matmul %594, %595, %cst_460 {dimension_numbers = #tpu.dot_dimension_numbers<[1], [0], [0], [1], [0, 0, 1, 1], [], []>} : vector<8x8xbf16>, vector<8x32xbf16>, vector<8x32xf32> -> vector<8x32xf32>
    %597 = arith.addf %592, %596 : vector<8x32xf32>
    %c5_461 = arith.constant 5 : index
    %c0_462 = arith.constant 0 : index
    %c0_463 = arith.constant 0 : index
    %598 = vector.load %arg10[%c5_461, %c0_462, %c0_463] : memref<10x8x34xbf16, #tpu.memory_space<vmem>>, vector<1x8x34xbf16>
    %599 = vector.shape_cast %598 : vector<1x8x34xbf16> to vector<8x34xbf16>
    %c3_464 = arith.constant 3 : index
    %c0_465 = arith.constant 0 : index
    %c0_466 = arith.constant 0 : index
    %600 = vector.load %arg4[%c3_464, %c0_465, %c0_466] : memref<9x8x8xbf16, #tpu.memory_space<vmem>>, vector<1x8x8xbf16>
    %601 = vector.shape_cast %600 : vector<1x8x8xbf16> to vector<8x8xbf16>
    %602 = vector.extract_strided_slice %599 {offsets = [0, 0], sizes = [8, 32], strides = [1, 1]} : vector<8x34xbf16> to vector<8x32xbf16>
    %cst_467 = arith.constant dense<0.000000e+00> : vector<8x32xf32>
    %603 = tpu.matmul %601, %602, %cst_467 {dimension_numbers = #tpu.dot_dimension_numbers<[1], [0], [0], [1], [0, 0, 1, 1], [], []>} : vector<8x8xbf16>, vector<8x32xbf16>, vector<8x32xf32> -> vector<8x32xf32>
    %604 = arith.addf %597, %603 : vector<8x32xf32>
    %c4_468 = arith.constant 4 : index
    %c0_469 = arith.constant 0 : index
    %c0_470 = arith.constant 0 : index
    %605 = vector.load %arg4[%c4_468, %c0_469, %c0_470] : memref<9x8x8xbf16, #tpu.memory_space<vmem>>, vector<1x8x8xbf16>
    %606 = vector.shape_cast %605 : vector<1x8x8xbf16> to vector<8x8xbf16>
    %607 = vector.extract_strided_slice %599 {offsets = [0, 1], sizes = [8, 32], strides = [1, 1]} : vector<8x34xbf16> to vector<8x32xbf16>
    %cst_471 = arith.constant dense<0.000000e+00> : vector<8x32xf32>
    %608 = tpu.matmul %606, %607, %cst_471 {dimension_numbers = #tpu.dot_dimension_numbers<[1], [0], [0], [1], [0, 0, 1, 1], [], []>} : vector<8x8xbf16>, vector<8x32xbf16>, vector<8x32xf32> -> vector<8x32xf32>
    %609 = arith.addf %604, %608 : vector<8x32xf32>
    %c5_472 = arith.constant 5 : index
    %c0_473 = arith.constant 0 : index
    %c0_474 = arith.constant 0 : index
    %610 = vector.load %arg4[%c5_472, %c0_473, %c0_474] : memref<9x8x8xbf16, #tpu.memory_space<vmem>>, vector<1x8x8xbf16>
    %611 = vector.shape_cast %610 : vector<1x8x8xbf16> to vector<8x8xbf16>
    %612 = vector.extract_strided_slice %599 {offsets = [0, 2], sizes = [8, 32], strides = [1, 1]} : vector<8x34xbf16> to vector<8x32xbf16>
    %cst_475 = arith.constant dense<0.000000e+00> : vector<8x32xf32>
    %613 = tpu.matmul %611, %612, %cst_475 {dimension_numbers = #tpu.dot_dimension_numbers<[1], [0], [0], [1], [0, 0, 1, 1], [], []>} : vector<8x8xbf16>, vector<8x32xbf16>, vector<8x32xf32> -> vector<8x32xf32>
    %614 = arith.addf %609, %613 : vector<8x32xf32>
    %c6_476 = arith.constant 6 : index
    %c0_477 = arith.constant 0 : index
    %c0_478 = arith.constant 0 : index
    %615 = vector.load %arg10[%c6_476, %c0_477, %c0_478] : memref<10x8x34xbf16, #tpu.memory_space<vmem>>, vector<1x8x34xbf16>
    %616 = vector.shape_cast %615 : vector<1x8x34xbf16> to vector<8x34xbf16>
    %c6_479 = arith.constant 6 : index
    %c0_480 = arith.constant 0 : index
    %c0_481 = arith.constant 0 : index
    %617 = vector.load %arg4[%c6_479, %c0_480, %c0_481] : memref<9x8x8xbf16, #tpu.memory_space<vmem>>, vector<1x8x8xbf16>
    %618 = vector.shape_cast %617 : vector<1x8x8xbf16> to vector<8x8xbf16>
    %619 = vector.extract_strided_slice %616 {offsets = [0, 0], sizes = [8, 32], strides = [1, 1]} : vector<8x34xbf16> to vector<8x32xbf16>
    %cst_482 = arith.constant dense<0.000000e+00> : vector<8x32xf32>
    %620 = tpu.matmul %618, %619, %cst_482 {dimension_numbers = #tpu.dot_dimension_numbers<[1], [0], [0], [1], [0, 0, 1, 1], [], []>} : vector<8x8xbf16>, vector<8x32xbf16>, vector<8x32xf32> -> vector<8x32xf32>
    %621 = arith.addf %614, %620 : vector<8x32xf32>
    %c7_483 = arith.constant 7 : index
    %c0_484 = arith.constant 0 : index
    %c0_485 = arith.constant 0 : index
    %622 = vector.load %arg4[%c7_483, %c0_484, %c0_485] : memref<9x8x8xbf16, #tpu.memory_space<vmem>>, vector<1x8x8xbf16>
    %623 = vector.shape_cast %622 : vector<1x8x8xbf16> to vector<8x8xbf16>
    %624 = vector.extract_strided_slice %616 {offsets = [0, 1], sizes = [8, 32], strides = [1, 1]} : vector<8x34xbf16> to vector<8x32xbf16>
    %cst_486 = arith.constant dense<0.000000e+00> : vector<8x32xf32>
    %625 = tpu.matmul %623, %624, %cst_486 {dimension_numbers = #tpu.dot_dimension_numbers<[1], [0], [0], [1], [0, 0, 1, 1], [], []>} : vector<8x8xbf16>, vector<8x32xbf16>, vector<8x32xf32> -> vector<8x32xf32>
    %626 = arith.addf %621, %625 : vector<8x32xf32>
    %c8_487 = arith.constant 8 : index
    %c0_488 = arith.constant 0 : index
    %c0_489 = arith.constant 0 : index
    %627 = vector.load %arg4[%c8_487, %c0_488, %c0_489] : memref<9x8x8xbf16, #tpu.memory_space<vmem>>, vector<1x8x8xbf16>
    %628 = vector.shape_cast %627 : vector<1x8x8xbf16> to vector<8x8xbf16>
    %629 = vector.extract_strided_slice %616 {offsets = [0, 2], sizes = [8, 32], strides = [1, 1]} : vector<8x34xbf16> to vector<8x32xbf16>
    %cst_490 = arith.constant dense<0.000000e+00> : vector<8x32xf32>
    %630 = tpu.matmul %628, %629, %cst_490 {dimension_numbers = #tpu.dot_dimension_numbers<[1], [0], [0], [1], [0, 0, 1, 1], [], []>} : vector<8x8xbf16>, vector<8x32xbf16>, vector<8x32xf32> -> vector<8x32xf32>
    %631 = arith.addf %626, %630 : vector<8x32xf32>
    %632 = vector.broadcast %325 : vector<8x1xf32> to vector<8x32xf32>
    %633 = arith.addf %631, %632 : vector<8x32xf32>
    %cst_491 = arith.constant 0.000000e+00 : f32
    %634 = vector.broadcast %cst_491 : f32 to vector<8x32xf32>
    %635 = arith.maximumf %633, %634 : vector<8x32xf32>
    %636 = vector.broadcast %326 : vector<8x1xf32> to vector<8x32xf32>
    %637 = arith.mulf %635, %636 : vector<8x32xf32>
    %638 = vector.broadcast %327 : vector<8x1xf32> to vector<8x32xf32>
    %639 = arith.addf %637, %638 : vector<8x32xf32>
    %c0_492 = arith.constant 0 : index
    %c0_493 = arith.constant 0 : index
    %c4_494 = arith.constant 4 : index
    %c0_495 = arith.constant 0 : index
    %640 = vector.load %arg9[%c0_492, %c0_493, %c4_494, %c0_495] : memref<1x8x8x32xf32, #tpu.memory_space<vmem>>, vector<1x8x1x32xf32>
    %641 = vector.shape_cast %640 : vector<1x8x1x32xf32> to vector<8x32xf32>
    %642 = vector.shape_cast %639 : vector<8x32xf32> to vector<1x8x1x32xf32>
    tpu.vector_store %arg9[%c0_492, %c0_493, %c4_494, %c0_495], %642 {strides = array<i32>} : memref<1x8x8x32xf32, #tpu.memory_space<vmem>>, vector<1x8x1x32xf32>,
    %cst_496 = arith.constant 0.000000e+00 : f32
    %643 = vector.broadcast %cst_496 : f32 to vector<8x32xf32>
    %c5_497 = arith.constant 5 : index
    %c0_498 = arith.constant 0 : index
    %c0_499 = arith.constant 0 : index
    %644 = vector.load %arg10[%c5_497, %c0_498, %c0_499] : memref<10x8x34xbf16, #tpu.memory_space<vmem>>, vector<1x8x34xbf16>
    %645 = vector.shape_cast %644 : vector<1x8x34xbf16> to vector<8x34xbf16>
    %c0_500 = arith.constant 0 : index
    %c0_501 = arith.constant 0 : index
    %c0_502 = arith.constant 0 : index
    %646 = vector.load %arg4[%c0_500, %c0_501, %c0_502] : memref<9x8x8xbf16, #tpu.memory_space<vmem>>, vector<1x8x8xbf16>
    %647 = vector.shape_cast %646 : vector<1x8x8xbf16> to vector<8x8xbf16>
    %648 = vector.extract_strided_slice %645 {offsets = [0, 0], sizes = [8, 32], strides = [1, 1]} : vector<8x34xbf16> to vector<8x32xbf16>
    %cst_503 = arith.constant dense<0.000000e+00> : vector<8x32xf32>
    %649 = tpu.matmul %647, %648, %cst_503 {dimension_numbers = #tpu.dot_dimension_numbers<[1], [0], [0], [1], [0, 0, 1, 1], [], []>} : vector<8x8xbf16>, vector<8x32xbf16>, vector<8x32xf32> -> vector<8x32xf32>
    %650 = arith.addf %643, %649 : vector<8x32xf32>
    %c1_504 = arith.constant 1 : index
    %c0_505 = arith.constant 0 : index
    %c0_506 = arith.constant 0 : index
    %651 = vector.load %arg4[%c1_504, %c0_505, %c0_506] : memref<9x8x8xbf16, #tpu.memory_space<vmem>>, vector<1x8x8xbf16>
    %652 = vector.shape_cast %651 : vector<1x8x8xbf16> to vector<8x8xbf16>
    %653 = vector.extract_strided_slice %645 {offsets = [0, 1], sizes = [8, 32], strides = [1, 1]} : vector<8x34xbf16> to vector<8x32xbf16>
    %cst_507 = arith.constant dense<0.000000e+00> : vector<8x32xf32>
    %654 = tpu.matmul %652, %653, %cst_507 {dimension_numbers = #tpu.dot_dimension_numbers<[1], [0], [0], [1], [0, 0, 1, 1], [], []>} : vector<8x8xbf16>, vector<8x32xbf16>, vector<8x32xf32> -> vector<8x32xf32>
    %655 = arith.addf %650, %654 : vector<8x32xf32>
    %c2_508 = arith.constant 2 : index
    %c0_509 = arith.constant 0 : index
    %c0_510 = arith.constant 0 : index
    %656 = vector.load %arg4[%c2_508, %c0_509, %c0_510] : memref<9x8x8xbf16, #tpu.memory_space<vmem>>, vector<1x8x8xbf16>
    %657 = vector.shape_cast %656 : vector<1x8x8xbf16> to vector<8x8xbf16>
    %658 = vector.extract_strided_slice %645 {offsets = [0, 2], sizes = [8, 32], strides = [1, 1]} : vector<8x34xbf16> to vector<8x32xbf16>
    %cst_511 = arith.constant dense<0.000000e+00> : vector<8x32xf32>
    %659 = tpu.matmul %657, %658, %cst_511 {dimension_numbers = #tpu.dot_dimension_numbers<[1], [0], [0], [1], [0, 0, 1, 1], [], []>} : vector<8x8xbf16>, vector<8x32xbf16>, vector<8x32xf32> -> vector<8x32xf32>
    %660 = arith.addf %655, %659 : vector<8x32xf32>
    %c6_512 = arith.constant 6 : index
    %c0_513 = arith.constant 0 : index
    %c0_514 = arith.constant 0 : index
    %661 = vector.load %arg10[%c6_512, %c0_513, %c0_514] : memref<10x8x34xbf16, #tpu.memory_space<vmem>>, vector<1x8x34xbf16>
    %662 = vector.shape_cast %661 : vector<1x8x34xbf16> to vector<8x34xbf16>
    %c3_515 = arith.constant 3 : index
    %c0_516 = arith.constant 0 : index
    %c0_517 = arith.constant 0 : index
    %663 = vector.load %arg4[%c3_515, %c0_516, %c0_517] : memref<9x8x8xbf16, #tpu.memory_space<vmem>>, vector<1x8x8xbf16>
    %664 = vector.shape_cast %663 : vector<1x8x8xbf16> to vector<8x8xbf16>
    %665 = vector.extract_strided_slice %662 {offsets = [0, 0], sizes = [8, 32], strides = [1, 1]} : vector<8x34xbf16> to vector<8x32xbf16>
    %cst_518 = arith.constant dense<0.000000e+00> : vector<8x32xf32>
    %666 = tpu.matmul %664, %665, %cst_518 {dimension_numbers = #tpu.dot_dimension_numbers<[1], [0], [0], [1], [0, 0, 1, 1], [], []>} : vector<8x8xbf16>, vector<8x32xbf16>, vector<8x32xf32> -> vector<8x32xf32>
    %667 = arith.addf %660, %666 : vector<8x32xf32>
    %c4_519 = arith.constant 4 : index
    %c0_520 = arith.constant 0 : index
    %c0_521 = arith.constant 0 : index
    %668 = vector.load %arg4[%c4_519, %c0_520, %c0_521] : memref<9x8x8xbf16, #tpu.memory_space<vmem>>, vector<1x8x8xbf16>
    %669 = vector.shape_cast %668 : vector<1x8x8xbf16> to vector<8x8xbf16>
    %670 = vector.extract_strided_slice %662 {offsets = [0, 1], sizes = [8, 32], strides = [1, 1]} : vector<8x34xbf16> to vector<8x32xbf16>
    %cst_522 = arith.constant dense<0.000000e+00> : vector<8x32xf32>
    %671 = tpu.matmul %669, %670, %cst_522 {dimension_numbers = #tpu.dot_dimension_numbers<[1], [0], [0], [1], [0, 0, 1, 1], [], []>} : vector<8x8xbf16>, vector<8x32xbf16>, vector<8x32xf32> -> vector<8x32xf32>
    %672 = arith.addf %667, %671 : vector<8x32xf32>
    %c5_523 = arith.constant 5 : index
    %c0_524 = arith.constant 0 : index
    %c0_525 = arith.constant 0 : index
    %673 = vector.load %arg4[%c5_523, %c0_524, %c0_525] : memref<9x8x8xbf16, #tpu.memory_space<vmem>>, vector<1x8x8xbf16>
    %674 = vector.shape_cast %673 : vector<1x8x8xbf16> to vector<8x8xbf16>
    %675 = vector.extract_strided_slice %662 {offsets = [0, 2], sizes = [8, 32], strides = [1, 1]} : vector<8x34xbf16> to vector<8x32xbf16>
    %cst_526 = arith.constant dense<0.000000e+00> : vector<8x32xf32>
    %676 = tpu.matmul %674, %675, %cst_526 {dimension_numbers = #tpu.dot_dimension_numbers<[1], [0], [0], [1], [0, 0, 1, 1], [], []>} : vector<8x8xbf16>, vector<8x32xbf16>, vector<8x32xf32> -> vector<8x32xf32>
    %677 = arith.addf %672, %676 : vector<8x32xf32>
    %c7_527 = arith.constant 7 : index
    %c0_528 = arith.constant 0 : index
    %c0_529 = arith.constant 0 : index
    %678 = vector.load %arg10[%c7_527, %c0_528, %c0_529] : memref<10x8x34xbf16, #tpu.memory_space<vmem>>, vector<1x8x34xbf16>
    %679 = vector.shape_cast %678 : vector<1x8x34xbf16> to vector<8x34xbf16>
    %c6_530 = arith.constant 6 : index
    %c0_531 = arith.constant 0 : index
    %c0_532 = arith.constant 0 : index
    %680 = vector.load %arg4[%c6_530, %c0_531, %c0_532] : memref<9x8x8xbf16, #tpu.memory_space<vmem>>, vector<1x8x8xbf16>
    %681 = vector.shape_cast %680 : vector<1x8x8xbf16> to vector<8x8xbf16>
    %682 = vector.extract_strided_slice %679 {offsets = [0, 0], sizes = [8, 32], strides = [1, 1]} : vector<8x34xbf16> to vector<8x32xbf16>
    %cst_533 = arith.constant dense<0.000000e+00> : vector<8x32xf32>
    %683 = tpu.matmul %681, %682, %cst_533 {dimension_numbers = #tpu.dot_dimension_numbers<[1], [0], [0], [1], [0, 0, 1, 1], [], []>} : vector<8x8xbf16>, vector<8x32xbf16>, vector<8x32xf32> -> vector<8x32xf32>
    %684 = arith.addf %677, %683 : vector<8x32xf32>
    %c7_534 = arith.constant 7 : index
    %c0_535 = arith.constant 0 : index
    %c0_536 = arith.constant 0 : index
    %685 = vector.load %arg4[%c7_534, %c0_535, %c0_536] : memref<9x8x8xbf16, #tpu.memory_space<vmem>>, vector<1x8x8xbf16>
    %686 = vector.shape_cast %685 : vector<1x8x8xbf16> to vector<8x8xbf16>
    %687 = vector.extract_strided_slice %679 {offsets = [0, 1], sizes = [8, 32], strides = [1, 1]} : vector<8x34xbf16> to vector<8x32xbf16>
    %cst_537 = arith.constant dense<0.000000e+00> : vector<8x32xf32>
    %688 = tpu.matmul %686, %687, %cst_537 {dimension_numbers = #tpu.dot_dimension_numbers<[1], [0], [0], [1], [0, 0, 1, 1], [], []>} : vector<8x8xbf16>, vector<8x32xbf16>, vector<8x32xf32> -> vector<8x32xf32>
    %689 = arith.addf %684, %688 : vector<8x32xf32>
    %c8_538 = arith.constant 8 : index
    %c0_539 = arith.constant 0 : index
    %c0_540 = arith.constant 0 : index
    %690 = vector.load %arg4[%c8_538, %c0_539, %c0_540] : memref<9x8x8xbf16, #tpu.memory_space<vmem>>, vector<1x8x8xbf16>
    %691 = vector.shape_cast %690 : vector<1x8x8xbf16> to vector<8x8xbf16>
    %692 = vector.extract_strided_slice %679 {offsets = [0, 2], sizes = [8, 32], strides = [1, 1]} : vector<8x34xbf16> to vector<8x32xbf16>
    %cst_541 = arith.constant dense<0.000000e+00> : vector<8x32xf32>
    %693 = tpu.matmul %691, %692, %cst_541 {dimension_numbers = #tpu.dot_dimension_numbers<[1], [0], [0], [1], [0, 0, 1, 1], [], []>} : vector<8x8xbf16>, vector<8x32xbf16>, vector<8x32xf32> -> vector<8x32xf32>
    %694 = arith.addf %689, %693 : vector<8x32xf32>
    %695 = vector.broadcast %325 : vector<8x1xf32> to vector<8x32xf32>
    %696 = arith.addf %694, %695 : vector<8x32xf32>
    %cst_542 = arith.constant 0.000000e+00 : f32
    %697 = vector.broadcast %cst_542 : f32 to vector<8x32xf32>
    %698 = arith.maximumf %696, %697 : vector<8x32xf32>
    %699 = vector.broadcast %326 : vector<8x1xf32> to vector<8x32xf32>
    %700 = arith.mulf %698, %699 : vector<8x32xf32>
    %701 = vector.broadcast %327 : vector<8x1xf32> to vector<8x32xf32>
    %702 = arith.addf %700, %701 : vector<8x32xf32>
    %c0_543 = arith.constant 0 : index
    %c0_544 = arith.constant 0 : index
    %c5_545 = arith.constant 5 : index
    %c0_546 = arith.constant 0 : index
    %703 = vector.load %arg9[%c0_543, %c0_544, %c5_545, %c0_546] : memref<1x8x8x32xf32, #tpu.memory_space<vmem>>, vector<1x8x1x32xf32>
    %704 = vector.shape_cast %703 : vector<1x8x1x32xf32> to vector<8x32xf32>
    %705 = vector.shape_cast %702 : vector<8x32xf32> to vector<1x8x1x32xf32>
    tpu.vector_store %arg9[%c0_543, %c0_544, %c5_545, %c0_546], %705 {strides = array<i32>} : memref<1x8x8x32xf32, #tpu.memory_space<vmem>>, vector<1x8x1x32xf32>,
    %cst_547 = arith.constant 0.000000e+00 : f32
    %706 = vector.broadcast %cst_547 : f32 to vector<8x32xf32>
    %c6_548 = arith.constant 6 : index
    %c0_549 = arith.constant 0 : index
    %c0_550 = arith.constant 0 : index
    %707 = vector.load %arg10[%c6_548, %c0_549, %c0_550] : memref<10x8x34xbf16, #tpu.memory_space<vmem>>, vector<1x8x34xbf16>
    %708 = vector.shape_cast %707 : vector<1x8x34xbf16> to vector<8x34xbf16>
    %c0_551 = arith.constant 0 : index
    %c0_552 = arith.constant 0 : index
    %c0_553 = arith.constant 0 : index
    %709 = vector.load %arg4[%c0_551, %c0_552, %c0_553] : memref<9x8x8xbf16, #tpu.memory_space<vmem>>, vector<1x8x8xbf16>
    %710 = vector.shape_cast %709 : vector<1x8x8xbf16> to vector<8x8xbf16>
    %711 = vector.extract_strided_slice %708 {offsets = [0, 0], sizes = [8, 32], strides = [1, 1]} : vector<8x34xbf16> to vector<8x32xbf16>
    %cst_554 = arith.constant dense<0.000000e+00> : vector<8x32xf32>
    %712 = tpu.matmul %710, %711, %cst_554 {dimension_numbers = #tpu.dot_dimension_numbers<[1], [0], [0], [1], [0, 0, 1, 1], [], []>} : vector<8x8xbf16>, vector<8x32xbf16>, vector<8x32xf32> -> vector<8x32xf32>
    %713 = arith.addf %706, %712 : vector<8x32xf32>
    %c1_555 = arith.constant 1 : index
    %c0_556 = arith.constant 0 : index
    %c0_557 = arith.constant 0 : index
    %714 = vector.load %arg4[%c1_555, %c0_556, %c0_557] : memref<9x8x8xbf16, #tpu.memory_space<vmem>>, vector<1x8x8xbf16>
    %715 = vector.shape_cast %714 : vector<1x8x8xbf16> to vector<8x8xbf16>
    %716 = vector.extract_strided_slice %708 {offsets = [0, 1], sizes = [8, 32], strides = [1, 1]} : vector<8x34xbf16> to vector<8x32xbf16>
    %cst_558 = arith.constant dense<0.000000e+00> : vector<8x32xf32>
    %717 = tpu.matmul %715, %716, %cst_558 {dimension_numbers = #tpu.dot_dimension_numbers<[1], [0], [0], [1], [0, 0, 1, 1], [], []>} : vector<8x8xbf16>, vector<8x32xbf16>, vector<8x32xf32> -> vector<8x32xf32>
    %718 = arith.addf %713, %717 : vector<8x32xf32>
    %c2_559 = arith.constant 2 : index
    %c0_560 = arith.constant 0 : index
    %c0_561 = arith.constant 0 : index
    %719 = vector.load %arg4[%c2_559, %c0_560, %c0_561] : memref<9x8x8xbf16, #tpu.memory_space<vmem>>, vector<1x8x8xbf16>
    %720 = vector.shape_cast %719 : vector<1x8x8xbf16> to vector<8x8xbf16>
    %721 = vector.extract_strided_slice %708 {offsets = [0, 2], sizes = [8, 32], strides = [1, 1]} : vector<8x34xbf16> to vector<8x32xbf16>
    %cst_562 = arith.constant dense<0.000000e+00> : vector<8x32xf32>
    %722 = tpu.matmul %720, %721, %cst_562 {dimension_numbers = #tpu.dot_dimension_numbers<[1], [0], [0], [1], [0, 0, 1, 1], [], []>} : vector<8x8xbf16>, vector<8x32xbf16>, vector<8x32xf32> -> vector<8x32xf32>
    %723 = arith.addf %718, %722 : vector<8x32xf32>
    %c7_563 = arith.constant 7 : index
    %c0_564 = arith.constant 0 : index
    %c0_565 = arith.constant 0 : index
    %724 = vector.load %arg10[%c7_563, %c0_564, %c0_565] : memref<10x8x34xbf16, #tpu.memory_space<vmem>>, vector<1x8x34xbf16>
    %725 = vector.shape_cast %724 : vector<1x8x34xbf16> to vector<8x34xbf16>
    %c3_566 = arith.constant 3 : index
    %c0_567 = arith.constant 0 : index
    %c0_568 = arith.constant 0 : index
    %726 = vector.load %arg4[%c3_566, %c0_567, %c0_568] : memref<9x8x8xbf16, #tpu.memory_space<vmem>>, vector<1x8x8xbf16>
    %727 = vector.shape_cast %726 : vector<1x8x8xbf16> to vector<8x8xbf16>
    %728 = vector.extract_strided_slice %725 {offsets = [0, 0], sizes = [8, 32], strides = [1, 1]} : vector<8x34xbf16> to vector<8x32xbf16>
    %cst_569 = arith.constant dense<0.000000e+00> : vector<8x32xf32>
    %729 = tpu.matmul %727, %728, %cst_569 {dimension_numbers = #tpu.dot_dimension_numbers<[1], [0], [0], [1], [0, 0, 1, 1], [], []>} : vector<8x8xbf16>, vector<8x32xbf16>, vector<8x32xf32> -> vector<8x32xf32>
    %730 = arith.addf %723, %729 : vector<8x32xf32>
    %c4_570 = arith.constant 4 : index
    %c0_571 = arith.constant 0 : index
    %c0_572 = arith.constant 0 : index
    %731 = vector.load %arg4[%c4_570, %c0_571, %c0_572] : memref<9x8x8xbf16, #tpu.memory_space<vmem>>, vector<1x8x8xbf16>
    %732 = vector.shape_cast %731 : vector<1x8x8xbf16> to vector<8x8xbf16>
    %733 = vector.extract_strided_slice %725 {offsets = [0, 1], sizes = [8, 32], strides = [1, 1]} : vector<8x34xbf16> to vector<8x32xbf16>
    %cst_573 = arith.constant dense<0.000000e+00> : vector<8x32xf32>
    %734 = tpu.matmul %732, %733, %cst_573 {dimension_numbers = #tpu.dot_dimension_numbers<[1], [0], [0], [1], [0, 0, 1, 1], [], []>} : vector<8x8xbf16>, vector<8x32xbf16>, vector<8x32xf32> -> vector<8x32xf32>
    %735 = arith.addf %730, %734 : vector<8x32xf32>
    %c5_574 = arith.constant 5 : index
    %c0_575 = arith.constant 0 : index
    %c0_576 = arith.constant 0 : index
    %736 = vector.load %arg4[%c5_574, %c0_575, %c0_576] : memref<9x8x8xbf16, #tpu.memory_space<vmem>>, vector<1x8x8xbf16>
    %737 = vector.shape_cast %736 : vector<1x8x8xbf16> to vector<8x8xbf16>
    %738 = vector.extract_strided_slice %725 {offsets = [0, 2], sizes = [8, 32], strides = [1, 1]} : vector<8x34xbf16> to vector<8x32xbf16>
    %cst_577 = arith.constant dense<0.000000e+00> : vector<8x32xf32>
    %739 = tpu.matmul %737, %738, %cst_577 {dimension_numbers = #tpu.dot_dimension_numbers<[1], [0], [0], [1], [0, 0, 1, 1], [], []>} : vector<8x8xbf16>, vector<8x32xbf16>, vector<8x32xf32> -> vector<8x32xf32>
    %740 = arith.addf %735, %739 : vector<8x32xf32>
    %c8_578 = arith.constant 8 : index
    %c0_579 = arith.constant 0 : index
    %c0_580 = arith.constant 0 : index
    %741 = vector.load %arg10[%c8_578, %c0_579, %c0_580] : memref<10x8x34xbf16, #tpu.memory_space<vmem>>, vector<1x8x34xbf16>
    %742 = vector.shape_cast %741 : vector<1x8x34xbf16> to vector<8x34xbf16>
    %c6_581 = arith.constant 6 : index
    %c0_582 = arith.constant 0 : index
    %c0_583 = arith.constant 0 : index
    %743 = vector.load %arg4[%c6_581, %c0_582, %c0_583] : memref<9x8x8xbf16, #tpu.memory_space<vmem>>, vector<1x8x8xbf16>
    %744 = vector.shape_cast %743 : vector<1x8x8xbf16> to vector<8x8xbf16>
    %745 = vector.extract_strided_slice %742 {offsets = [0, 0], sizes = [8, 32], strides = [1, 1]} : vector<8x34xbf16> to vector<8x32xbf16>
    %cst_584 = arith.constant dense<0.000000e+00> : vector<8x32xf32>
    %746 = tpu.matmul %744, %745, %cst_584 {dimension_numbers = #tpu.dot_dimension_numbers<[1], [0], [0], [1], [0, 0, 1, 1], [], []>} : vector<8x8xbf16>, vector<8x32xbf16>, vector<8x32xf32> -> vector<8x32xf32>
    %747 = arith.addf %740, %746 : vector<8x32xf32>
    %c7_585 = arith.constant 7 : index
    %c0_586 = arith.constant 0 : index
    %c0_587 = arith.constant 0 : index
    %748 = vector.load %arg4[%c7_585, %c0_586, %c0_587] : memref<9x8x8xbf16, #tpu.memory_space<vmem>>, vector<1x8x8xbf16>
    %749 = vector.shape_cast %748 : vector<1x8x8xbf16> to vector<8x8xbf16>
    %750 = vector.extract_strided_slice %742 {offsets = [0, 1], sizes = [8, 32], strides = [1, 1]} : vector<8x34xbf16> to vector<8x32xbf16>
    %cst_588 = arith.constant dense<0.000000e+00> : vector<8x32xf32>
    %751 = tpu.matmul %749, %750, %cst_588 {dimension_numbers = #tpu.dot_dimension_numbers<[1], [0], [0], [1], [0, 0, 1, 1], [], []>} : vector<8x8xbf16>, vector<8x32xbf16>, vector<8x32xf32> -> vector<8x32xf32>
    %752 = arith.addf %747, %751 : vector<8x32xf32>
    %c8_589 = arith.constant 8 : index
    %c0_590 = arith.constant 0 : index
    %c0_591 = arith.constant 0 : index
    %753 = vector.load %arg4[%c8_589, %c0_590, %c0_591] : memref<9x8x8xbf16, #tpu.memory_space<vmem>>, vector<1x8x8xbf16>
    %754 = vector.shape_cast %753 : vector<1x8x8xbf16> to vector<8x8xbf16>
    %755 = vector.extract_strided_slice %742 {offsets = [0, 2], sizes = [8, 32], strides = [1, 1]} : vector<8x34xbf16> to vector<8x32xbf16>
    %cst_592 = arith.constant dense<0.000000e+00> : vector<8x32xf32>
    %756 = tpu.matmul %754, %755, %cst_592 {dimension_numbers = #tpu.dot_dimension_numbers<[1], [0], [0], [1], [0, 0, 1, 1], [], []>} : vector<8x8xbf16>, vector<8x32xbf16>, vector<8x32xf32> -> vector<8x32xf32>
    %757 = arith.addf %752, %756 : vector<8x32xf32>
    %758 = vector.broadcast %325 : vector<8x1xf32> to vector<8x32xf32>
    %759 = arith.addf %757, %758 : vector<8x32xf32>
    %cst_593 = arith.constant 0.000000e+00 : f32
    %760 = vector.broadcast %cst_593 : f32 to vector<8x32xf32>
    %761 = arith.maximumf %759, %760 : vector<8x32xf32>
    %762 = vector.broadcast %326 : vector<8x1xf32> to vector<8x32xf32>
    %763 = arith.mulf %761, %762 : vector<8x32xf32>
    %764 = vector.broadcast %327 : vector<8x1xf32> to vector<8x32xf32>
    %765 = arith.addf %763, %764 : vector<8x32xf32>
    %c0_594 = arith.constant 0 : index
    %c0_595 = arith.constant 0 : index
    %c6_596 = arith.constant 6 : index
    %c0_597 = arith.constant 0 : index
    %766 = vector.load %arg9[%c0_594, %c0_595, %c6_596, %c0_597] : memref<1x8x8x32xf32, #tpu.memory_space<vmem>>, vector<1x8x1x32xf32>
    %767 = vector.shape_cast %766 : vector<1x8x1x32xf32> to vector<8x32xf32>
    %768 = vector.shape_cast %765 : vector<8x32xf32> to vector<1x8x1x32xf32>
    tpu.vector_store %arg9[%c0_594, %c0_595, %c6_596, %c0_597], %768 {strides = array<i32>} : memref<1x8x8x32xf32, #tpu.memory_space<vmem>>, vector<1x8x1x32xf32>,
    %cst_598 = arith.constant 0.000000e+00 : f32
    %769 = vector.broadcast %cst_598 : f32 to vector<8x32xf32>
    %c7_599 = arith.constant 7 : index
    %c0_600 = arith.constant 0 : index
    %c0_601 = arith.constant 0 : index
    %770 = vector.load %arg10[%c7_599, %c0_600, %c0_601] : memref<10x8x34xbf16, #tpu.memory_space<vmem>>, vector<1x8x34xbf16>
    %771 = vector.shape_cast %770 : vector<1x8x34xbf16> to vector<8x34xbf16>
    %c0_602 = arith.constant 0 : index
    %c0_603 = arith.constant 0 : index
    %c0_604 = arith.constant 0 : index
    %772 = vector.load %arg4[%c0_602, %c0_603, %c0_604] : memref<9x8x8xbf16, #tpu.memory_space<vmem>>, vector<1x8x8xbf16>
    %773 = vector.shape_cast %772 : vector<1x8x8xbf16> to vector<8x8xbf16>
    %774 = vector.extract_strided_slice %771 {offsets = [0, 0], sizes = [8, 32], strides = [1, 1]} : vector<8x34xbf16> to vector<8x32xbf16>
    %cst_605 = arith.constant dense<0.000000e+00> : vector<8x32xf32>
    %775 = tpu.matmul %773, %774, %cst_605 {dimension_numbers = #tpu.dot_dimension_numbers<[1], [0], [0], [1], [0, 0, 1, 1], [], []>} : vector<8x8xbf16>, vector<8x32xbf16>, vector<8x32xf32> -> vector<8x32xf32>
    %776 = arith.addf %769, %775 : vector<8x32xf32>
    %c1_606 = arith.constant 1 : index
    %c0_607 = arith.constant 0 : index
    %c0_608 = arith.constant 0 : index
    %777 = vector.load %arg4[%c1_606, %c0_607, %c0_608] : memref<9x8x8xbf16, #tpu.memory_space<vmem>>, vector<1x8x8xbf16>
    %778 = vector.shape_cast %777 : vector<1x8x8xbf16> to vector<8x8xbf16>
    %779 = vector.extract_strided_slice %771 {offsets = [0, 1], sizes = [8, 32], strides = [1, 1]} : vector<8x34xbf16> to vector<8x32xbf16>
    %cst_609 = arith.constant dense<0.000000e+00> : vector<8x32xf32>
    %780 = tpu.matmul %778, %779, %cst_609 {dimension_numbers = #tpu.dot_dimension_numbers<[1], [0], [0], [1], [0, 0, 1, 1], [], []>} : vector<8x8xbf16>, vector<8x32xbf16>, vector<8x32xf32> -> vector<8x32xf32>
    %781 = arith.addf %776, %780 : vector<8x32xf32>
    %c2_610 = arith.constant 2 : index
    %c0_611 = arith.constant 0 : index
    %c0_612 = arith.constant 0 : index
    %782 = vector.load %arg4[%c2_610, %c0_611, %c0_612] : memref<9x8x8xbf16, #tpu.memory_space<vmem>>, vector<1x8x8xbf16>
    %783 = vector.shape_cast %782 : vector<1x8x8xbf16> to vector<8x8xbf16>
    %784 = vector.extract_strided_slice %771 {offsets = [0, 2], sizes = [8, 32], strides = [1, 1]} : vector<8x34xbf16> to vector<8x32xbf16>
    %cst_613 = arith.constant dense<0.000000e+00> : vector<8x32xf32>
    %785 = tpu.matmul %783, %784, %cst_613 {dimension_numbers = #tpu.dot_dimension_numbers<[1], [0], [0], [1], [0, 0, 1, 1], [], []>} : vector<8x8xbf16>, vector<8x32xbf16>, vector<8x32xf32> -> vector<8x32xf32>
    %786 = arith.addf %781, %785 : vector<8x32xf32>
    %c8_614 = arith.constant 8 : index
    %c0_615 = arith.constant 0 : index
    %c0_616 = arith.constant 0 : index
    %787 = vector.load %arg10[%c8_614, %c0_615, %c0_616] : memref<10x8x34xbf16, #tpu.memory_space<vmem>>, vector<1x8x34xbf16>
    %788 = vector.shape_cast %787 : vector<1x8x34xbf16> to vector<8x34xbf16>
    %c3_617 = arith.constant 3 : index
    %c0_618 = arith.constant 0 : index
    %c0_619 = arith.constant 0 : index
    %789 = vector.load %arg4[%c3_617, %c0_618, %c0_619] : memref<9x8x8xbf16, #tpu.memory_space<vmem>>, vector<1x8x8xbf16>
    %790 = vector.shape_cast %789 : vector<1x8x8xbf16> to vector<8x8xbf16>
    %791 = vector.extract_strided_slice %788 {offsets = [0, 0], sizes = [8, 32], strides = [1, 1]} : vector<8x34xbf16> to vector<8x32xbf16>
    %cst_620 = arith.constant dense<0.000000e+00> : vector<8x32xf32>
    %792 = tpu.matmul %790, %791, %cst_620 {dimension_numbers = #tpu.dot_dimension_numbers<[1], [0], [0], [1], [0, 0, 1, 1], [], []>} : vector<8x8xbf16>, vector<8x32xbf16>, vector<8x32xf32> -> vector<8x32xf32>
    %793 = arith.addf %786, %792 : vector<8x32xf32>
    %c4_621 = arith.constant 4 : index
    %c0_622 = arith.constant 0 : index
    %c0_623 = arith.constant 0 : index
    %794 = vector.load %arg4[%c4_621, %c0_622, %c0_623] : memref<9x8x8xbf16, #tpu.memory_space<vmem>>, vector<1x8x8xbf16>
    %795 = vector.shape_cast %794 : vector<1x8x8xbf16> to vector<8x8xbf16>
    %796 = vector.extract_strided_slice %788 {offsets = [0, 1], sizes = [8, 32], strides = [1, 1]} : vector<8x34xbf16> to vector<8x32xbf16>
    %cst_624 = arith.constant dense<0.000000e+00> : vector<8x32xf32>
    %797 = tpu.matmul %795, %796, %cst_624 {dimension_numbers = #tpu.dot_dimension_numbers<[1], [0], [0], [1], [0, 0, 1, 1], [], []>} : vector<8x8xbf16>, vector<8x32xbf16>, vector<8x32xf32> -> vector<8x32xf32>
    %798 = arith.addf %793, %797 : vector<8x32xf32>
    %c5_625 = arith.constant 5 : index
    %c0_626 = arith.constant 0 : index
    %c0_627 = arith.constant 0 : index
    %799 = vector.load %arg4[%c5_625, %c0_626, %c0_627] : memref<9x8x8xbf16, #tpu.memory_space<vmem>>, vector<1x8x8xbf16>
    %800 = vector.shape_cast %799 : vector<1x8x8xbf16> to vector<8x8xbf16>
    %801 = vector.extract_strided_slice %788 {offsets = [0, 2], sizes = [8, 32], strides = [1, 1]} : vector<8x34xbf16> to vector<8x32xbf16>
    %cst_628 = arith.constant dense<0.000000e+00> : vector<8x32xf32>
    %802 = tpu.matmul %800, %801, %cst_628 {dimension_numbers = #tpu.dot_dimension_numbers<[1], [0], [0], [1], [0, 0, 1, 1], [], []>} : vector<8x8xbf16>, vector<8x32xbf16>, vector<8x32xf32> -> vector<8x32xf32>
    %803 = arith.addf %798, %802 : vector<8x32xf32>
    %c9_629 = arith.constant 9 : index
    %c0_630 = arith.constant 0 : index
    %c0_631 = arith.constant 0 : index
    %804 = vector.load %arg10[%c9_629, %c0_630, %c0_631] : memref<10x8x34xbf16, #tpu.memory_space<vmem>>, vector<1x8x34xbf16>
    %805 = vector.shape_cast %804 : vector<1x8x34xbf16> to vector<8x34xbf16>
    %c6_632 = arith.constant 6 : index
    %c0_633 = arith.constant 0 : index
    %c0_634 = arith.constant 0 : index
    %806 = vector.load %arg4[%c6_632, %c0_633, %c0_634] : memref<9x8x8xbf16, #tpu.memory_space<vmem>>, vector<1x8x8xbf16>
    %807 = vector.shape_cast %806 : vector<1x8x8xbf16> to vector<8x8xbf16>
    %808 = vector.extract_strided_slice %805 {offsets = [0, 0], sizes = [8, 32], strides = [1, 1]} : vector<8x34xbf16> to vector<8x32xbf16>
    %cst_635 = arith.constant dense<0.000000e+00> : vector<8x32xf32>
    %809 = tpu.matmul %807, %808, %cst_635 {dimension_numbers = #tpu.dot_dimension_numbers<[1], [0], [0], [1], [0, 0, 1, 1], [], []>} : vector<8x8xbf16>, vector<8x32xbf16>, vector<8x32xf32> -> vector<8x32xf32>
    %810 = arith.addf %803, %809 : vector<8x32xf32>
    %c7_636 = arith.constant 7 : index
    %c0_637 = arith.constant 0 : index
    %c0_638 = arith.constant 0 : index
    %811 = vector.load %arg4[%c7_636, %c0_637, %c0_638] : memref<9x8x8xbf16, #tpu.memory_space<vmem>>, vector<1x8x8xbf16>
    %812 = vector.shape_cast %811 : vector<1x8x8xbf16> to vector<8x8xbf16>
    %813 = vector.extract_strided_slice %805 {offsets = [0, 1], sizes = [8, 32], strides = [1, 1]} : vector<8x34xbf16> to vector<8x32xbf16>
    %cst_639 = arith.constant dense<0.000000e+00> : vector<8x32xf32>
    %814 = tpu.matmul %812, %813, %cst_639 {dimension_numbers = #tpu.dot_dimension_numbers<[1], [0], [0], [1], [0, 0, 1, 1], [], []>} : vector<8x8xbf16>, vector<8x32xbf16>, vector<8x32xf32> -> vector<8x32xf32>
    %815 = arith.addf %810, %814 : vector<8x32xf32>
    %c8_640 = arith.constant 8 : index
    %c0_641 = arith.constant 0 : index
    %c0_642 = arith.constant 0 : index
    %816 = vector.load %arg4[%c8_640, %c0_641, %c0_642] : memref<9x8x8xbf16, #tpu.memory_space<vmem>>, vector<1x8x8xbf16>
    %817 = vector.shape_cast %816 : vector<1x8x8xbf16> to vector<8x8xbf16>
    %818 = vector.extract_strided_slice %805 {offsets = [0, 2], sizes = [8, 32], strides = [1, 1]} : vector<8x34xbf16> to vector<8x32xbf16>
    %cst_643 = arith.constant dense<0.000000e+00> : vector<8x32xf32>
    %819 = tpu.matmul %817, %818, %cst_643 {dimension_numbers = #tpu.dot_dimension_numbers<[1], [0], [0], [1], [0, 0, 1, 1], [], []>} : vector<8x8xbf16>, vector<8x32xbf16>, vector<8x32xf32> -> vector<8x32xf32>
    %820 = arith.addf %815, %819 : vector<8x32xf32>
    %821 = vector.broadcast %325 : vector<8x1xf32> to vector<8x32xf32>
    %822 = arith.addf %820, %821 : vector<8x32xf32>
    %cst_644 = arith.constant 0.000000e+00 : f32
    %823 = vector.broadcast %cst_644 : f32 to vector<8x32xf32>
    %824 = arith.maximumf %822, %823 : vector<8x32xf32>
    %825 = vector.broadcast %326 : vector<8x1xf32> to vector<8x32xf32>
    %826 = arith.mulf %824, %825 : vector<8x32xf32>
    %827 = vector.broadcast %327 : vector<8x1xf32> to vector<8x32xf32>
    %828 = arith.addf %826, %827 : vector<8x32xf32>
    %c0_645 = arith.constant 0 : index
    %c0_646 = arith.constant 0 : index
    %c7_647 = arith.constant 7 : index
    %c0_648 = arith.constant 0 : index
    %829 = vector.load %arg9[%c0_645, %c0_646, %c7_647, %c0_648] : memref<1x8x8x32xf32, #tpu.memory_space<vmem>>, vector<1x8x1x32xf32>
    %830 = vector.shape_cast %829 : vector<1x8x1x32xf32> to vector<8x32xf32>
    %831 = vector.shape_cast %828 : vector<8x32xf32> to vector<1x8x1x32xf32>
    tpu.vector_store %arg9[%c0_645, %c0_646, %c7_647, %c0_648], %831 {strides = array<i32>} : memref<1x8x8x32xf32, #tpu.memory_space<vmem>>, vector<1x8x1x32xf32>,
    return
  }
  func.func @transform_0(%arg0: i32, %arg1: i32) -> (i32, i32, i32, i32) {
    %c0_i32 = arith.constant 0 : i32
    %c0_i32_0 = arith.constant 0 : i32
    %c0_i32_1 = arith.constant 0 : i32
    %c0_i32_2 = arith.constant 0 : i32
    return %arg0, %c0_i32, %c0_i32_0, %c0_i32_1 : i32, i32, i32, i32
  }
  func.func @transform_1(%arg0: i32, %arg1: i32) -> (i32, i32, i32) {
    %c0_i32 = arith.constant 0 : i32
    %c0_i32_0 = arith.constant 0 : i32
    %c0_i32_1 = arith.constant 0 : i32
    %c0_i32_2 = arith.constant 0 : i32
    return %c0_i32, %c0_i32_0, %c0_i32_1 : i32, i32, i32
  }
  func.func @transform_2(%arg0: i32, %arg1: i32) -> (i32, i32, i32) {
    %c0_i32 = arith.constant 0 : i32
    %c0_i32_0 = arith.constant 0 : i32
    %c0_i32_1 = arith.constant 0 : i32
    %c0_i32_2 = arith.constant 0 : i32
    return %c0_i32, %c0_i32_0, %c0_i32_1 : i32, i32, i32
  }
  func.func @transform_3(%arg0: i32, %arg1: i32) -> (i32, i32) {
    %c0_i32 = arith.constant 0 : i32
    %c0_i32_0 = arith.constant 0 : i32
    %c0_i32_1 = arith.constant 0 : i32
    return %c0_i32, %c0_i32_0 : i32, i32
  }
  func.func @transform_4(%arg0: i32, %arg1: i32) -> (i32, i32) {
    %c0_i32 = arith.constant 0 : i32
    %c0_i32_0 = arith.constant 0 : i32
    %c0_i32_1 = arith.constant 0 : i32
    return %c0_i32, %c0_i32_0 : i32, i32
  }
  func.func @transform_5(%arg0: i32, %arg1: i32) -> (i32, i32) {
    %c0_i32 = arith.constant 0 : i32
    %c0_i32_0 = arith.constant 0 : i32
    %c0_i32_1 = arith.constant 0 : i32
    return %c0_i32, %c0_i32_0 : i32, i32
  }
  func.func @transform_6(%arg0: i32, %arg1: i32) -> (i32, i32) {
    %c0_i32 = arith.constant 0 : i32
    %c0_i32_0 = arith.constant 0 : i32
    %c0_i32_1 = arith.constant 0 : i32
    return %c0_i32, %c0_i32_0 : i32, i32
  }
  func.func @transform_7(%arg0: i32, %arg1: i32) -> (i32, i32, i32, i32) {
    %c0_i32 = arith.constant 0 : i32
    %c0_i32_0 = arith.constant 0 : i32
    %c0_i32_1 = arith.constant 0 : i32
    return %arg0, %c0_i32, %arg1, %c0_i32_0 : i32, i32, i32, i32
  }
}

</mosaic_0001>

<bundles_post_ra>
// kernel: tpu_custom_call.1
= control target key start
LH: loop header
LB: loop body
LE: loop exit
PB: predicated region body
PF: predicated region fallthrough
CT: control target
= control target key end

     0   :  { %12 = vsyncpa [#allocation4], 0  ;;  %s10139_s0 = inlined_call_operand.vmem [shape: bf16[2,17,8,36], index: 0, kind: input, shape index: {}]   ;;  %s10140_s1 = inlined_call_operand.vmem [shape: bf16[9,8,8], index: 1, kind: input, shape index: {}]   ;;  %s10141_s2 = inlined_call_operand.vmem [shape: bf16[9,8,8], index: 2, kind: input, shape index: {}]   ;;  %s10142_s3 = inlined_call_operand.vmem [shape: f32[8,1], index: 3, kind: input, shape index: {}]   ;;  %s10143_s4 = inlined_call_operand.vmem [shape: f32[8,1], index: 4, kind: input, shape index: {}]   ;;  %s10144_s5 = inlined_call_operand.vmem [shape: f32[8,1], index: 5, kind: input, shape index: {}]   ;;  %s10145_s6 = inlined_call_operand.vmem [shape: f32[8,1], index: 6, kind: input, shape index: {}]   ;;  %s10146_s7 = inlined_call_operand.hbm [shape: f32[2,8,32,32], index: 7, kind: output, shape index: {}]  }
   0x1   :  { %14 = vsyncpa [#allocation4 + $0x1], 0  ;;  %s8525_s24 = smov 0   ;;  %s8527_s25 = smov 0  }
   0x2   :  { %s8529_s26 = smov 0   ;;  %s8531_s27 = smov 0  }
   0x3   :  { %s8533_s28 = smov 0   ;;  %s8535_s29 = smov 0  }
   0x4   :  { %s8537_s30 = smov 0   ;;  %s8539_s8 = smov 0  }
   0x5 LB: > { %s6996_s9 = sadd.s32 4294967295, %s8464_s8   ;;  %s6997_s10 = sadd.s32 4294967294, %s8464_s8   ;;  %s8464_s8 = sphi %s8539_s8, %s20_s8   ;;  %s8460_s30 = sphi %s8537_s30, %s10159_s30   ;;  %s8456_s29 = sphi %s8535_s29, %s10158_s29   ;;  %s8452_s28 = sphi %s8533_s28, %s10157_s28   ;;  %s8448_s27 = sphi %s8531_s27, %s10156_s27   ;;  %s8444_s26 = sphi %s8529_s26, %s10155_s26   ;;  %s8440_s25 = sphi %s8527_s25, %s10154_s25   ;;  %s8436_s24 = sphi %s8525_s24, %s10153_s24  }
   0x6   : > { %s29_s11 = sadd.s32 1, %s8456_s29  ;;  %s32_s12 = sadd.s32 1, %s8460_s30 }
   0x7   : > { %p30_p0 = scmp.ge.s32.totalorder %s29_s11, 4  ;;  %p203_p1 = scmp.ne.s32.totalorder %s8444_s26, %s8440_s25 }
   0x8   : > { %p204_p2 = scmp.eq.s32.totalorder %s6996_s9, 7  ;;  %p209_p5 = scmp.ne.s32.totalorder %s8440_s25, %s8436_s24 }
   0x9   : > { %s10161_s11 = smov (%p30_p0, %s29_s11), 0  ;;  %s10163_s12 = smov (!%p30_p0, %s32_s12), %s8460_s30 }
   0xa   : > { %s189_s13 = ssub.s32 %s8456_s29, %s10161_s11  ;;  %p8576_p3 = por %p204_p2, %p203_p1 }
   0xb   : > { %p34_p4 = scmp.ge.s32.totalorder %s10163_s12, 2  ;;  %p210_p6 = scmp.eq.s32.totalorder %s6997_s10, 7 }
   0xc   : > { %p7000_p7 = scmp.ge.s32.totalorder %s8464_s8, 1  ;;  %p254_p9 = scmp.lt.s32.totalorder %s8464_s8, 9 }
   0xd   : > { %s10165_s12 = smov (%p34_p4, %s10163_s12), 0  ;;  %p8585_p8 = por %p210_p6, %p209_p5 }
   0xe   : > { %s188_s16 = ssub.s32 %s8460_s30, %s10165_s12  ;;  %s193_s17 = sadd.s32 1, %s8444_s26 }
   0xf   : > { %s190_s18 = sor.u32 %s189_s13, %s188_s16  ;;  %p255_p10 = pnand %p7000_p7, %p254_p9 }
  0x10   : > { %p191_p11 = scmp.eq.s32.totalorder %s190_s18, 0  ;;  %s10147_s20 = sand.u32 (!%p255_p10), 1, %s8440_s25   ;;  %v8601_v0 = vld [vmem:[%s10142_s3] sm:$0xff] (!%p255_p10)  ;;  %v293_v1 = vlaneseq (!%p255_p10)  ;;  %vm299_vm0 = vcmask (!%p255_p10), 273408   ;;  %v8466_v2 = vmov (!%p255_p10), 0  }
  0x11   : > { %258 = sbr.rel (%p255_p10) target bundleno = 1835 (0x72b), region = 48  ;;  %p286_p12 = scmp.lt.s32.totalorder (!%p255_p10), %s8452_s28, 1  ;;  %300 = vst.msk [vmem:[#allocation2] sm:$0xf] (!%p255_p10), %vm299_vm0, %v8466_v2  ;;  %302 = vst.msk [vmem:[#allocation2 + $0x24] sm:$0xf] (!%p255_p10), %vm299_vm0, %v8466_v2 }
  0x12   : > { %s8594_s19 = scalar_select %p191_p11, %s8444_s26, %s193_s17  }
  0x13   : > { %s7001_s23 = sshll.u32 (!%p255_p10), %s10147_s20, 6  ;;  %s7003_s9 = sshll.u32 (!%p255_p10), %s8448_s27, 2  ;;  %v294_v3 = vand.u32 (!%p255_p10), 127, %v293_v1 }
  0x14   : > { %s8621_s21 = scalar_lea.vmem (!%p255_p10), [#allocation3], %s7001_s23  ;;  %p7004_p13 = scmp.le.s32.totalorder (!%p255_p10), %s8448_s27, 0 }
  0x15   : > { %vm295_vm1 = vcmp.ge.s32.totalorder (!%p255_p10), %v294_v3, 1  ;;  %vm296_vm2 = vcmp.le.s32.totalorder (!%p255_p10), %v294_v3, 32 }
  0x16   : > { %vm8612_vm3 = vmand (!%p255_p10), %vm295_vm1, %vm296_vm2 }
  0x18   : > { %s287_s10 = scalar_select %p286_p12, %s8452_s28, 1 }
  0x19   : > { %306 = sbr.rel (%p7004_p13) target bundleno = 384 (0x180), region = 52  ;;  %s7005_s22 = sadd.s32 (!%p7004_p13), 4294967295, %s7003_s9  ;;  %v8467_v5 = vmov (!%p7004_p13), 0.0   ;;  %vm321_vm4 = vcmask (!%p7004_p13), 1043456   ;;  %vm8468_vm5 = vmmov (!%p7004_p13), 0   ;;  %vm317_vm6 = vcmask (!%p7004_p13), 64512  }
  0x1a   : > { %s8236_s13 = smul.u32 68, %s287_s10  ;;  %s7006_s20 = sshll.u32 (!%p7004_p13), %s7005_s22, 2  ;;  %7534 = vmatprep.subr.bf16.mxu0 (!%p7004_p13), %v8467_v5  ;;  %7536 = vmatprep.mubr.msk.bf16.mxu0 (!%p7004_p13), %vm8468_vm5, %v8467_v5  ;;  %v7008_v11 = vld [vmem:[%s10140_s1 + $0x18] sm:$0xf] (!%p7004_p13)  ;;  %v314_v12 = vld [vmem:[%s10140_s1] sm:$0xf] (!%p7004_p13) }
  0x1b   : > { %s7294_s10 = sshll.u32 (!%p7004_p13), %s8448_s27, 4  ;;  %7540 = vmatprep.subr.bf16.mxu1 (!%p7004_p13), %v8467_v5  ;;  %7542 = vmatprep.mubr.msk.bf16.mxu1 (!%p7004_p13), %vm8468_vm5, %v8467_v5  ;;  %s8469_s22 = smov (!%p7004_p13), 127   ;;  %v8471_v14 = vmov (!%p7004_p13), 0   ;;  %v7011_v18 = vld [vmem:[%s10140_s1 + $0x4] sm:$0xf] (!%p7004_p13) }
  0x1c   : > { %s8619_s18 = scalar_lea.vmem %s10139_s0, %s8236_s13  ;;  %8326 = vset.pattern.permute.xlu0 (!%p7004_p13), %v8471_v14  ;;  %v7014_v23 = vld [vmem:[%s10140_s1 + $0x1c] sm:$0xf] (!%p7004_p13)  ;;  %v7017_v25 = vld [vmem:[%s10140_s1 + $0x8] sm:$0xf] (!%p7004_p13)  ;;  %v7019_v26 = vld [vmem:[%s10140_s1 + $0x20] sm:$0xf] (!%p7004_p13) }
  0x1d   : > { %s309_s16 = scalar_lea.vmem (!%p7004_p13), %s8619_s18, %s7006_s20  ;;  %s312_s13 = scalar_lea.vmem (!%p7004_p13), %s8619_s18, %s7294_s10 }
  0x1e   : > { %v310_v6 = vld [vmem:[%s309_s16] sm:$0xf] (!%p7004_p13)  ;;  %s8470_s10 = smov (!%p7004_p13), 126  }
  0x1f   : > { %v313_v7 = vld [vmem:[%s312_s13] sm:$0xf] (!%p7004_p13)  ;;  %v7012_v8 = vcombine.low (!%p7004_p13), %v310_v6, %v310_v6  ;;  %v369_v10 = vsel (!%p7004_p13), %vm321_vm4, %v310_v6, 0 }
  0x20   : > { %v323_v9 = vsel %vm321_vm4, %v313_v7, 0  ;;  %7541 = vmatpush3.bf16.msra.mxu1 %v369_v10  ;;  %v7015_v13 = vcombine.low %v313_v7, %v313_v7 }
  0x21   : > { %7535 = vmatpush3.bf16.msra.mxu0 %v323_v9  ;;  %416 = vrot.lane.b32.xlu0 %v7012_v8, %s8469_s22 }
  0x22   : > { %521 = vrot.lane.b32.xlu1 %v7012_v8, %s8470_s10  ;;  %7546 = vmatprep.subr.bf16.mxu0 %v8467_v5 }
  0x23   : > { %7552 = vmatprep.subr.bf16.mxu1 %v8467_v5  ;;  %7543 = vmatmul.mubr.msk.bf16.vlgmr.msra.gmra.mrb[0].mxu1 %vm317_vm6, %v314_v12 }
  0x24   : > { %7537 = vmatmul.mubr.msk.bf16.vlgmr.msra.gmra.mrb[0].mxu0 %vm317_vm6, %v7008_v11  ;;  %7554 = vmatprep.mubr.msk.bf16.mxu1 %vm8468_vm5, %v8467_v5 }
  0x25   : > { %7548 = vmatprep.mubr.msk.bf16.mxu0 %vm8468_vm5, %v8467_v5  ;;  %470 = vrot.lane.b32.xlu0 %v7015_v13, %s8469_s22 }
  0x26   : > { %572 = vrot.lane.b32.xlu1 %v7015_v13, %s8470_s10 }
  0x29   : > { %623 = vperm.xlu0 %8326, %v8601_v0  }
  0x93   : > { %v417_v15 = vpop.permute.xlu0 %416 }
  0x94   : > { %v522_v16 = vpop.permute.xlu1 %521  ;;  %v422_v17 = vsel %vm321_vm4, %v417_v15, 0 }
  0x95   : > { %7547 = vmatpush3.bf16.msra.mxu0 %v422_v17  ;;  %v527_v19 = vsel %vm321_vm4, %v522_v16, 0 }
  0x96   : > { %7558 = vmatprep.subr.bf16.mxu0 %v8467_v5 }
  0x97   : > { %v471_v20 = vpop.permute.xlu0 %470 }
  0x98   : > { %v573_v21 = vpop.permute.xlu1 %572  ;;  %v476_v22 = vsel %vm321_vm4, %v471_v20, 0  ;;  %7549 = vmatmul.mubr.msk.bf16.vlgmr.msra.gmra.mrb[4].mxu0 %vm317_vm6, %v7011_v18 }
  0x99   : > { %7553 = vmatpush3.bf16.msra.mxu1 %v476_v22  ;;  %7559 = vmatpush3.bf16.msra.mxu0 %v527_v19  ;;  %v578_v24 = vsel %vm321_vm4, %v573_v21, 0 }
  0x9a   : > { %7560 = vmatprep.mubr.msk.bf16.mxu0 %vm8468_vm5, %v8467_v5  ;;  %7564 = vmatprep.subr.bf16.mxu1 %v8467_v5 }
  0x9c   : > { %7555 = vmatmul.mubr.msk.bf16.vlgmr.msra.gmra.mrb[4].mxu1 %vm317_vm6, %v7014_v23 }
  0x9d   : > { %7565 = vmatpush3.bf16.msra.mxu1 %v578_v24  ;;  %7566 = vmatprep.mubr.msk.bf16.mxu1 %vm8468_vm5, %v8467_v5 }
  0xa0   : > { %7561 = vmatmul.mubr.msk.bf16.vlgmr.msra.gmra.mrb[8].mxu0 %vm317_vm6, %v7017_v25 }
  0xa4   : > { %7567 = vmatmul.mubr.msk.bf16.vlgmr.msra.gmra.mrb[8].mxu1 %vm317_vm6, %v7019_v26 }
  0xa8   : > { %v624_v52 = vpop.permute.xlu0 %623 }
  0xf6   : > { %v405_v28 = vpop.f32.mrb[0].mxu1 }
  0xf7   : > { %v359_v27 = vpop.f32.mrb[0].mxu0  ;;  %v7544_v31 = vpop.f32.mrb[1].mxu1 }
  0xf8   : > { %v7538_v29 = vpop.f32.mrb[1].mxu0  ;;  %v406_v30 = vadd.f32 %v405_v28, %v359_v27  ;;  %v408_v33 = vpop.f32.mrb[2].mxu1 }
  0xf9   : > { %v362_v32 = vpop.f32.mrb[2].mxu0  ;;  %v7545_v35 = vpop.f32.mrb[3].mxu1 }
  0xfa   : > { %v7539_v34 = vpop.f32.mrb[3].mxu0 }
 0x16b   : > { %v458_v36 = vpop.f32.mrb[4].mxu0 }
 0x16c   : > { %v464_v37 = vadd.f32 %v458_v36, %v406_v30  ;;  %v7550_v38 = vpop.f32.mrb[5].mxu0 }
 0x16d   : > { %v461_v39 = vpop.f32.mrb[6].mxu0 }
 0x16e   : > { %v7551_v40 = vpop.f32.mrb[7].mxu0 }
 0x16f   : > { %v512_v41 = vpop.f32.mrb[4].mxu1 }
 0x170   : > { %v518_v42 = vadd.f32 %v512_v41, %v464_v37  ;;  %v7556_v43 = vpop.f32.mrb[5].mxu1 }
 0x171   : > { %v515_v44 = vpop.f32.mrb[6].mxu1 }
 0x172   : > { %v7557_v45 = vpop.f32.mrb[7].mxu1 }
 0x173   : > { %v563_v46 = vpop.f32.mrb[8].mxu0 }
 0x174   : > { %v569_v47 = vadd.f32 %v563_v46, %v518_v42  ;;  %v7562_v48 = vpop.f32.mrb[9].mxu0 }
 0x175   : > { %v566_v49 = vpop.f32.mrb[10].mxu0 }
 0x176   : > { %v7563_v50 = vpop.f32.mrb[11].mxu0 }
 0x177   : > { %v614_v51 = vpop.f32.mrb[8].mxu1 }
 0x178   : > { %v620_v53 = vadd.f32 %v614_v51, %v569_v47  ;;  %v7568_v54 = vpop.f32.mrb[9].mxu1 }
 0x179   : > { %v617_v55 = vpop.f32.mrb[10].mxu1 }
 0x17a   : > { %v626_v56 = vadd.f32 %v624_v52, %v620_v53  ;;  %v7569_v57 = vpop.f32.mrb[11].mxu1 }
 0x17c   : > { %v627_v58 = vsel %vm8612_vm3, %v626_v56, 0.0 }
 0x17d   : > { %v628_v59 = vpack.c.bf16 %v627_v58, %v627_v58 }
 0x17f   : > { %629 = vst.msk [vmem:[#allocation2] sm:$0xf] %vm299_vm0, %v628_v59 }
 0x180 PF: > { %s7295_s16 = sshll.u32 %s8448_s27, 4  ;;  %8329 = vset.pattern.permute.xlu0 %v8466_v2  ;;  %v8472_v60 = vmov 0.0   ;;  %vm646_vm7 = vcmask 1043456   ;;  %vm8473_vm8 = vmmov 0   ;;  %vm642_vm9 = vcmask 64512   ;;  %s8475_s17 = smov 126  }
 0x181   : > { %s8670_s13 = scalar_lea.vmem %s8619_s18, %s7295_s16  ;;  %7570 = vmatprep.subr.bf16.mxu0 %v8472_v60  ;;  %7576 = vmatprep.subr.bf16.mxu1 %v8472_v60  ;;  %s8474_s18 = smov 127   ;;  %v7022_v8 = vld [vmem:[%s10140_s1 + $0xc] sm:$0xf]  ;;  %v7032_v14 = vld [vmem:[%s10140_s1 + $0x18] sm:$0xf] }
 0x182   : > { %v632_v61 = vld [vmem:[%s8670_s13] sm:$0xf]  ;;  %v7031_v63 = vld [vmem:[%s8670_s13 + $0x4] sm:$0xf]  ;;  %7572 = vmatprep.mubr.msk.bf16.mxu0 %vm8473_vm8, %v8472_v60  ;;  %7578 = vmatprep.mubr.msk.bf16.mxu1 %vm8473_vm8, %v8472_v60  ;;  %v8710_v13 = vld [vmem:[%s8670_s13 + $0x8] sm:$0xf] }
 0x183   : > { %v8676_v62 = vld [vmem:[%s8670_s13] sm:$0xf]  ;;  %v7024_v3 = vcombine.low %v632_v61, %v632_v61  ;;  %v7039_v6 = vcombine.low %v7031_v63, %v7031_v63  ;;  %v694_v7 = vsel %vm646_vm7, %v632_v61, 0  ;;  %v809_v9 = vsel %vm646_vm7, %v7031_v63, 0  ;;  %v8696_v10 = vld [vmem:[%s8670_s13 + $0x4] sm:$0xf] }
 0x184   : > { %v7036_v5 = vcombine.low %v8676_v62, %v8676_v62  ;;  %7577 = vmatpush3.bf16.msra.mxu1 %v694_v7  ;;  %v7048_v11 = vcombine.low %v8696_v10, %v8696_v10  ;;  %v8707_v12 = vld [vmem:[%s8670_s13 + $0x4] sm:$0xf]  ;;  %v7064_v16 = vcombine.low %v8710_v13, %v8710_v13  ;;  %v8727_v17 = vld [vmem:[%s8670_s13 + $0x8] sm:$0xf]  ;;  %v8737_v20 = vld [vmem:[%s8670_s13 + $0xc] sm:$0xf] }
 0x185   : > { %640 = vrot.lane.b32.xlu0 %v7024_v3, %s8474_s18  ;;  %7588 = vmatprep.subr.bf16.mxu1 %v8472_v60  ;;  %v7061_v15 = vcombine.low %v8707_v12, %v8707_v12  ;;  %v7073_v18 = vcombine.low %v8727_v17, %v8727_v17  ;;  %v8734_v19 = vld [vmem:[%s8670_s13 + $0x8] sm:$0xf]  ;;  %v7089_v22 = vcombine.low %v8737_v20, %v8737_v20  ;;  %v8748_v23 = vld [vmem:[%s8670_s13 + $0xc] sm:$0xf]  ;;  %v8758_v26 = vld [vmem:[%s8670_s13 + $0x10] sm:$0xf] }
 0x186   : > { %902 = vrot.lane.b32.xlu1 %v7036_v5, %s8474_s18  ;;  %v7086_v21 = vcombine.low %v8734_v19, %v8734_v19  ;;  %v7098_v24 = vcombine.low %v8748_v23, %v8748_v23  ;;  %v8755_v25 = vld [vmem:[%s8670_s13 + $0xc] sm:$0xf]  ;;  %v7114_v28 = vcombine.low %v8758_v26, %v8758_v26  ;;  %v7023_v33 = vld [vmem:[%s10140_s1 + $0x10] sm:$0xf]  ;;  %v7035_v34 = vld [vmem:[%s10140_s1 + $0x4] sm:$0xf] }
 0x187   : > { %7579 = vmatmul.mubr.msk.bf16.vlgmr.msra.gmra.mrb[0].mxu1 %vm642_vm9, %v7022_v8  ;;  %v7111_v27 = vcombine.low %v8755_v25, %v8755_v25  ;;  %v7027_v39 = vld [vmem:[%s10140_s1 + $0x14] sm:$0xf]  ;;  %v7041_v40 = vld [vmem:[%s10140_s1 + $0x8] sm:$0xf]  ;;  %v855_v41 = vsel %vm646_vm7, %v8676_v62, 0  ;;  %v1324_v53 = vsel %vm646_vm7, %v8707_v12, 0 }
 0x188   : > { %7589 = vmatpush3.bf16.msra.mxu1 %v809_v9  ;;  %7590 = vmatprep.mubr.msk.bf16.mxu1 %vm8473_vm8, %v8472_v60  ;;  %v802_v46 = vld [vmem:[%s10140_s1] sm:$0xf]  ;;  %v7047_v47 = vld [vmem:[%s10140_s1 + $0x10] sm:$0xf]  ;;  %v7038_v50 = vld [vmem:[%s10140_s1 + $0x1c] sm:$0xf] }
 0x189   : > { %738 = vrot.lane.b32.xlu0 %v7024_v3, %s8475_s17  ;;  %7600 = vmatprep.subr.bf16.mxu1 %v8472_v60  ;;  %v7051_v51 = vld [vmem:[%s10140_s1 + $0x14] sm:$0xf]  ;;  %v7043_v55 = vld [vmem:[%s10140_s1 + $0x20] sm:$0xf]  ;;  %v1170_v57 = vsel %vm646_vm7, %v8696_v10, 0  ;;  %v1278_v63 = vsel %vm646_vm7, %v8710_v13, 0 }
 0x18a   : > { %956 = vrot.lane.b32.xlu1 %v7039_v6, %s8474_s18  ;;  %v1272_v56 = vld [vmem:[%s10140_s1] sm:$0xf]  ;;  %v7046_v61 = vld [vmem:[%s10140_s1 + $0xc] sm:$0xf]  ;;  %v7063_v62 = vld [vmem:[%s10140_s1 + $0x1c] sm:$0xf] }
 0x18b   : > { %v7068_v7 = vld [vmem:[%s10140_s1 + $0x20] sm:$0xf]  ;;  %v1635_v9 = vsel %vm646_vm7, %v8727_v17, 0  ;;  %v7071_v12 = vld [vmem:[%s10140_s1 + $0xc] sm:$0xf]  ;;  %p7120_p0 = scmp.ge.s32.totalorder %s8448_s27, 3 }
 0x18c   : > { %v7066_v17 = vld [vmem:[%s10140_s1 + $0x8] sm:$0xf]  ;;  %vm8477_vm10 = vmmov (!%p7120_p0), 0   ;;  %s8478_s20 = smov (!%p7120_p0), 127  }
 0x18d   : > { %1007 = vrot.lane.b32.xlu0 %v7036_v5, %s8475_s17 }
 0x18e   : > { %1058 = vrot.lane.b32.xlu1 %v7039_v6, %s8475_s17  ;;  %v7057_v6 = vld [vmem:[%s10140_s1 + $0x18] sm:$0xf] }
 0x18f   : > { %7591 = vmatmul.mubr.msk.bf16.vlgmr.msra.gmra.mrb[4].mxu1 %vm642_vm9, %v7032_v14  ;;  %v1743_v14 = vsel %vm646_vm7, %v8737_v20, 0 }
 0x190   : > { %7602 = vmatprep.mubr.msk.bf16.mxu1 %vm8473_vm8, %v8472_v60 }
 0x191   : > { %1118 = vrot.lane.b32.xlu0 %v7048_v11, %s8474_s18 }
 0x192   : > { %1213 = vrot.lane.b32.xlu1 %v7048_v11, %s8475_s17  ;;  %v7060_v11 = vld [vmem:[%s10140_s1 + $0x4] sm:$0xf] }
 0x195   : > { %1370 = vrot.lane.b32.xlu0 %v7061_v15, %s8474_s18 }
 0x196   : > { %1423 = vrot.lane.b32.xlu1 %v7064_v16, %s8474_s18 }
 0x199   : > { %1473 = vrot.lane.b32.xlu0 %v7061_v15, %s8475_s17 }
 0x19a   : > { %1523 = vrot.lane.b32.xlu1 %v7064_v16, %s8475_s17 }
 0x19d   : > { %1583 = vrot.lane.b32.xlu0 %v7073_v18, %s8474_s18 }
 0x19e   : > { %1678 = vrot.lane.b32.xlu1 %v7073_v18, %s8475_s17  ;;  %v7082_v18 = vld [vmem:[%s10140_s1 + $0x18] sm:$0xf] }
 0x1a1   : > { %1835 = vrot.lane.b32.xlu0 %v7086_v21, %s8474_s18 }
 0x1a2   : > { %1888 = vrot.lane.b32.xlu1 %v7089_v22, %s8474_s18 }
 0x1a5   : > { %1938 = vrot.lane.b32.xlu0 %v7086_v21, %s8475_s17 }
 0x1a6   : > { %1988 = vrot.lane.b32.xlu1 %v7089_v22, %s8475_s17 }
 0x1a9   : > { %2048 = vrot.lane.b32.xlu0 %v7098_v24, %s8474_s18 }
 0x1aa   : > { %2143 = vrot.lane.b32.xlu1 %v7098_v24, %s8475_s17 }
 0x1ad   : > { %2300 = vrot.lane.b32.xlu0 %v7111_v27, %s8474_s18 }
 0x1ae   : > { %2353 = vrot.lane.b32.xlu1 %v7114_v28, %s8474_s18 }
 0x1b1   : > { %2403 = vrot.lane.b32.xlu0 %v7111_v27, %s8475_s17  ;;  %v7072_v27 = vld [vmem:[%s10140_s1 + $0x10] sm:$0xf] }
 0x1b2   : > { %2453 = vrot.lane.b32.xlu1 %v7114_v28, %s8475_s17  ;;  %v7085_v28 = vld [vmem:[%s10140_s1 + $0x4] sm:$0xf] }
 0x1b5   : > { %789 = vperm.xlu0 %8329, %v8601_v0  }
 0x1f7   : > { %v641_v29 = vpop.permute.xlu0 %640 }
 0x1f8   : > { %v903_v30 = vpop.permute.xlu1 %902  ;;  %v648_v31 = vsel %vm646_vm7, %v641_v29, 0 }
 0x1f9   : > { %v908_v32 = vsel %vm646_vm7, %v903_v30, 0  ;;  %7571 = vmatpush3.bf16.msra.mxu0 %v648_v31 }
 0x1fa   : > { %7601 = vmatpush3.bf16.msra.mxu1 %v908_v32  ;;  %7582 = vmatprep.subr.bf16.mxu0 %v8472_v60 }
 0x1fb   : > { %7612 = vmatprep.subr.bf16.mxu1 %v8472_v60  ;;  %v739_v0 = vpop.permute.xlu0 %738 }
 0x1fc   : > { %v744_v35 = vsel %vm646_vm7, %v739_v0, 0  ;;  %7573 = vmatmul.mubr.msk.bf16.vlgmr.msra.gmra.mrb[0].mxu0 %vm642_vm9, %v7023_v33  ;;  %v957_v37 = vpop.permute.xlu1 %956  ;;  %v7076_v33 = vld [vmem:[%s10140_s1 + $0x14] sm:$0xf]  ;;  %v1789_v0 = vsel %vm646_vm7, %v8734_v19, 0 }
 0x1fd   : > { %7603 = vmatmul.mubr.msk.bf16.vlgmr.msra.gmra.mrb[8].mxu1 %vm642_vm9, %v7035_v34  ;;  %7583 = vmatpush3.bf16.msra.mxu0 %v744_v35  ;;  %v962_v48 = vsel %vm646_vm7, %v957_v37, 0  ;;  %v7091_v34 = vld [vmem:[%s10140_s1 + $0x8] sm:$0xf]  ;;  %v1737_v37 = vld [vmem:[%s10140_s1] sm:$0xf] }
 0x1fe   : > { %7584 = vmatprep.mubr.msk.bf16.mxu0 %vm8473_vm8, %v8472_v60  ;;  %7594 = vmatprep.subr.bf16.mxu0 %v8472_v60 }
 0x1ff   : > { %7614 = vmatprep.mubr.msk.bf16.mxu1 %vm8473_vm8, %v8472_v60  ;;  %v1008_v36 = vpop.permute.xlu0 %1007 }
 0x200   : > { %v1013_v38 = vsel %vm646_vm7, %v1008_v36, 0  ;;  %v1059_v43 = vpop.permute.xlu1 %1058 }
 0x201   : > { %7613 = vmatpush3.bf16.msra.mxu1 %v1013_v38  ;;  %v1064_v52 = vsel %vm646_vm7, %v1059_v43, 0  ;;  %v7097_v38 = vld [vmem:[%s10140_s1 + $0x10] sm:$0xf] }
 0x202   : > { %7624 = vmatprep.subr.bf16.mxu1 %v8472_v60 }
 0x203   : > { %v1119_v42 = vpop.permute.xlu0 %1118 }
 0x204   : > { %7585 = vmatmul.mubr.msk.bf16.vlgmr.msra.gmra.mrb[4].mxu0 %vm642_vm9, %v7027_v39  ;;  %v1124_v44 = vsel %vm646_vm7, %v1119_v42, 0  ;;  %v1214_v45 = vpop.permute.xlu1 %1213  ;;  %v7101_v42 = vld [vmem:[%s10140_s1 + $0x14] sm:$0xf] }
 0x205   : > { %7615 = vmatmul.mubr.msk.bf16.vlgmr.msra.gmra.mrb[12].mxu1 %vm642_vm9, %v7041_v40  ;;  %7595 = vmatpush3.bf16.msra.mxu0 %v855_v41  ;;  %v1219_v49 = vsel %vm646_vm7, %v1214_v45, 0  ;;  %v7088_v41 = vld [vmem:[%s10140_s1 + $0x1c] sm:$0xf] }
 0x206   : > { %7596 = vmatprep.mubr.msk.bf16.mxu0 %vm8473_vm8, %v8472_v60  ;;  %7606 = vmatprep.subr.bf16.mxu0 %v8472_v60 }
 0x207   : > { %7625 = vmatpush3.bf16.msra.mxu1 %v1124_v44  ;;  %7626 = vmatprep.mubr.msk.bf16.mxu1 %vm8473_vm8, %v8472_v60  ;;  %v1371_v5 = vpop.permute.xlu0 %1370  ;;  %v2254_v44 = vsel %vm646_vm7, %v8755_v25, 0 }
 0x208   : > { %7636 = vmatprep.subr.bf16.mxu1 %v8472_v60  ;;  %v1424_v54 = vpop.permute.xlu1 %1423  ;;  %v1376_v8 = vsel %vm646_vm7, %v1371_v5, 0 }
 0x209   : > { %v1429_v58 = vsel %vm646_vm7, %v1424_v54, 0 }
 0x20b   : > { %v1474_v10 = vpop.permute.xlu0 %1473 }
 0x20c   : > { %7597 = vmatmul.mubr.msk.bf16.vlgmr.msra.gmra.mrb[8].mxu0 %vm642_vm9, %v802_v46  ;;  %v1524_v59 = vpop.permute.xlu1 %1523  ;;  %v1479_v13 = vsel %vm646_vm7, %v1474_v10, 0 }
 0x20d   : > { %7627 = vmatmul.mubr.msk.bf16.vlgmr.msra.gmra.mrb[16].mxu1 %vm642_vm9, %v7047_v47  ;;  %7607 = vmatpush3.bf16.msra.mxu0 %v962_v48  ;;  %v1529_v3 = vsel %vm646_vm7, %v1524_v59, 0  ;;  %v2208_v59 = vsel %vm646_vm7, %v8758_v26, 0  ;;  %v7107_v26 = vld [vmem:[%s10140_s1 + $0x18] sm:$0xf] }
 0x20e   : > { %7608 = vmatprep.mubr.msk.bf16.mxu0 %vm8473_vm8, %v8472_v60  ;;  %7618 = vmatprep.subr.bf16.mxu0 %v8472_v60 }
 0x20f   : > { %7637 = vmatpush3.bf16.msra.mxu1 %v1219_v49  ;;  %7638 = vmatprep.mubr.msk.bf16.mxu1 %vm8473_vm8, %v8472_v60  ;;  %v1584_v15 = vpop.permute.xlu0 %1583  ;;  %v7093_v49 = vld [vmem:[%s10140_s1 + $0x20] sm:$0xf] }
 0x210   : > { %7648 = vmatprep.subr.bf16.mxu1 %v8472_v60  ;;  %v1589_v20 = vsel %vm646_vm7, %v1584_v15, 0  ;;  %v1679_v22 = vpop.permute.xlu1 %1678 }
 0x211   : > { %v1684_v29 = vsel %vm646_vm7, %v1679_v22, 0 }
 0x213   : > { %v1836_v16 = vpop.permute.xlu0 %1835 }
 0x214   : > { %7609 = vmatmul.mubr.msk.bf16.vlgmr.msra.gmra.mrb[12].mxu0 %vm642_vm9, %v7038_v50  ;;  %v1841_v21 = vsel %vm646_vm7, %v1836_v16, 0  ;;  %v1889_v31 = vpop.permute.xlu1 %1888  ;;  %v2202_v50 = vld [vmem:[%s10140_s1] sm:$0xf] }
 0x215   : > { %7639 = vmatmul.mubr.msk.bf16.vlgmr.msra.gmra.mrb[20].mxu1 %vm642_vm9, %v7051_v51  ;;  %7619 = vmatpush3.bf16.msra.mxu0 %v1064_v52  ;;  %v1894_v39 = vsel %vm646_vm7, %v1889_v31, 0  ;;  %v2100_v51 = vsel %vm646_vm7, %v8748_v23, 0 }
 0x216   : > { %7620 = vmatprep.mubr.msk.bf16.mxu0 %vm8473_vm8, %v8472_v60  ;;  %7630 = vmatprep.subr.bf16.mxu0 %v8472_v60 }
 0x217   : > { %7649 = vmatpush3.bf16.msra.mxu1 %v1324_v53  ;;  %7650 = vmatprep.mubr.msk.bf16.mxu1 %vm8473_vm8, %v8472_v60  ;;  %v1939_v24 = vpop.permute.xlu0 %1938 }
 0x218   : > { %7660 = vmatprep.subr.bf16.mxu1 %v8472_v60  ;;  %v1944_v30 = vsel %vm646_vm7, %v1939_v24, 0  ;;  %v1989_v36 = vpop.permute.xlu1 %1988 }
 0x219   : > { %v1994_v43 = vsel %vm646_vm7, %v1989_v36, 0 }
 0x21b   : > { %v2049_v32 = vpop.permute.xlu0 %2048 }
 0x21c   : > { %7621 = vmatmul.mubr.msk.bf16.vlgmr.msra.gmra.mrb[16].mxu0 %vm642_vm9, %v7043_v55  ;;  %v2054_v35 = vsel %vm646_vm7, %v2049_v32, 0  ;;  %v2144_v19 = vpop.permute.xlu1 %2143 }
 0x21d   : > { %7651 = vmatmul.mubr.msk.bf16.vlgmr.msra.gmra.mrb[24].mxu1 %vm642_vm9, %v1272_v56  ;;  %7631 = vmatpush3.bf16.msra.mxu0 %v1170_v57  ;;  %v2149_v40 = vsel %vm646_vm7, %v2144_v19, 0  ;;  %v7096_v57 = vld [vmem:[%s10140_s1 + $0xc] sm:$0xf] }
 0x21e   : > { %7632 = vmatprep.mubr.msk.bf16.mxu0 %vm8473_vm8, %v8472_v60  ;;  %7642 = vmatprep.subr.bf16.mxu0 %v8472_v60 }
 0x21f   : > { %7661 = vmatpush3.bf16.msra.mxu1 %v1429_v58  ;;  %7662 = vmatprep.mubr.msk.bf16.mxu1 %vm8473_vm8, %v8472_v60  ;;  %v7113_v58 = vld [vmem:[%s10140_s1 + $0x1c] sm:$0xf] }
 0x220   : > { %7672 = vmatprep.subr.bf16.mxu1 %v8472_v60  ;;  %v2354_v25 = vpop.permute.xlu1 %2353 }
 0x221   : > { %v2359_v52 = vsel %vm646_vm7, %v2354_v25, 0 }
 0x224   : > { %7633 = vmatmul.mubr.msk.bf16.vlgmr.msra.gmra.mrb[20].mxu0 %vm642_vm9, %v7046_v61  ;;  %v2454_v55 = vpop.permute.xlu1 %2453 }
 0x225   : > { %7663 = vmatmul.mubr.msk.bf16.vlgmr.msra.gmra.mrb[28].mxu1 %vm642_vm9, %v7063_v62  ;;  %7643 = vmatpush3.bf16.msra.mxu0 %v1278_v63  ;;  %v2459_v61 = vsel %vm646_vm7, %v2454_v55, 0  ;;  %v2301_v62 = vpop.permute.xlu0 %2300  ;;  %v7118_v63 = vld [vmem:[%s10140_s1 + $0x20] sm:$0xf] }
 0x226   : > { %7644 = vmatprep.mubr.msk.bf16.mxu0 %vm8473_vm8, %v8472_v60  ;;  %7654 = vmatprep.subr.bf16.mxu0 %v8472_v60 }
 0x227   : > { %7673 = vmatpush3.bf16.msra.mxu1 %v1529_v3  ;;  %7674 = vmatprep.mubr.msk.bf16.mxu1 %vm8473_vm8, %v8472_v60  ;;  %v2306_v3 = vsel %vm646_vm7, %v2301_v62, 0 }
 0x228   : > { %7684 = vmatprep.subr.bf16.mxu1 %v8472_v60 }
 0x229   : > { %v2404_v5 = vpop.permute.xlu0 %2403 }
 0x22c   : > { %7645 = vmatmul.mubr.msk.bf16.vlgmr.msra.gmra.mrb[24].mxu0 %vm642_vm9, %v7057_v6  ;;  %v7110_v6 = vld [vmem:[%s10140_s1 + $0x4] sm:$0xf] }
 0x22d   : > { %7675 = vmatmul.mubr.msk.bf16.vlgmr.msra.gmra.mrb[32].mxu1 %vm642_vm9, %v7068_v7  ;;  %7655 = vmatpush3.bf16.msra.mxu0 %v1376_v8  ;;  %v2409_v7 = vsel %vm646_vm7, %v2404_v5, 0  ;;  %v7116_v8 = vld [vmem:[%s10140_s1 + $0x8] sm:$0xf] }
 0x22e   : > { %7656 = vmatprep.mubr.msk.bf16.mxu0 %vm8473_vm8, %v8472_v60  ;;  %7666 = vmatprep.subr.bf16.mxu0 %v8472_v60 }
 0x22f   : > { %7685 = vmatpush3.bf16.msra.mxu1 %v1635_v9  ;;  %7686 = vmatprep.mubr.msk.bf16.mxu1 %vm8473_vm8, %v8472_v60 }
 0x230   : > { %7696 = vmatprep.subr.bf16.mxu1 %v8472_v60 }
 0x234   : > { %7657 = vmatmul.mubr.msk.bf16.vlgmr.msra.gmra.mrb[28].mxu0 %vm642_vm9, %v7060_v11 }
 0x235   : > { %7687 = vmatmul.mubr.msk.bf16.vlgmr.msra.gmra.mrb[36].mxu1 %vm642_vm9, %v7071_v12  ;;  %7667 = vmatpush3.bf16.msra.mxu0 %v1479_v13 }
 0x236   : > { %7668 = vmatprep.mubr.msk.bf16.mxu0 %vm8473_vm8, %v8472_v60  ;;  %7678 = vmatprep.subr.bf16.mxu0 %v8472_v60 }
 0x237   : > { %7697 = vmatpush3.bf16.msra.mxu1 %v1743_v14  ;;  %7698 = vmatprep.mubr.msk.bf16.mxu1 %vm8473_vm8, %v8472_v60 }
 0x238   : > { %7708 = vmatprep.subr.bf16.mxu1 %v8472_v60 }
 0x23c   : > { %7669 = vmatmul.mubr.msk.bf16.vlgmr.msra.gmra.mrb[32].mxu0 %vm642_vm9, %v7066_v17 }
 0x23d   : > { %7699 = vmatmul.mubr.msk.bf16.vlgmr.msra.gmra.mrb[40].mxu1 %vm642_vm9, %v7082_v18  ;;  %7679 = vmatpush3.bf16.msra.mxu0 %v1589_v20  ;;  %v9047_v18 = vpop.permute.xlu0 %789 }
 0x23e   : > { %7680 = vmatprep.mubr.msk.bf16.mxu0 %vm8473_vm8, %v8472_v60  ;;  %7690 = vmatprep.subr.bf16.mxu0 %v8472_v60 }
 0x23f   : > { %7709 = vmatpush3.bf16.msra.mxu1 %v1841_v21  ;;  %7710 = vmatprep.mubr.msk.bf16.mxu1 %vm8473_vm8, %v8472_v60 }
 0x240   : > { %7720 = vmatprep.subr.bf16.mxu1 %v8472_v60 }
 0x244   : > { %7681 = vmatmul.mubr.msk.bf16.vlgmr.msra.gmra.mrb[36].mxu0 %vm642_vm9, %v7072_v27 }
 0x245   : > { %7711 = vmatmul.mubr.msk.bf16.vlgmr.msra.gmra.mrb[44].mxu1 %vm642_vm9, %v7085_v28  ;;  %7691 = vmatpush3.bf16.msra.mxu0 %v1684_v29 }
 0x246   : > { %7692 = vmatprep.mubr.msk.bf16.mxu0 %vm8473_vm8, %v8472_v60  ;;  %7702 = vmatprep.subr.bf16.mxu0 %v8472_v60 }
 0x247   : > { %7721 = vmatpush3.bf16.msra.mxu1 %v1944_v30  ;;  %7722 = vmatprep.mubr.msk.bf16.mxu1 %vm8473_vm8, %v8472_v60 }
 0x248   : > { %7732 = vmatprep.subr.bf16.mxu1 %v8472_v60 }
 0x24c   : > { %7693 = vmatmul.mubr.msk.bf16.vlgmr.msra.gmra.mrb[40].mxu0 %vm642_vm9, %v7076_v33 }
 0x24d   : > { %7723 = vmatmul.mubr.msk.bf16.vlgmr.msra.gmra.mrb[48].mxu1 %vm642_vm9, %v7091_v34  ;;  %7703 = vmatpush3.bf16.msra.mxu0 %v1789_v0 }
 0x24e   : > { %7704 = vmatprep.mubr.msk.bf16.mxu0 %vm8473_vm8, %v8472_v60  ;;  %7714 = vmatprep.subr.bf16.mxu0 %v8472_v60 }
 0x24f   : > { %7733 = vmatpush3.bf16.msra.mxu1 %v2054_v35  ;;  %7734 = vmatprep.mubr.msk.bf16.mxu1 %vm8473_vm8, %v8472_v60 }
 0x250   : > { %7744 = vmatprep.subr.bf16.mxu1 %v8472_v60 }
 0x254   : > { %7705 = vmatmul.mubr.msk.bf16.vlgmr.msra.gmra.mrb[44].mxu0 %vm642_vm9, %v1737_v37 }
 0x255   : > { %7735 = vmatmul.mubr.msk.bf16.vlgmr.msra.gmra.mrb[52].mxu1 %vm642_vm9, %v7097_v38  ;;  %7715 = vmatpush3.bf16.msra.mxu0 %v1894_v39 }
 0x256   : > { %7716 = vmatprep.mubr.msk.bf16.mxu0 %vm8473_vm8, %v8472_v60  ;;  %7726 = vmatprep.subr.bf16.mxu0 %v8472_v60 }
 0x257   : > { %7745 = vmatpush3.bf16.msra.mxu1 %v2149_v40  ;;  %7746 = vmatprep.mubr.msk.bf16.mxu1 %vm8473_vm8, %v8472_v60 }
 0x258   : > { %7756 = vmatprep.subr.bf16.mxu1 %v8472_v60 }
 0x25a   : > { %v730_v45 = vpop.f32.mrb[0].mxu1 }
 0x25b   : > { %v7580_v46 = vpop.f32.mrb[1].mxu1 }
 0x25c   : > { %7717 = vmatmul.mubr.msk.bf16.vlgmr.msra.gmra.mrb[48].mxu0 %vm642_vm9, %v7088_v41  ;;  %v733_v47 = vpop.f32.mrb[2].mxu1 }
 0x25d   : > { %7747 = vmatmul.mubr.msk.bf16.vlgmr.msra.gmra.mrb[56].mxu1 %vm642_vm9, %v7101_v42  ;;  %7727 = vmatpush3.bf16.msra.mxu0 %v1994_v43  ;;  %v7581_v48 = vpop.f32.mrb[3].mxu1 }
 0x25e   : > { %7728 = vmatprep.mubr.msk.bf16.mxu0 %vm8473_vm8, %v8472_v60  ;;  %7738 = vmatprep.subr.bf16.mxu0 %v8472_v60 }
 0x25f   : > { %7757 = vmatpush3.bf16.msra.mxu1 %v2254_v44  ;;  %7758 = vmatprep.mubr.msk.bf16.mxu1 %vm8473_vm8, %v8472_v60 }
 0x260   : > { %7768 = vmatprep.subr.bf16.mxu1 %v8472_v60 }
 0x262   : > { %v845_v53 = vpop.f32.mrb[4].mxu1 }
 0x263   : > { %v7592_v54 = vpop.f32.mrb[5].mxu1 }
 0x264   : > { %7729 = vmatmul.mubr.msk.bf16.vlgmr.msra.gmra.mrb[52].mxu0 %vm642_vm9, %v7093_v49  ;;  %v848_v23 = vpop.f32.mrb[6].mxu1 }
 0x265   : > { %7759 = vmatmul.mubr.msk.bf16.vlgmr.msra.gmra.mrb[60].mxu1 %vm642_vm9, %v2202_v50  ;;  %7739 = vmatpush3.bf16.msra.mxu0 %v2100_v51  ;;  %v7593_v56 = vpop.f32.mrb[7].mxu1 }
 0x266   : > { %7740 = vmatprep.mubr.msk.bf16.mxu0 %vm8473_vm8, %v8472_v60  ;;  %7750 = vmatprep.subr.bf16.mxu0 %v8472_v60 }
 0x267   : > { %7769 = vmatpush3.bf16.msra.mxu1 %v2359_v52  ;;  %7770 = vmatprep.mubr.msk.bf16.mxu1 %vm8473_vm8, %v8472_v60 }
 0x268   : > { %7780 = vmatprep.subr.bf16.mxu1 %v8472_v60 }
 0x26c   : > { %7741 = vmatmul.mubr.msk.bf16.vlgmr.msra.gmra.mrb[56].mxu0 %vm642_vm9, %v7096_v57 }
 0x26d   : > { %7771 = vmatmul.mubr.msk.bf16.vlgmr.msra.gmra.mrb[64].mxu1 %vm642_vm9, %v7113_v58  ;;  %7751 = vmatpush3.bf16.msra.mxu0 %v2208_v59 }
 0x26e   : > { %7752 = vmatprep.mubr.msk.bf16.mxu0 %vm8473_vm8, %v8472_v60  ;;  %7762 = vmatprep.subr.bf16.mxu0 %v8472_v60 }
 0x26f   : > { %7781 = vmatpush3.bf16.msra.mxu1 %v2459_v61  ;;  %7782 = vmatprep.mubr.msk.bf16.mxu1 %vm8473_vm8, %v8472_v60 }
 0x274   : > { %7753 = vmatmul.mubr.msk.bf16.vlgmr.msra.gmra.mrb[60].mxu0 %vm642_vm9, %v7107_v26 }
 0x275   : > { %7783 = vmatmul.mubr.msk.bf16.vlgmr.msra.gmra.mrb[68].mxu1 %vm642_vm9, %v7118_v63  ;;  %7763 = vmatpush3.bf16.msra.mxu0 %v2306_v3 }
 0x276   : > { %7764 = vmatprep.mubr.msk.bf16.mxu0 %vm8473_vm8, %v8472_v60  ;;  %7774 = vmatprep.subr.bf16.mxu0 %v8472_v60 }
 0x27c   : > { %7765 = vmatmul.mubr.msk.bf16.vlgmr.msra.gmra.mrb[64].mxu0 %vm642_vm9, %v7110_v6 }
 0x27d   : > { %7775 = vmatpush3.bf16.msra.mxu0 %v2409_v7  ;;  %7776 = vmatprep.mubr.msk.bf16.mxu0 %vm8473_vm8, %v8472_v60 }
 0x284   : > { %7777 = vmatmul.mubr.msk.bf16.vlgmr.msra.gmra.mrb[68].mxu0 %vm642_vm9, %v7116_v8 }
 0x2cf   : > { %v684_v9 = vpop.f32.mrb[0].mxu0 }
 0x2d0   : > { %v944_v10 = vpop.f32.mrb[8].mxu1  ;;  %v731_v11 = vadd.f32 %v730_v45, %v684_v9  ;;  %v7574_v12 = vpop.f32.mrb[1].mxu0 }
 0x2d1   : > { %v7604_v13 = vpop.f32.mrb[9].mxu1  ;;  %v687_v14 = vpop.f32.mrb[2].mxu0 }
 0x2d2   : > { %v947_v15 = vpop.f32.mrb[10].mxu1  ;;  %v7575_v16 = vpop.f32.mrb[3].mxu0 }
 0x2d3   : > { %v7605_v17 = vpop.f32.mrb[11].mxu1 }
 0x2d7   : > { %v780_v20 = vpop.f32.mrb[4].mxu0 }
 0x2d8   : > { %v1049_v21 = vpop.f32.mrb[12].mxu1  ;;  %v786_v22 = vadd.f32 %v780_v20, %v731_v11  ;;  %v7586_v24 = vpop.f32.mrb[5].mxu0 }
 0x2d9   : > { %v7616_v27 = vpop.f32.mrb[13].mxu1  ;;  %v783_v28 = vpop.f32.mrb[6].mxu0 }
 0x2da   : > { %v1052_v29 = vpop.f32.mrb[14].mxu1  ;;  %v792_v30 = vadd.f32 %v9047_v18, %v786_v22  ;;  %v7587_v31 = vpop.f32.mrb[7].mxu0 }
 0x2db   : > { %v7617_v32 = vpop.f32.mrb[15].mxu1 }
 0x2dc   : > { %v793_v33 = vsel %vm8612_vm3, %v792_v30, 0.0 }
 0x2dd   : > { %v794_v34 = vpack.c.bf16 %v793_v33, %v793_v33 }
 0x2df   : > { %796 = vst.msk [vmem:[#allocation2 + $0x4] sm:$0xf] %vm299_vm0, %v794_v34  ;;  %v891_v0 = vpop.f32.mrb[8].mxu0 }
 0x2e0   : > { %v1160_v35 = vpop.f32.mrb[16].mxu1  ;;  %v892_v36 = vadd.f32 %v891_v0, %v845_v53  ;;  %v7598_v19 = vpop.f32.mrb[9].mxu0 }
 0x2e1   : > { %v7628_v37 = vpop.f32.mrb[17].mxu1  ;;  %v894_v38 = vpop.f32.mrb[10].mxu0 }
 0x2e2   : > { %v1163_v39 = vpop.f32.mrb[18].mxu1  ;;  %v950_v40 = vadd.f32 %v944_v10, %v892_v36  ;;  %v7599_v41 = vpop.f32.mrb[11].mxu0 }
 0x2e3   : > { %v7629_v42 = vpop.f32.mrb[19].mxu1 }
 0x2e7   : > { %v998_v43 = vpop.f32.mrb[12].mxu0 }
 0x2e8   : > { %v1255_v44 = vpop.f32.mrb[20].mxu1  ;;  %v1004_v45 = vadd.f32 %v998_v43, %v950_v40  ;;  %v7610_v46 = vpop.f32.mrb[13].mxu0 }
 0x2e9   : > { %v7640_v47 = vpop.f32.mrb[21].mxu1  ;;  %v1001_v25 = vpop.f32.mrb[14].mxu0 }
 0x2ea   : > { %v1258_v48 = vpop.f32.mrb[22].mxu1  ;;  %v1055_v49 = vadd.f32 %v1049_v21, %v1004_v45  ;;  %v7611_v50 = vpop.f32.mrb[15].mxu0 }
 0x2eb   : > { %v7641_v51 = vpop.f32.mrb[23].mxu1 }
 0x2ef   : > { %v1100_v52 = vpop.f32.mrb[16].mxu0 }
 0x2f0   : > { %v1360_v54 = vpop.f32.mrb[24].mxu1  ;;  %v1106_v53 = vadd.f32 %v1100_v52, %v1055_v49  ;;  %v7622_v23 = vpop.f32.mrb[17].mxu0 }
 0x2f1   : > { %v7652_v55 = vpop.f32.mrb[25].mxu1  ;;  %v1103_v56 = vpop.f32.mrb[18].mxu0 }
 0x2f2   : > { %v1363_v57 = vpop.f32.mrb[26].mxu1  ;;  %v1107_v58 = vadd.f32 %v1106_v53, %v9047_v18  ;;  %v7623_v59 = vpop.f32.mrb[19].mxu0 }
 0x2f3   : > { %v7653_v61 = vpop.f32.mrb[27].mxu1 }
 0x2f4   : > { %v1108_v62 = vsel %vm8612_vm3, %v1107_v58, 0.0 }
 0x2f5   : > { %v1109_v26 = vpack.c.bf16 %v1108_v62, %v1108_v62 }
 0x2f7   : > { %1111 = vst.msk [vmem:[#allocation2 + $0x8] sm:$0xf] %vm299_vm0, %v1109_v26  ;;  %v1206_v63 = vpop.f32.mrb[20].mxu0 }
 0x2f8   : > { %v1465_v3 = vpop.f32.mrb[28].mxu1  ;;  %v1207_v5 = vadd.f32 %v1206_v63, %v1160_v35  ;;  %v7634_v6 = vpop.f32.mrb[21].mxu0 }
 0x2f9   : > { %v7664_v7 = vpop.f32.mrb[29].mxu1  ;;  %v1209_v8 = vpop.f32.mrb[22].mxu0 }
 0x2fa   : > { %v1468_v9 = vpop.f32.mrb[30].mxu1  ;;  %v1261_v10 = vadd.f32 %v1255_v44, %v1207_v5  ;;  %v7635_v11 = vpop.f32.mrb[23].mxu0 }
 0x2fb   : > { %v7665_v12 = vpop.f32.mrb[31].mxu1 }
 0x2fc   : > { %v1262_v13 = vadd.f32 %v1261_v10, %v9047_v18 }
 0x2fe   : > { %v1263_v14 = vsel %vm8612_vm3, %v1262_v13, 0.0 }
 0x2ff   : > { %v1264_v15 = vpack.c.bf16 %v1263_v14, %v1263_v14  ;;  %v1314_v16 = vpop.f32.mrb[24].mxu0 }
 0x300   : > { %v1565_v17 = vpop.f32.mrb[32].mxu1  ;;  %v1361_v20 = vadd.f32 %v1360_v54, %v1314_v16  ;;  %v7646_v21 = vpop.f32.mrb[25].mxu0 }
 0x301   : > { %v7676_v22 = vpop.f32.mrb[33].mxu1  ;;  %1266 = vst.msk [vmem:[#allocation2 + $0xc] sm:$0xf] %vm299_vm0, %v1264_v15  ;;  %v1317_v24 = vpop.f32.mrb[26].mxu0 }
 0x302   : > { %v1568_v27 = vpop.f32.mrb[34].mxu1  ;;  %v7647_v28 = vpop.f32.mrb[27].mxu0 }
 0x303   : > { %v7677_v29 = vpop.f32.mrb[35].mxu1 }
 0x307   : > { %v1412_v30 = vpop.f32.mrb[28].mxu0 }
 0x308   : > { %v1671_v31 = vpop.f32.mrb[36].mxu1  ;;  %v1418_v32 = vadd.f32 %v1412_v30, %v1361_v20  ;;  %v7658_v33 = vpop.f32.mrb[29].mxu0 }
 0x309   : > { %v7688_v34 = vpop.f32.mrb[37].mxu1  ;;  %v1415_v0 = vpop.f32.mrb[30].mxu0 }
 0x30a   : > { %v1674_v35 = vpop.f32.mrb[38].mxu1  ;;  %v1471_v36 = vadd.f32 %v1465_v3, %v1418_v32  ;;  %v7659_v19 = vpop.f32.mrb[31].mxu0 }
 0x30b   : > { %v7689_v37 = vpop.f32.mrb[39].mxu1 }
 0x30f   : > { %v1515_v38 = vpop.f32.mrb[32].mxu0 }
 0x310   : > { %v1779_v39 = vpop.f32.mrb[40].mxu1  ;;  %v1521_v40 = vadd.f32 %v1515_v38, %v1471_v36  ;;  %v7670_v41 = vpop.f32.mrb[33].mxu0 }
 0x311   : > { %v7700_v42 = vpop.f32.mrb[41].mxu1  ;;  %v1518_v43 = vpop.f32.mrb[34].mxu0 }
 0x312   : > { %v1782_v44 = vpop.f32.mrb[42].mxu1  ;;  %v1571_v45 = vadd.f32 %v1565_v17, %v1521_v40  ;;  %v7671_v46 = vpop.f32.mrb[35].mxu0 }
 0x313   : > { %v7701_v47 = vpop.f32.mrb[43].mxu1 }
 0x314   : > { %v1572_v25 = vadd.f32 %v1571_v45, %v9047_v18 }
 0x316   : > { %v1573_v48 = vsel %vm8612_vm3, %v1572_v25, 0.0 }
 0x317   : > { %v1574_v49 = vpack.c.bf16 %v1573_v48, %v1573_v48  ;;  %v1625_v50 = vpop.f32.mrb[36].mxu0 }
 0x318   : > { %v1877_v51 = vpop.f32.mrb[44].mxu1  ;;  %v1672_v52 = vadd.f32 %v1671_v31, %v1625_v50  ;;  %v7682_v54 = vpop.f32.mrb[37].mxu0 }
 0x319   : > { %v7712_v53 = vpop.f32.mrb[45].mxu1  ;;  %1576 = vst.msk [vmem:[#allocation2 + $0x10] sm:$0xf] %vm299_vm0, %v1574_v49  ;;  %v1628_v23 = vpop.f32.mrb[38].mxu0 }
 0x31a   : > { %v1880_v55 = vpop.f32.mrb[46].mxu1  ;;  %v7683_v56 = vpop.f32.mrb[39].mxu0 }
 0x31b   : > { %v7713_v57 = vpop.f32.mrb[47].mxu1 }
 0x31f   : > { %v1720_v58 = vpop.f32.mrb[40].mxu0 }
 0x320   : > { %v1980_v59 = vpop.f32.mrb[48].mxu1  ;;  %v1726_v61 = vadd.f32 %v1720_v58, %v1672_v52  ;;  %v7694_v62 = vpop.f32.mrb[41].mxu0 }
 0x321   : > { %v7724_v26 = vpop.f32.mrb[49].mxu1  ;;  %v1723_v63 = vpop.f32.mrb[42].mxu0 }
 0x322   : > { %v1983_v3 = vpop.f32.mrb[50].mxu1  ;;  %v1727_v5 = vadd.f32 %v1726_v61, %v9047_v18  ;;  %v7695_v6 = vpop.f32.mrb[43].mxu0 }
 0x323   : > { %v7725_v7 = vpop.f32.mrb[51].mxu1 }
 0x324   : > { %v1728_v8 = vsel %vm8612_vm3, %v1727_v5, 0.0 }
 0x325   : > { %v1729_v9 = vpack.c.bf16 %v1728_v8, %v1728_v8 }
 0x327   : > { %1731 = vst.msk [vmem:[#allocation2 + $0x14] sm:$0xf] %vm299_vm0, %v1729_v9  ;;  %v1825_v10 = vpop.f32.mrb[44].mxu0 }
 0x328   : > { %v2090_v11 = vpop.f32.mrb[52].mxu1  ;;  %v1826_v12 = vadd.f32 %v1825_v10, %v1779_v39  ;;  %v7706_v13 = vpop.f32.mrb[45].mxu0 }
 0x329   : > { %v7736_v14 = vpop.f32.mrb[53].mxu1  ;;  %v1828_v15 = vpop.f32.mrb[46].mxu0 }
 0x32a   : > { %v2093_v16 = vpop.f32.mrb[54].mxu1  ;;  %v1883_v17 = vadd.f32 %v1877_v51, %v1826_v12  ;;  %v7707_v20 = vpop.f32.mrb[47].mxu0 }
 0x32b   : > { %v7737_v21 = vpop.f32.mrb[55].mxu1 }
 0x32f   : > { %v1930_v22 = vpop.f32.mrb[48].mxu0 }
 0x330   : > { %v2185_v24 = vpop.f32.mrb[56].mxu1  ;;  %v1936_v27 = vadd.f32 %v1930_v22, %v1883_v17  ;;  %v7718_v28 = vpop.f32.mrb[49].mxu0  ;;  %v7121_v22 = vld [vmem:[%s8670_s13 + $0x10] sm:$0xf] (!%p7120_p0)  ;;  %s8479_s13 = smov (!%p7120_p0), 126  }
 0x331   : > { %v7748_v29 = vpop.f32.mrb[57].mxu1  ;;  %v1933_v30 = vpop.f32.mrb[50].mxu0  ;;  %v2569_v28 = vsel (!%p7120_p0), %vm646_vm7, %v7121_v22, 0 }
 0x332   : > { %v2188_v31 = vpop.f32.mrb[58].mxu1  ;;  %v1986_v32 = vadd.f32 %v1980_v59, %v1936_v27  ;;  %v7719_v33 = vpop.f32.mrb[51].mxu0  ;;  %v8476_v27 = vmov (!%p7120_p0), 0.0   ;;  %v7122_v29 = vld [vmem:[%s10140_s1 + $0xc] sm:$0xf] (!%p7120_p0) }
 0x333   : > { %v7749_v34 = vpop.f32.mrb[59].mxu1  ;;  %7786 = vmatprep.subr.bf16.mxu0 (!%p7120_p0), %v8476_v27  ;;  %7792 = vmatprep.subr.bf16.mxu1 (!%p7120_p0), %v8476_v27 }
 0x334   : > { %7793 = vmatpush3.bf16.msra.mxu1 (!%p7120_p0), %v2569_v28  ;;  %7788 = vmatprep.mubr.msk.bf16.mxu0 (!%p7120_p0), %vm8477_vm10, %v8476_v27 }
 0x335   : > { %7794 = vmatprep.mubr.msk.bf16.mxu1 (!%p7120_p0), %vm8477_vm10, %v8476_v27 }
 0x337   : > { %v2030_v0 = vpop.f32.mrb[52].mxu0  ;;  %7795 = vmatmul.mubr.msk.bf16.vlgmr.msra.gmra.mrb[0].mxu1 (!%p7120_p0), %vm642_vm9, %v7122_v29 }
 0x338   : > { %v2290_v35 = vpop.f32.mrb[60].mxu1  ;;  %v2036_v36 = vadd.f32 %v2030_v0, %v1986_v32  ;;  %v7730_v19 = vpop.f32.mrb[53].mxu0  ;;  %v7123_v32 = vld [vmem:[%s10140_s1 + $0x10] sm:$0xf] (!%p7120_p0)  ;;  %v7127_v0 = vld [vmem:[%s10140_s1 + $0x14] sm:$0xf] (!%p7120_p0) }
 0x339   : > { %v7760_v37 = vpop.f32.mrb[61].mxu1  ;;  %v2033_v38 = vpop.f32.mrb[54].mxu0 }
 0x33a   : > { %v2293_v39 = vpop.f32.mrb[62].mxu1  ;;  %v2037_v40 = vadd.f32 %v2036_v36, %v9047_v18  ;;  %v7731_v41 = vpop.f32.mrb[55].mxu0 }
 0x33b   : > { %v7761_v42 = vpop.f32.mrb[63].mxu1 }
 0x33c   : > { %v2038_v43 = vsel %vm8612_vm3, %v2037_v40, 0.0 }
 0x33d   : > { %v2039_v44 = vpack.c.bf16 %v2038_v43, %v2038_v43 }
 0x33f   : > { %2041 = vst.msk [vmem:[#allocation2 + $0x18] sm:$0xf] %vm299_vm0, %v2039_v44  ;;  %v2136_v45 = vpop.f32.mrb[56].mxu0 }
 0x340   : > { %v2395_v46 = vpop.f32.mrb[64].mxu1  ;;  %v2137_v47 = vadd.f32 %v2136_v45, %v2090_v11  ;;  %v7742_v25 = vpop.f32.mrb[57].mxu0 }
 0x341   : > { %v7772_v48 = vpop.f32.mrb[65].mxu1  ;;  %v2139_v49 = vpop.f32.mrb[58].mxu0 }
 0x342   : > { %v2398_v50 = vpop.f32.mrb[66].mxu1  ;;  %v2191_v51 = vadd.f32 %v2185_v24, %v2137_v47  ;;  %v7743_v52 = vpop.f32.mrb[59].mxu0  ;;  %v7124_v24 = vcombine.low (!%p7120_p0), %v7121_v22, %v7121_v22 }
 0x343   : > { %v7773_v54 = vpop.f32.mrb[67].mxu1 }
 0x344   : > { %v2192_v53 = vadd.f32 %v2191_v51, %v9047_v18  ;;  %2517 = vrot.lane.b32.xlu0 (!%p7120_p0), %v7124_v24, %s8478_s20 }
 0x346   : > { %v2193_v23 = vsel %vm8612_vm3, %v2192_v53, 0.0 }
 0x347   : > { %v2194_v55 = vpack.c.bf16 %v2193_v23, %v2193_v23  ;;  %v2244_v56 = vpop.f32.mrb[60].mxu0 }
 0x348   : > { %v2495_v57 = vpop.f32.mrb[68].mxu1  ;;  %v2291_v58 = vadd.f32 %v2290_v35, %v2244_v56  ;;  %v7754_v59 = vpop.f32.mrb[61].mxu0  ;;  %2612 = vrot.lane.b32.xlu0 (!%p7120_p0), %v7124_v24, %s8479_s13 }
 0x349   : > { %v7784_v61 = vpop.f32.mrb[69].mxu1  ;;  %2196 = vst.msk [vmem:[#allocation2 + $0x1c] sm:$0xf] %vm299_vm0, %v2194_v55  ;;  %v2247_v62 = vpop.f32.mrb[62].mxu0 }
 0x34a   : > { %v2498_v26 = vpop.f32.mrb[70].mxu1  ;;  %v7755_v63 = vpop.f32.mrb[63].mxu0 }
 0x34b   : > { %v7785_v3 = vpop.f32.mrb[71].mxu1 }
 0x34f   : > { %v2342_v5 = vpop.f32.mrb[64].mxu0 }
 0x350   : > { %v2348_v6 = vadd.f32 %v2342_v5, %v2291_v58  ;;  %v7766_v7 = vpop.f32.mrb[65].mxu0 }
 0x351   : > { %v2345_v8 = vpop.f32.mrb[66].mxu0 }
 0x352   : > { %v2401_v9 = vadd.f32 %v2395_v46, %v2348_v6  ;;  %v7767_v10 = vpop.f32.mrb[67].mxu0 }
 0x357   : > { %v2445_v11 = vpop.f32.mrb[68].mxu0 }
 0x358   : > { %v2451_v12 = vadd.f32 %v2445_v11, %v2401_v9  ;;  %v7778_v13 = vpop.f32.mrb[69].mxu0 }
 0x359   : > { %v2448_v14 = vpop.f32.mrb[70].mxu0 }
 0x35a   : > { %v2501_v15 = vadd.f32 %v2495_v57, %v2451_v12  ;;  %v7779_v16 = vpop.f32.mrb[71].mxu0 }
 0x35b   : > { %2510 = sbr.rel (%p7120_p0) target bundleno = 1183 (0x49f), region = 56 }
 0x35c   : > { %v2502_v17 = vadd.f32 %v2501_v15, %v9047_v18 }
 0x35e   : > { %v2503_v20 = vsel %vm8612_vm3, %v2502_v17, 0.0 }
 0x35f   : > { %v2504_v21 = vpack.c.bf16 %v2503_v20, %v2503_v20 }
 0x361   : > { %2506 = vst.msk [vmem:[#allocation2 + $0x20] sm:$0xf] %vm299_vm0, %v2504_v21 }
 0x3b6   : > { %v2518_v30 = vpop.permute.xlu0 %2517 }
 0x3b7   : > { %v2523_v31 = vsel %vm646_vm7, %v2518_v30, 0 }
 0x3b8   : > { %7787 = vmatpush3.bf16.msra.mxu0 %v2523_v31 }
 0x3b9   : > { %7798 = vmatprep.subr.bf16.mxu0 %v8476_v27 }
 0x3ba   : > { %v2613_v33 = vpop.permute.xlu0 %2612 }
 0x3bb   : > { %v2618_v34 = vsel %vm646_vm7, %v2613_v33, 0  ;;  %7789 = vmatmul.mubr.msk.bf16.vlgmr.msra.gmra.mrb[0].mxu0 %vm642_vm9, %v7123_v32 }
 0x3bc   : > { %7799 = vmatpush3.bf16.msra.mxu0 %v2618_v34  ;;  %7800 = vmatprep.mubr.msk.bf16.mxu0 %vm8477_vm10, %v8476_v27 }
 0x3c3   : > { %7801 = vmatmul.mubr.msk.bf16.vlgmr.msra.gmra.mrb[4].mxu0 %vm642_vm9, %v7127_v0 }
 0x40a   : > { %v2605_v35 = vpop.f32.mrb[0].mxu1 }
 0x40b   : > { %v7796_v36 = vpop.f32.mrb[1].mxu1 }
 0x40c   : > { %v2608_v19 = vpop.f32.mrb[2].mxu1 }
 0x40d   : > { %v7797_v37 = vpop.f32.mrb[3].mxu1 }
 0x48e   : > { %v2559_v38 = vpop.f32.mrb[0].mxu0 }
 0x48f   : > { %v7790_v39 = vpop.f32.mrb[1].mxu0  ;;  %v2606_v40 = vadd.f32 %v2605_v35, %v2559_v38 }
 0x490   : > { %v2562_v41 = vpop.f32.mrb[2].mxu0 }
 0x491   : > { %v7791_v42 = vpop.f32.mrb[3].mxu0 }
 0x496   : > { %v2654_v43 = vpop.f32.mrb[4].mxu0 }
 0x497   : > { %v2660_v44 = vadd.f32 %v2654_v43, %v2606_v40  ;;  %v7802_v45 = vpop.f32.mrb[5].mxu0 }
 0x498   : > { %v2657_v46 = vpop.f32.mrb[6].mxu0 }
 0x499   : > { %v2661_v47 = vadd.f32 %v2660_v44, %v9047_v18  ;;  %v7803_v25 = vpop.f32.mrb[7].mxu0 }
 0x49b   : > { %v2662_v48 = vsel %vm8612_vm3, %v2661_v47, 0.0 }
 0x49c   : > { %v2663_v49 = vpack.c.bf16 %v2662_v48, %v2662_v48 }
 0x49e   : > { %2664 = vst.msk [vmem:[#allocation2 + $0x24] sm:$0xf] %vm299_vm0, %v2663_v49 }
 0x49f PF: > { %v2668_v50 = vld [vmem:[#allocation2] sm:$0xf]  ;;  %v2820_v51 = vld [vmem:[#allocation2 + $0x4] sm:$0xf]  ;;  %7804 = vmatprep.subr.bf16.mxu0 %v8472_v60  ;;  %7810 = vmatprep.subr.bf16.mxu1 %v8472_v60  ;;  %v9116_v18 = vld [vmem:[#allocation2 + $0x8] sm:$0xf] }
 0x4a0   : > { %v7130_v52 = vcombine.low %v2668_v50, %v2668_v50  ;;  %v7138_v54 = vcombine.low %v2820_v51, %v2820_v51  ;;  %7806 = vmatprep.mubr.msk.bf16.mxu0 %vm8473_vm8, %v8472_v60  ;;  %7812 = vmatprep.mubr.msk.bf16.mxu1 %vm8473_vm8, %v8472_v60  ;;  %v2727_v4 = vsel %vm646_vm7, %v2668_v50, 0  ;;  %v2669_v53 = vld [vmem:[%s10141_s2] sm:$0xf]  ;;  %v2827_v23 = vsel %vm646_vm7, %v2820_v51, 0  ;;  %v9127_v55 = vld [vmem:[#allocation2 + $0x4] sm:$0xf] }
 0x4a1   : > { %8343 = vset.pattern.permute.xlu0 %v8466_v2  ;;  %8344 = vset.pattern.permute.xlu1 %v8466_v2  ;;  %v7145_v2 = vcombine.low %v9116_v18, %v9116_v18  ;;  %v7150_v56 = vcombine.low %v9127_v55, %v9127_v55  ;;  %v9137_v57 = vld [vmem:[#allocation2 + $0x8] sm:$0xf]  ;;  %v7135_v58 = vld [vmem:[%s10141_s2 + $0xc] sm:$0xf]  ;;  %v9167_v6 = vld [vmem:[#allocation2 + $0x10] sm:$0xf] }
 0x4a2   : > { %2675 = vrot.lane.b32.xlu0 %v7130_v52, %s8474_s18  ;;  %2875 = vrot.lane.b32.xlu1 %v7138_v54, %s8474_s18  ;;  %v7158_v59 = vcombine.low %v9137_v57, %v9137_v57  ;;  %v9146_v61 = vld [vmem:[#allocation2 + $0xc] sm:$0xf]  ;;  %v9155_v26 = vld [vmem:[#allocation2 + $0x8] sm:$0xf]  ;;  %v7185_v7 = vcombine.low %v9167_v6, %v9167_v6  ;;  %v9179_v10 = vld [vmem:[#allocation2 + $0x10] sm:$0xf] }
 0x4a3   : > { %7811 = vmatpush3.bf16.msra.mxu1 %v2727_v4  ;;  %v7165_v62 = vcombine.low %v9146_v61, %v9146_v61  ;;  %v7170_v63 = vcombine.low %v9155_v26, %v9155_v26  ;;  %v9161_v3 = vld [vmem:[#allocation2 + $0xc] sm:$0xf]  ;;  %v7198_v11 = vcombine.low %v9179_v10, %v9179_v10  ;;  %v9185_v12 = vld [vmem:[#allocation2 + $0x14] sm:$0xf]  ;;  %v9191_v14 = vld [vmem:[#allocation2 + $0x10] sm:$0xf] }
 0x4a4   : > { %7822 = vmatprep.subr.bf16.mxu1 %v8472_v60  ;;  %v7178_v5 = vcombine.low %v9161_v3, %v9161_v3  ;;  %v9173_v8 = vld [vmem:[#allocation2 + $0xc] sm:$0xf]  ;;  %v7205_v13 = vcombine.low %v9185_v12, %v9185_v12  ;;  %v7210_v15 = vcombine.low %v9191_v14, %v9191_v14  ;;  %v9197_v16 = vld [vmem:[#allocation2 + $0x14] sm:$0xf]  ;;  %v9203_v20 = vld [vmem:[#allocation2 + $0x18] sm:$0xf] }
 0x4a5   : > { %v7190_v9 = vcombine.low %v9173_v8, %v9173_v8  ;;  %v7218_v17 = vcombine.low %v9197_v16, %v9197_v16  ;;  %v7225_v21 = vcombine.low %v9203_v20, %v9203_v20  ;;  %v9209_v22 = vld [vmem:[#allocation2 + $0x14] sm:$0xf]  ;;  %v9215_v27 = vld [vmem:[#allocation2 + $0x18] sm:$0xf]  ;;  %v9223_v29 = vld [vmem:[#allocation2 + $0x1c] sm:$0xf] }
 0x4a6   : > { %2771 = vrot.lane.b32.xlu0 %v7130_v52, %s8475_s17  ;;  %2926 = vrot.lane.b32.xlu1 %v7138_v54, %s8475_s17  ;;  %v7230_v24 = vcombine.low %v9209_v22, %v9209_v22  ;;  %v7238_v28 = vcombine.low %v9215_v27, %v9215_v27  ;;  %v7245_v30 = vcombine.low %v9223_v29, %v9223_v29  ;;  %v9229_v31 = vld [vmem:[#allocation2 + $0x18] sm:$0xf]  ;;  %v9235_v33 = vld [vmem:[#allocation2 + $0x1c] sm:$0xf]  ;;  %v9239_v0 = vld [vmem:[#allocation2 + $0x20] sm:$0xf] }
 0x4a7   : > { %7813 = vmatmul.mubr.msk.bf16.vlgmr.msra.gmra.mrb[0].mxu1 %vm642_vm9, %v2669_v53  ;;  %v7250_v32 = vcombine.low %v9229_v31, %v9229_v31  ;;  %v7258_v34 = vcombine.low %v9235_v33, %v9235_v33  ;;  %v7265_v35 = vcombine.low %v9239_v0, %v9239_v0  ;;  %v9247_v36 = vld [vmem:[#allocation2 + $0x1c] sm:$0xf]  ;;  %v6510_v37 = vld [vmem:[#allocation2 + $0x20] sm:$0xf]  ;;  %v9255_v39 = vld [vmem:[#allocation2 + $0x24] sm:$0xf] }
 0x4a8   : > { %7823 = vmatpush3.bf16.msra.mxu1 %v2827_v23  ;;  %7824 = vmatprep.mubr.msk.bf16.mxu1 %vm8473_vm8, %v8472_v60  ;;  %v7270_v19 = vcombine.low %v9247_v36, %v9247_v36  ;;  %v7278_v38 = vcombine.low %v6510_v37, %v6510_v37  ;;  %v7285_v40 = vcombine.low %v9255_v39, %v9255_v39  ;;  %v2665_v41 = vld [vmem:[%s10143_s4] sm:$0xff]  ;;  %v7140_v51 = vld [vmem:[%s10141_s2 + $0x14] sm:$0xf]  ;;  %v7133_v4 = vld [vmem:[%s10141_s2 + $0x8] sm:$0xf]  ;;  %vm3207_vm11 = vcmask 253952  }
 0x4a9   : > { %7834 = vmatprep.subr.bf16.mxu1 %v8472_v60  ;;  %v2666_v42 = vld [vmem:[%s10144_s5] sm:$0xff]  ;;  %s7290_s23 = sshll.u32 %s8452_s28, 5  ;;  %s8481_s16 = smov [#allocation3]  }
 0x4aa   : > { %3030 = vrot.lane.b32.xlu0 %v7145_v2, %s8474_s18  ;;  %3081 = vrot.lane.b32.xlu1 %v7145_v2, %s8475_s17  ;;  %v2667_v43 = vld [vmem:[%s10145_s6] sm:$0xff]  ;;  %v7144_v2 = vld [vmem:[%s10141_s2 + $0x1c] sm:$0xf]  ;;  %s6896_s9 = sadd.s32 %s8448_s27, %s7290_s23  ;;  %s6899_s27 = sshll.u32 %s8621_s21, 4  ;;  %s10075_s27 = int_to_ptr.vmem [resolvable:$true] %s6899_s27 }
 0x4ab   : > { %v7129_v47 = vld [vmem:[%s10141_s2 + $0x4] sm:$0xf]  ;;  %v7167_v37 = vld [vmem:[%s10141_s2 + $0x20] sm:$0xf]  ;;  %s7291_s20 = sshll.u32 %s6896_s9, 7  ;;  %s8370_s10 = scalar_lea.vmem %s10075_s27, 1024 }
 0x4ac   : > { %p8371_p1 = scmp.ne.s32.totalorder %s10075_s27, %s8370_s10  ;;  %s8374_s23 = sshll.u32 %s8481_s16, 4  ;;  %s8375_s23 = int_to_ptr.vmem [resolvable:$false] %s8374_s23 }
 0x4ad   : > { %s8376_s9 = scalar_lea.vmem %s8375_s23, 2048  ;;  %p8377_p5 = scmp.lt.s32.totalorder %s10075_s27, %s8375_s23 }
 0x4ae   : > { %3222 = vrot.lane.b32.xlu0 %v7150_v56, %s8474_s18  ;;  %3317 = vrot.lane.b32.xlu1 %v7150_v56, %s8475_s17  ;;  %p8372_p2 = pnand %p8371_p1, %p8576_p3  ;;  %p8378_p6 = scmp.lt.s32.totalorder %s8376_s9, %s8370_s10 }
 0x4af   : > { %7825 = vmatmul.mubr.msk.bf16.vlgmr.msra.gmra.mrb[4].mxu1 %vm642_vm9, %v7135_v58 }
 0x4b0   : > { %7836 = vmatprep.mubr.msk.bf16.mxu1 %vm8473_vm8, %v8472_v60  ;;  %p8373_p4 = pneg %p8372_p2  ;;  %p8379_p7 = por %p8378_p6, %p8377_p5 }
 0x4b2   : > { %3419 = vrot.lane.b32.xlu0 %v7158_v59, %s8474_s18  ;;  %3469 = vrot.lane.b32.xlu1 %v7158_v59, %s8475_s17  ;;  %v7137_v59 = vld [vmem:[%s10141_s2 + $0x10] sm:$0xf]  ;;  %p8380_p9 = pnand %p8379_p7, %p8373_p4 }
 0x4b6   : > { %3571 = vrot.lane.b32.xlu0 %v7165_v62, %s8474_s18  ;;  %3621 = vrot.lane.b32.xlu1 %v7165_v62, %s8475_s17  ;;  %v2982_v62 = vsel %vm646_vm7, %v9116_v18, 0 }
 0x4ba   : > { %3746 = vrot.lane.b32.xlu0 %v7170_v63, %s8474_s18  ;;  %3841 = vrot.lane.b32.xlu1 %v7170_v63, %s8475_s17 }
 0x4be   : > { %3943 = vrot.lane.b32.xlu0 %v7178_v5, %s8474_s18  ;;  %3993 = vrot.lane.b32.xlu1 %v7178_v5, %s8475_s17  ;;  %v7149_v5 = vld [vmem:[%s10141_s2 + $0x4] sm:$0xf] }
 0x4c2   : > { %4095 = vrot.lane.b32.xlu0 %v7185_v7, %s8474_s18  ;;  %4145 = vrot.lane.b32.xlu1 %v7185_v7, %s8475_s17  ;;  %v7142_v7 = vld [vmem:[%s10141_s2 + $0x18] sm:$0xf] }
 0x4c6   : > { %4270 = vrot.lane.b32.xlu0 %v7190_v9, %s8474_s18  ;;  %4365 = vrot.lane.b32.xlu1 %v7190_v9, %s8475_s17 }
 0x4ca   : > { %4467 = vrot.lane.b32.xlu0 %v7198_v11, %s8474_s18  ;;  %4517 = vrot.lane.b32.xlu1 %v7198_v11, %s8475_s17 }
 0x4ce   : > { %4619 = vrot.lane.b32.xlu0 %v7205_v13, %s8474_s18  ;;  %4669 = vrot.lane.b32.xlu1 %v7205_v13, %s8475_s17  ;;  %v7153_v13 = vld [vmem:[%s10141_s2 + $0x8] sm:$0xf] }
 0x4d2   : > { %4794 = vrot.lane.b32.xlu0 %v7210_v15, %s8474_s18  ;;  %4889 = vrot.lane.b32.xlu1 %v7210_v15, %s8475_s17 }
 0x4d6   : > { %4991 = vrot.lane.b32.xlu0 %v7218_v17, %s8474_s18  ;;  %5041 = vrot.lane.b32.xlu1 %v7218_v17, %s8475_s17  ;;  %v7147_v17 = vld [vmem:[%s10141_s2 + $0x20] sm:$0xf] }
 0x4da   : > { %5143 = vrot.lane.b32.xlu0 %v7225_v21, %s8474_s18  ;;  %5193 = vrot.lane.b32.xlu1 %v7225_v21, %s8475_s17  ;;  %v3274_v21 = vsel %vm646_vm7, %v9127_v55, 0  ;;  %v3524_v55 = vsel %vm646_vm7, %v9146_v61, 0  ;;  %v7162_v61 = vld [vmem:[%s10141_s2 + $0x18] sm:$0xf] }
 0x4de   : > { %5318 = vrot.lane.b32.xlu0 %v7230_v24, %s8474_s18  ;;  %5413 = vrot.lane.b32.xlu1 %v7230_v24, %s8475_s17  ;;  %v7157_v24 = vld [vmem:[%s10141_s2 + $0x10] sm:$0xf] }
 0x4e2   : > { %5515 = vrot.lane.b32.xlu0 %v7238_v28, %s8474_s18  ;;  %5565 = vrot.lane.b32.xlu1 %v7238_v28, %s8475_s17 }
 0x4e6   : > { %5667 = vrot.lane.b32.xlu0 %v7245_v30, %s8474_s18  ;;  %5717 = vrot.lane.b32.xlu1 %v7245_v30, %s8475_s17  ;;  %v3217_v30 = vld [vmem:[%s10141_s2] sm:$0xf] }
 0x4ea   : > { %5842 = vrot.lane.b32.xlu0 %v7250_v32, %s8474_s18  ;;  %5937 = vrot.lane.b32.xlu1 %v7250_v32, %s8475_s17  ;;  %v3372_v32 = vsel %vm646_vm7, %v9137_v57, 0 }
 0x4ee   : > { %6039 = vrot.lane.b32.xlu0 %v7258_v34, %s8474_s18  ;;  %6089 = vrot.lane.b32.xlu1 %v7258_v34, %s8475_s17 }
 0x4f2   : > { %6191 = vrot.lane.b32.xlu0 %v7265_v35, %s8474_s18  ;;  %6241 = vrot.lane.b32.xlu1 %v7265_v35, %s8475_s17  ;;  %v7155_v35 = vld [vmem:[%s10141_s2 + $0xc] sm:$0xf] }
 0x4f6   : > { %6366 = vrot.lane.b32.xlu0 %v7270_v19, %s8474_s18  ;;  %6461 = vrot.lane.b32.xlu1 %v7270_v19, %s8475_s17 }
 0x4fa   : > { %6563 = vrot.lane.b32.xlu0 %v7278_v38, %s8474_s18  ;;  %6613 = vrot.lane.b32.xlu1 %v7278_v38, %s8475_s17 }
 0x4fe   : > { %6715 = vrot.lane.b32.xlu0 %v7285_v40, %s8474_s18  ;;  %6765 = vrot.lane.b32.xlu1 %v7285_v40, %s8475_s17  ;;  %v3798_v40 = vsel %vm646_vm7, %v9155_v26, 0  ;;  %v3741_v26 = vld [vmem:[%s10141_s2] sm:$0xf]  ;;  %s10073_s18 = scalar_lea.hbm %s10146_s7, %s7291_s20  ;;  %s10152_s17 = sand.u32 1, %s8440_s25  }
 0x4ff   : > { %s10087_s22 = scalar_lea.sflag [#allocation4], %s10152_s17 }
 0x502   : > { %3132 = vperm.xlu0 %8343, %v2665_v41   ;;  %3139 = vperm.xlu1 %8344, %v2666_v42   ;;  %v7160_v41 = vld [vmem:[%s10141_s2 + $0x14] sm:$0xf] }
 0x506   : > { %3145 = vperm.xlu1 %8344, %v2667_v43  }
 0x514   : > { %v2676_v44 = vpop.permute.xlu0 %2675  ;;  %v2876_v45 = vpop.permute.xlu1 %2875 }
 0x515   : > { %v2681_v46 = vsel %vm646_vm7, %v2676_v44, 0  ;;  %v2881_v53 = vsel %vm646_vm7, %v2876_v45, 0  ;;  %v3896_v44 = vsel %vm646_vm7, %v9161_v3, 0  ;;  %v7175_v3 = vld [vmem:[%s10141_s2 + $0xc] sm:$0xf] }
 0x516   : > { %7805 = vmatpush3.bf16.msra.mxu0 %v2681_v46  ;;  %v7164_v46 = vld [vmem:[%s10141_s2 + $0x1c] sm:$0xf] }
 0x517   : > { %7816 = vmatprep.subr.bf16.mxu0 %v8472_v60 }
 0x518   : > { %v2772_v25 = vpop.permute.xlu0 %2771  ;;  %v2927_v48 = vpop.permute.xlu1 %2926 }
 0x519   : > { %v2777_v49 = vsel %vm646_vm7, %v2772_v25, 0  ;;  %7807 = vmatmul.mubr.msk.bf16.vlgmr.msra.gmra.mrb[0].mxu0 %vm642_vm9, %v7129_v47  ;;  %v2932_v50 = vsel %vm646_vm7, %v2927_v48, 0 }
 0x51a   : > { %7817 = vmatpush3.bf16.msra.mxu0 %v2777_v49  ;;  %7818 = vmatprep.mubr.msk.bf16.mxu0 %vm8473_vm8, %v8472_v60 }
 0x51b   : > { %7828 = vmatprep.subr.bf16.mxu0 %v8472_v60  ;;  %7835 = vmatpush3.bf16.msra.mxu1 %v2932_v50  ;;  %v7169_v50 = vld [vmem:[%s10141_s2 + $0x4] sm:$0xf] }
 0x51c   : > { %v3031_v52 = vpop.permute.xlu0 %3030  ;;  %7846 = vmatprep.subr.bf16.mxu1 %v8472_v60  ;;  %v3082_v58 = vpop.permute.xlu1 %3081 }
 0x51d   : > { %v3036_v54 = vsel %vm646_vm7, %v3031_v52, 0  ;;  %v3087_v9 = vsel %vm646_vm7, %v3082_v58, 0 }
 0x51e   : > { %7837 = vmatmul.mubr.msk.bf16.vlgmr.msra.gmra.mrb[8].mxu1 %vm642_vm9, %v7140_v51 }
 0x51f   : > { %7847 = vmatpush3.bf16.msra.mxu1 %v3036_v54  ;;  %7848 = vmatprep.mubr.msk.bf16.mxu1 %vm8473_vm8, %v8472_v60  ;;  %v7180_v54 = vld [vmem:[%s10141_s2 + $0x14] sm:$0xf] }
 0x520   : > { %7858 = vmatprep.subr.bf16.mxu1 %v8472_v60  ;;  %v3223_v23 = vpop.permute.xlu0 %3222  ;;  %v3318_v63 = vpop.permute.xlu1 %3317 }
 0x521   : > { %7819 = vmatmul.mubr.msk.bf16.vlgmr.msra.gmra.mrb[4].mxu0 %vm642_vm9, %v7133_v4  ;;  %v3228_v56 = vsel %vm646_vm7, %v3223_v23, 0  ;;  %v3323_v18 = vsel %vm646_vm7, %v3318_v63, 0  ;;  %v4048_v63 = vsel %vm646_vm7, %v9167_v6, 0 }
 0x522   : > { %7829 = vmatpush3.bf16.msra.mxu0 %v2881_v53  ;;  %7830 = vmatprep.mubr.msk.bf16.mxu0 %vm8473_vm8, %v8472_v60  ;;  %v7173_v53 = vld [vmem:[%s10141_s2 + $0x8] sm:$0xf] }
 0x523   : > { %7840 = vmatprep.subr.bf16.mxu0 %v8472_v60 }
 0x524   : > { %v3420_v11 = vpop.permute.xlu0 %3419  ;;  %v3470_v28 = vpop.permute.xlu1 %3469 }
 0x525   : > { %v3425_v15 = vsel %vm646_vm7, %v3420_v11, 0  ;;  %v3475_v19 = vsel %vm646_vm7, %v3470_v28, 0  ;;  %v7187_v28 = vld [vmem:[%s10141_s2 + $0x20] sm:$0xf] }
 0x526   : > { %7849 = vmatmul.mubr.msk.bf16.vlgmr.msra.gmra.mrb[12].mxu1 %vm642_vm9, %v7144_v2 }
 0x527   : > { %7859 = vmatpush3.bf16.msra.mxu1 %v3228_v56  ;;  %7860 = vmatprep.mubr.msk.bf16.mxu1 %vm8473_vm8, %v8472_v60  ;;  %v7184_v56 = vld [vmem:[%s10141_s2 + $0x1c] sm:$0xf] }
 0x528   : > { %7870 = vmatprep.subr.bf16.mxu1 %v8472_v60  ;;  %v3622_v34 = vpop.permute.xlu1 %3621  ;;  %v3572_v38 = vpop.permute.xlu0 %3571 }
 0x529   : > { %7831 = vmatmul.mubr.msk.bf16.vlgmr.msra.gmra.mrb[8].mxu0 %vm642_vm9, %v7137_v59  ;;  %v3627_v57 = vsel %vm646_vm7, %v3622_v34, 0  ;;  %v3577_v42 = vsel %vm646_vm7, %v3572_v38, 0  ;;  %v4420_v38 = vsel %vm646_vm7, %v9179_v10, 0 }
 0x52a   : > { %7841 = vmatpush3.bf16.msra.mxu0 %v2982_v62  ;;  %7842 = vmatprep.mubr.msk.bf16.mxu0 %vm8473_vm8, %v8472_v60  ;;  %v7177_v62 = vld [vmem:[%s10141_s2 + $0x10] sm:$0xf] }
 0x52b   : > { %7852 = vmatprep.subr.bf16.mxu0 %v8472_v60 }
 0x52c   : > { %v3747_v43 = vpop.permute.xlu0 %3746  ;;  %v3842_v45 = vpop.permute.xlu1 %3841 }
 0x52d   : > { %v3752_v47 = vsel %vm646_vm7, %v3747_v43, 0  ;;  %v3847_v51 = vsel %vm646_vm7, %v3842_v45, 0  ;;  %v7200_v45 = vld [vmem:[%s10141_s2 + $0x14] sm:$0xf] }
 0x52e   : > { %7861 = vmatmul.mubr.msk.bf16.vlgmr.msra.gmra.mrb[16].mxu1 %vm642_vm9, %v7149_v5 }
 0x52f   : > { %7871 = vmatpush3.bf16.msra.mxu1 %v3323_v18  ;;  %7872 = vmatprep.mubr.msk.bf16.mxu1 %vm8473_vm8, %v8472_v60  ;;  %v7189_v18 = vld [vmem:[%s10141_s2 + $0x4] sm:$0xf] }
 0x530   : > { %7882 = vmatprep.subr.bf16.mxu1 %v8472_v60  ;;  %v3994_v25 = vpop.permute.xlu1 %3993  ;;  %v3944_v49 = vpop.permute.xlu0 %3943 }
 0x531   : > { %7843 = vmatmul.mubr.msk.bf16.vlgmr.msra.gmra.mrb[12].mxu0 %vm642_vm9, %v7142_v7  ;;  %v3999_v48 = vsel %vm646_vm7, %v3994_v25, 0  ;;  %v3949_v23 = vsel %vm646_vm7, %v3944_v49, 0  ;;  %v7182_v7 = vld [vmem:[%s10141_s2 + $0x18] sm:$0xf]  ;;  %v4944_v25 = vsel %vm646_vm7, %v9197_v16, 0 }
 0x532   : > { %7853 = vmatpush3.bf16.msra.mxu0 %v3087_v9  ;;  %7854 = vmatprep.mubr.msk.bf16.mxu0 %vm8473_vm8, %v8472_v60  ;;  %v7215_v16 = vld [vmem:[%s10141_s2 + $0xc] sm:$0xf] }
 0x533   : > { %7864 = vmatprep.subr.bf16.mxu0 %v8472_v60 }
 0x534   : > { %v4096_v52 = vpop.permute.xlu0 %4095  ;;  %v4146_v59 = vpop.permute.xlu1 %4145 }
 0x535   : > { %v4101_v4 = vsel %vm646_vm7, %v4096_v52, 0  ;;  %v4151_v9 = vsel %vm646_vm7, %v4146_v59, 0 }
 0x536   : > { %7873 = vmatmul.mubr.msk.bf16.vlgmr.msra.gmra.mrb[20].mxu1 %vm642_vm9, %v7153_v13 }
 0x537   : > { %7883 = vmatpush3.bf16.msra.mxu1 %v3425_v15  ;;  %7884 = vmatprep.mubr.msk.bf16.mxu1 %vm8473_vm8, %v8472_v60  ;;  %v7193_v15 = vld [vmem:[%s10141_s2 + $0x8] sm:$0xf] }
 0x538   : > { %7894 = vmatprep.subr.bf16.mxu1 %v8472_v60  ;;  %v4271_v2 = vpop.permute.xlu0 %4270  ;;  %v4366_v5 = vpop.permute.xlu1 %4365 }
 0x539   : > { %7855 = vmatmul.mubr.msk.bf16.vlgmr.msra.gmra.mrb[16].mxu0 %vm642_vm9, %v7147_v17  ;;  %v4276_v58 = vsel %vm646_vm7, %v4271_v2, 0  ;;  %v4371_v6 = vsel %vm646_vm7, %v4366_v5, 0 }
 0x53a   : > { %7865 = vmatpush3.bf16.msra.mxu0 %v3274_v21  ;;  %7866 = vmatprep.mubr.msk.bf16.mxu0 %vm8473_vm8, %v8472_v60 }
 0x53b   : > { %7876 = vmatprep.subr.bf16.mxu0 %v8472_v60 }
 0x53c   : > { %v4468_v11 = vpop.permute.xlu0 %4467 }
 0x53d   : > { %v4473_v21 = vsel %vm646_vm7, %v4468_v11, 0  ;;  %v7222_v11 = vld [vmem:[%s10141_s2 + $0x18] sm:$0xf] }
 0x53e   : > { %7885 = vmatmul.mubr.msk.bf16.vlgmr.msra.gmra.mrb[24].mxu1 %vm642_vm9, %v7157_v24 }
 0x53f   : > { %7895 = vmatpush3.bf16.msra.mxu1 %v3524_v55  ;;  %7896 = vmatprep.mubr.msk.bf16.mxu1 %vm8473_vm8, %v8472_v60 }
 0x540   : > { %7906 = vmatprep.subr.bf16.mxu1 %v8472_v60  ;;  %v4620_v43 = vpop.permute.xlu0 %4619 }
 0x541   : > { %7867 = vmatmul.mubr.msk.bf16.vlgmr.msra.gmra.mrb[20].mxu0 %vm642_vm9, %v3217_v30  ;;  %v4322_v30 = vsel %vm646_vm7, %v9173_v8, 0  ;;  %v7197_v8 = vld [vmem:[%s10141_s2 + $0x10] sm:$0xf] }
 0x542   : > { %7877 = vmatpush3.bf16.msra.mxu0 %v3372_v32  ;;  %7878 = vmatprep.mubr.msk.bf16.mxu0 %vm8473_vm8, %v8472_v60 }
 0x543   : > { %7888 = vmatprep.subr.bf16.mxu0 %v8472_v60 }
 0x546   : > { %7897 = vmatmul.mubr.msk.bf16.vlgmr.msra.gmra.mrb[28].mxu1 %vm642_vm9, %v7162_v61  ;;  %v4572_v61 = vsel %vm646_vm7, %v9185_v12, 0 }
 0x547   : > { %7907 = vmatpush3.bf16.msra.mxu1 %v3627_v57  ;;  %7908 = vmatprep.mubr.msk.bf16.mxu1 %vm8473_vm8, %v8472_v60 }
 0x548   : > { %7918 = vmatprep.subr.bf16.mxu1 %v8472_v60 }
 0x549   : > { %7879 = vmatmul.mubr.msk.bf16.vlgmr.msra.gmra.mrb[24].mxu0 %vm642_vm9, %v7155_v35  ;;  %v4518_v35 = vpop.permute.xlu1 %4517 }
 0x54a   : > { %7889 = vmatpush3.bf16.msra.mxu0 %v3475_v19  ;;  %7890 = vmatprep.mubr.msk.bf16.mxu0 %vm8473_vm8, %v8472_v60 }
 0x54b   : > { %7900 = vmatprep.subr.bf16.mxu0 %v8472_v60 }
 0x54d   : > { %v4670_v12 = vpop.permute.xlu1 %4669 }
 0x54e   : > { %7909 = vmatmul.mubr.msk.bf16.vlgmr.msra.gmra.mrb[32].mxu1 %vm642_vm9, %v7167_v37  ;;  %v4265_v37 = vld [vmem:[%s10141_s2] sm:$0xf]  ;;  %v4675_v10 = vsel %vm646_vm7, %v4670_v12, 0  ;;  %v5894_v12 = vsel %vm646_vm7, %v9229_v31, 0 }
 0x54f   : > { %7919 = vmatpush3.bf16.msra.mxu1 %v3798_v40  ;;  %7920 = vmatprep.mubr.msk.bf16.mxu1 %vm8473_vm8, %v8472_v60  ;;  %v7202_v40 = vld [vmem:[%s10141_s2 + $0x18] sm:$0xf]  ;;  %v5837_v31 = vld [vmem:[%s10141_s2] sm:$0xf] }
 0x550   : > { %7930 = vmatprep.subr.bf16.mxu1 %v8472_v60 }
 0x551   : > { %7891 = vmatmul.mubr.msk.bf16.vlgmr.msra.gmra.mrb[28].mxu0 %vm642_vm9, %v7160_v41  ;;  %v7195_v41 = vld [vmem:[%s10141_s2 + $0xc] sm:$0xf] }
 0x552   : > { %7901 = vmatpush3.bf16.msra.mxu0 %v3577_v42  ;;  %7902 = vmatprep.mubr.msk.bf16.mxu0 %vm8473_vm8, %v8472_v60  ;;  %v4523_v42 = vsel %vm646_vm7, %v4518_v35, 0  ;;  %v7235_v35 = vld [vmem:[%s10141_s2 + $0xc] sm:$0xf] }
 0x553   : > { %7912 = vmatprep.subr.bf16.mxu0 %v8472_v60 }
 0x556   : > { %7921 = vmatmul.mubr.msk.bf16.vlgmr.msra.gmra.mrb[36].mxu1 %vm642_vm9, %v3741_v26  ;;  %v7207_v26 = vld [vmem:[%s10141_s2 + $0x20] sm:$0xf] }
 0x557   : > { %7931 = vmatpush3.bf16.msra.mxu1 %v3896_v44  ;;  %7932 = vmatprep.mubr.msk.bf16.mxu1 %vm8473_vm8, %v8472_v60  ;;  %v4846_v44 = vsel %vm646_vm7, %v9191_v14, 0  ;;  %v4789_v14 = vld [vmem:[%s10141_s2] sm:$0xf] }
 0x558   : > { %7942 = vmatprep.subr.bf16.mxu1 %v8472_v60 }
 0x559   : > { %7903 = vmatmul.mubr.msk.bf16.vlgmr.msra.gmra.mrb[32].mxu0 %vm642_vm9, %v7164_v46  ;;  %v4625_v46 = vsel %vm646_vm7, %v4620_v43, 0  ;;  %v7244_v43 = vld [vmem:[%s10141_s2 + $0x1c] sm:$0xf] }
 0x55a   : > { %7913 = vmatpush3.bf16.msra.mxu0 %v3752_v47  ;;  %7914 = vmatprep.mubr.msk.bf16.mxu0 %vm8473_vm8, %v8472_v60  ;;  %v4795_v47 = vpop.permute.xlu0 %4794 }
 0x55b   : > { %7924 = vmatprep.subr.bf16.mxu0 %v8472_v60  ;;  %v4800_v49 = vsel %vm646_vm7, %v4795_v47, 0 }
 0x55e   : > { %7933 = vmatmul.mubr.msk.bf16.vlgmr.msra.gmra.mrb[40].mxu1 %vm642_vm9, %v7175_v3  ;;  %v4890_v3 = vpop.permute.xlu1 %4889  ;;  %v4992_v52 = vpop.permute.xlu0 %4991 }
 0x55f   : > { %7943 = vmatpush3.bf16.msra.mxu1 %v3999_v48  ;;  %7944 = vmatprep.mubr.msk.bf16.mxu1 %vm8473_vm8, %v8472_v60  ;;  %v7204_v48 = vld [vmem:[%s10141_s2 + $0x1c] sm:$0xf] }
 0x560   : > { %7954 = vmatprep.subr.bf16.mxu1 %v8472_v60 }
 0x561   : > { %7915 = vmatmul.mubr.msk.bf16.vlgmr.msra.gmra.mrb[36].mxu0 %vm642_vm9, %v7169_v50 }
 0x562   : > { %7925 = vmatpush3.bf16.msra.mxu0 %v3847_v51  ;;  %7926 = vmatprep.mubr.msk.bf16.mxu0 %vm8473_vm8, %v8472_v60  ;;  %v5042_v50 = vpop.permute.xlu1 %5041 }
 0x563   : > { %7936 = vmatprep.subr.bf16.mxu0 %v8472_v60  ;;  %v5047_v51 = vsel %vm646_vm7, %v5042_v50, 0 }
 0x566   : > { %7945 = vmatmul.mubr.msk.bf16.vlgmr.msra.gmra.mrb[44].mxu1 %vm642_vm9, %v7180_v54  ;;  %v7209_v54 = vld [vmem:[%s10141_s2 + $0x4] sm:$0xf]  ;;  %v5194_v5 = vpop.permute.xlu1 %5193 }
 0x567   : > { %7955 = vmatpush3.bf16.msra.mxu1 %v4101_v4  ;;  %7956 = vmatprep.mubr.msk.bf16.mxu1 %vm8473_vm8, %v8472_v60  ;;  %v4895_v4 = vsel %vm646_vm7, %v4890_v3, 0 }
 0x568   : > { %7966 = vmatprep.subr.bf16.mxu1 %v8472_v60 }
 0x569   : > { %7927 = vmatmul.mubr.msk.bf16.vlgmr.msra.gmra.mrb[40].mxu0 %vm642_vm9, %v7173_v53  ;;  %v5144_v53 = vpop.permute.xlu0 %5143 }
 0x56a   : > { %7937 = vmatpush3.bf16.msra.mxu0 %v3949_v23  ;;  %7938 = vmatprep.mubr.msk.bf16.mxu0 %vm8473_vm8, %v8472_v60  ;;  %v7220_v23 = vld [vmem:[%s10141_s2 + $0x14] sm:$0xf]  ;;  %v5149_v2 = vsel %vm646_vm7, %v5144_v53, 0 }
 0x56b   : > { %7948 = vmatprep.subr.bf16.mxu0 %v8472_v60  ;;  %v7260_v53 = vld [vmem:[%s10141_s2 + $0x14] sm:$0xf] }
 0x56d   : > { %v5319_v59 = vpop.permute.xlu0 %5318 }
 0x56e   : > { %7957 = vmatmul.mubr.msk.bf16.vlgmr.msra.gmra.mrb[48].mxu1 %vm642_vm9, %v7184_v56  ;;  %v7213_v56 = vld [vmem:[%s10141_s2 + $0x8] sm:$0xf] }
 0x56f   : > { %7967 = vmatpush3.bf16.msra.mxu1 %v4276_v58  ;;  %7968 = vmatprep.mubr.msk.bf16.mxu1 %vm8473_vm8, %v8472_v60  ;;  %v4997_v58 = vsel %vm646_vm7, %v4992_v52, 0 }
 0x570   : > { %7978 = vmatprep.subr.bf16.mxu1 %v8472_v60 }
 0x571   : > { %7939 = vmatmul.mubr.msk.bf16.vlgmr.msra.gmra.mrb[44].mxu0 %vm642_vm9, %v7177_v62  ;;  %v7224_v62 = vld [vmem:[%s10141_s2 + $0x1c] sm:$0xf] }
 0x572   : > { %7949 = vmatpush3.bf16.msra.mxu0 %v4048_v63  ;;  %7950 = vmatprep.mubr.msk.bf16.mxu0 %vm8473_vm8, %v8472_v60  ;;  %v5324_v63 = vsel %vm646_vm7, %v5319_v59, 0 }
 0x573   : > { %7960 = vmatprep.subr.bf16.mxu0 %v8472_v60 }
 0x576   : > { %7969 = vmatmul.mubr.msk.bf16.vlgmr.msra.gmra.mrb[52].mxu1 %vm642_vm9, %v7189_v18  ;;  %v7217_v18 = vld [vmem:[%s10141_s2 + $0x10] sm:$0xf] }
 0x577   : > { %7979 = vmatpush3.bf16.msra.mxu1 %v4371_v6  ;;  %7980 = vmatprep.mubr.msk.bf16.mxu1 %vm8473_vm8, %v8472_v60  ;;  %v5096_v6 = vsel %vm646_vm7, %v9203_v20, 0 }
 0x578   : > { %7990 = vmatprep.subr.bf16.mxu1 %v8472_v60 }
 0x579   : > { %7951 = vmatmul.mubr.msk.bf16.vlgmr.msra.gmra.mrb[48].mxu0 %vm642_vm9, %v7182_v7  ;;  %v5414_v7 = vpop.permute.xlu1 %5413 }
 0x57a   : > { %7961 = vmatpush3.bf16.msra.mxu0 %v4151_v9  ;;  %7962 = vmatprep.mubr.msk.bf16.mxu0 %vm8473_vm8, %v8472_v60  ;;  %v9480_v13 = vpop.f32.mrb[0].mxu1  ;;  %v7229_v9 = vld [vmem:[%s10141_s2 + $0x4] sm:$0xf]  ;;  %v5419_v20 = vsel %vm646_vm7, %v5414_v7, 0 }
 0x57b   : > { %7972 = vmatprep.subr.bf16.mxu0 %v8472_v60  ;;  %v7814_v17 = vpop.f32.mrb[1].mxu1 }
 0x57c   : > { %v2766_v24 = vpop.f32.mrb[2].mxu1  ;;  %v5516_v17 = vpop.permute.xlu0 %5515 }
 0x57d   : > { %v7815_v55 = vpop.f32.mrb[3].mxu1  ;;  %v5521_v24 = vsel %vm646_vm7, %v5516_v17, 0 }
 0x57e   : > { %7981 = vmatmul.mubr.msk.bf16.vlgmr.msra.gmra.mrb[56].mxu1 %vm642_vm9, %v7193_v15  ;;  %v5199_v15 = vsel %vm646_vm7, %v5194_v5, 0  ;;  %v7227_v55 = vld [vmem:[%s10141_s2 + $0x20] sm:$0xf] }
 0x57f   : > { %7991 = vmatpush3.bf16.msra.mxu1 %v4473_v21  ;;  %7992 = vmatprep.mubr.msk.bf16.mxu1 %vm8473_vm8, %v8472_v60  ;;  %v7233_v21 = vld [vmem:[%s10141_s2 + $0x8] sm:$0xf] }
 0x580   : > { %8002 = vmatprep.subr.bf16.mxu1 %v8472_v60 }
 0x581   : > { %7963 = vmatmul.mubr.msk.bf16.vlgmr.msra.gmra.mrb[52].mxu0 %vm642_vm9, %v7187_v28  ;;  %v5370_v28 = vsel %vm646_vm7, %v9209_v22, 0  ;;  %v5620_v22 = vsel %vm646_vm7, %v9223_v29, 0  ;;  %v7242_v29 = vld [vmem:[%s10141_s2 + $0x18] sm:$0xf] }
 0x582   : > { %7973 = vmatpush3.bf16.msra.mxu0 %v4322_v30  ;;  %7974 = vmatprep.mubr.msk.bf16.mxu0 %vm8473_vm8, %v8472_v60  ;;  %v9499_v32 = vpop.f32.mrb[4].mxu1  ;;  %v7237_v30 = vld [vmem:[%s10141_s2 + $0x10] sm:$0xf] }
 0x583   : > { %7984 = vmatprep.subr.bf16.mxu0 %v8472_v60  ;;  %v7826_v34 = vpop.f32.mrb[5].mxu1 }
 0x584   : > { %v2866_v57 = vpop.f32.mrb[6].mxu1  ;;  %v5313_v34 = vld [vmem:[%s10141_s2] sm:$0xf] }
 0x585   : > { %v7827_v19 = vpop.f32.mrb[7].mxu1 }
 0x586   : > { %7993 = vmatmul.mubr.msk.bf16.vlgmr.msra.gmra.mrb[60].mxu1 %vm642_vm9, %v7197_v8  ;;  %v5566_v8 = vpop.permute.xlu1 %5565 }
 0x587   : > { %8003 = vmatpush3.bf16.msra.mxu1 %v4572_v61  ;;  %8004 = vmatprep.mubr.msk.bf16.mxu1 %vm8473_vm8, %v8472_v60  ;;  %v5468_v61 = vsel %vm646_vm7, %v9215_v27, 0  ;;  %v5571_v19 = vsel %vm646_vm7, %v5566_v8, 0  ;;  %v7257_v8 = vld [vmem:[%s10141_s2 + $0x10] sm:$0xf] }
 0x588   : > { %8014 = vmatprep.subr.bf16.mxu1 %v8472_v60 }
 0x589   : > { %7975 = vmatmul.mubr.msk.bf16.vlgmr.msra.gmra.mrb[56].mxu0 %vm642_vm9, %v4265_v37  ;;  %v7247_v37 = vld [vmem:[%s10141_s2 + $0x20] sm:$0xf] }
 0x58a   : > { %7985 = vmatpush3.bf16.msra.mxu0 %v4420_v38  ;;  %7986 = vmatprep.mubr.msk.bf16.mxu0 %vm8473_vm8, %v8472_v60  ;;  %v5718_v57 = vpop.permute.xlu1 %5717  ;;  %v5668_v38 = vpop.permute.xlu0 %5667 }
 0x58b   : > { %7996 = vmatprep.subr.bf16.mxu0 %v8472_v60  ;;  %v5723_v27 = vsel %vm646_vm7, %v5718_v57, 0  ;;  %v6144_v57 = vsel %vm646_vm7, %v9239_v0, 0 }
 0x58e   : > { %8005 = vmatmul.mubr.msk.bf16.vlgmr.msra.gmra.mrb[64].mxu1 %vm642_vm9, %v7202_v40  ;;  %v7240_v40 = vld [vmem:[%s10141_s2 + $0x14] sm:$0xf] }
 0x58f   : > { %8015 = vmatpush3.bf16.msra.mxu1 %v4675_v10  ;;  %8016 = vmatprep.mubr.msk.bf16.mxu1 %vm8473_vm8, %v8472_v60  ;;  %v5673_v10 = vsel %vm646_vm7, %v5668_v38, 0 }
 0x590   : > { %8026 = vmatprep.subr.bf16.mxu1 %v8472_v60 }
 0x591   : > { %7987 = vmatmul.mubr.msk.bf16.vlgmr.msra.gmra.mrb[60].mxu0 %vm642_vm9, %v7195_v41  ;;  %v5843_v41 = vpop.permute.xlu0 %5842 }
 0x592   : > { %7997 = vmatpush3.bf16.msra.mxu0 %v4523_v42  ;;  %7998 = vmatprep.mubr.msk.bf16.mxu0 %vm8473_vm8, %v8472_v60  ;;  %v5992_v42 = vsel %vm646_vm7, %v9235_v33, 0 }
 0x593   : > { %8008 = vmatprep.subr.bf16.mxu0 %v8472_v60 }
 0x595   : > { %v6040_v33 = vpop.permute.xlu0 %6039 }
 0x596   : > { %8017 = vmatmul.mubr.msk.bf16.vlgmr.msra.gmra.mrb[68].mxu1 %vm642_vm9, %v7207_v26  ;;  %v5938_v26 = vpop.permute.xlu1 %5937 }
 0x597   : > { %8027 = vmatpush3.bf16.msra.mxu1 %v4846_v44  ;;  %8028 = vmatprep.mubr.msk.bf16.mxu1 %vm8473_vm8, %v8472_v60  ;;  %v5848_v44 = vsel %vm646_vm7, %v5843_v41, 0 }
 0x598   : > { %8038 = vmatprep.subr.bf16.mxu1 %v8472_v60 }
 0x599   : > { %7999 = vmatmul.mubr.msk.bf16.vlgmr.msra.gmra.mrb[64].mxu0 %vm642_vm9, %v7200_v45 }
 0x59a   : > { %8009 = vmatpush3.bf16.msra.mxu0 %v4625_v46  ;;  %8010 = vmatprep.mubr.msk.bf16.mxu0 %vm8473_vm8, %v8472_v60  ;;  %v6090_v45 = vpop.permute.xlu1 %6089  ;;  %v7255_v46 = vld [vmem:[%s10141_s2 + $0xc] sm:$0xf] }
 0x59b   : > { %8020 = vmatprep.subr.bf16.mxu0 %v8472_v60  ;;  %v6095_v47 = vsel %vm646_vm7, %v6090_v45, 0 }
 0x59e   : > { %8029 = vmatmul.mubr.msk.bf16.vlgmr.msra.gmra.mrb[72].mxu1 %vm642_vm9, %v4789_v14 }
 0x59f   : > { %8039 = vmatpush3.bf16.msra.mxu1 %v4944_v25  ;;  %8040 = vmatprep.mubr.msk.bf16.mxu1 %vm8473_vm8, %v8472_v60 }
 0x5a0   : > { %8050 = vmatprep.subr.bf16.mxu1 %v8472_v60 }
 0x5a1   : > { %8011 = vmatmul.mubr.msk.bf16.vlgmr.msra.gmra.mrb[68].mxu0 %vm642_vm9, %v7204_v48 }
 0x5a2   : > { %8021 = vmatpush3.bf16.msra.mxu0 %v4800_v49  ;;  %8022 = vmatprep.mubr.msk.bf16.mxu0 %vm8473_vm8, %v8472_v60  ;;  %v7249_v49 = vld [vmem:[%s10141_s2 + $0x4] sm:$0xf] }
 0x5a3   : > { %8032 = vmatprep.subr.bf16.mxu0 %v8472_v60 }
 0x5a6   : > { %8041 = vmatmul.mubr.msk.bf16.vlgmr.msra.gmra.mrb[76].mxu1 %vm642_vm9, %v7215_v16  ;;  %v5943_v16 = vsel %vm646_vm7, %v5938_v26, 0  ;;  %v7262_v26 = vld [vmem:[%s10141_s2 + $0x18] sm:$0xf] }
 0x5a7   : > { %8051 = vmatpush3.bf16.msra.mxu1 %v5047_v51  ;;  %8052 = vmatprep.mubr.msk.bf16.mxu1 %vm8473_vm8, %v8472_v60  ;;  %v6192_v51 = vpop.permute.xlu0 %6191 }
 0x5a8   : > { %8062 = vmatprep.subr.bf16.mxu1 %v8472_v60 }
 0x5a9   : > { %8023 = vmatmul.mubr.msk.bf16.vlgmr.msra.gmra.mrb[72].mxu0 %vm642_vm9, %v7209_v54 }
 0x5aa   : > { %8033 = vmatpush3.bf16.msra.mxu0 %v4895_v4  ;;  %8034 = vmatprep.mubr.msk.bf16.mxu0 %vm8473_vm8, %v8472_v60  ;;  %v6242_v4 = vpop.permute.xlu1 %6241 }
 0x5ab   : > { %8044 = vmatprep.subr.bf16.mxu0 %v8472_v60  ;;  %v6367_v7 = vpop.permute.xlu0 %6366 }
 0x5ae   : > { %8053 = vmatmul.mubr.msk.bf16.vlgmr.msra.gmra.mrb[80].mxu1 %vm642_vm9, %v7220_v23 }
 0x5af   : > { %8063 = vmatpush3.bf16.msra.mxu1 %v5149_v2  ;;  %8064 = vmatprep.mubr.msk.bf16.mxu1 %vm8473_vm8, %v8472_v60  ;;  %v6197_v2 = vsel %vm646_vm7, %v6192_v51, 0 }
 0x5b0   : > { %8074 = vmatprep.subr.bf16.mxu1 %v8472_v60 }
 0x5b1   : > { %8035 = vmatmul.mubr.msk.bf16.vlgmr.msra.gmra.mrb[76].mxu0 %vm642_vm9, %v7213_v56 }
 0x5b2   : > { %8045 = vmatpush3.bf16.msra.mxu0 %v4997_v58  ;;  %8046 = vmatprep.mubr.msk.bf16.mxu0 %vm8473_vm8, %v8472_v60 }
 0x5b3   : > { %8056 = vmatprep.subr.bf16.mxu0 %v8472_v60 }
 0x5b6   : > { %8065 = vmatmul.mubr.msk.bf16.vlgmr.msra.gmra.mrb[84].mxu1 %vm642_vm9, %v7224_v62 }
 0x5b7   : > { %8075 = vmatpush3.bf16.msra.mxu1 %v5324_v63  ;;  %8076 = vmatprep.mubr.msk.bf16.mxu1 %vm8473_vm8, %v8472_v60  ;;  %v7253_v63 = vld [vmem:[%s10141_s2 + $0x8] sm:$0xf] }
 0x5b8   : > { %8086 = vmatprep.subr.bf16.mxu1 %v8472_v60 }
 0x5b9   : > { %8047 = vmatmul.mubr.msk.bf16.vlgmr.msra.gmra.mrb[80].mxu0 %vm642_vm9, %v7217_v18 }
 0x5ba   : > { %8057 = vmatpush3.bf16.msra.mxu0 %v5096_v6  ;;  %8058 = vmatprep.mubr.msk.bf16.mxu0 %vm8473_vm8, %v8472_v60  ;;  %v6045_v6 = vsel %vm646_vm7, %v6040_v33, 0 }
 0x5bb   : > { %8068 = vmatprep.subr.bf16.mxu0 %v8472_v60 }
 0x5be   : > { %8077 = vmatmul.mubr.msk.bf16.vlgmr.msra.gmra.mrb[88].mxu1 %vm642_vm9, %v7229_v9  ;;  %v6462_v9 = vpop.permute.xlu1 %6461 }
 0x5bf   : > { %8087 = vmatpush3.bf16.msra.mxu1 %v5419_v20  ;;  %8088 = vmatprep.mubr.msk.bf16.mxu1 %vm8473_vm8, %v8472_v60  ;;  %v6467_v38 = vsel %vm646_vm7, %v6462_v9, 0 }
 0x5c0   : > { %8098 = vmatprep.subr.bf16.mxu1 %v8472_v60 }
 0x5c1   : > { %8059 = vmatmul.mubr.msk.bf16.vlgmr.msra.gmra.mrb[84].mxu0 %vm642_vm9, %v7222_v11 }
 0x5c2   : > { %8069 = vmatpush3.bf16.msra.mxu0 %v5199_v15  ;;  %8070 = vmatprep.mubr.msk.bf16.mxu0 %vm8473_vm8, %v8472_v60  ;;  %v7264_v15 = vld [vmem:[%s10141_s2 + $0x1c] sm:$0xf] }
 0x5c3   : > { %8080 = vmatprep.subr.bf16.mxu0 %v8472_v60 }
 0x5c6   : > { %8089 = vmatmul.mubr.msk.bf16.vlgmr.msra.gmra.mrb[92].mxu1 %vm642_vm9, %v7233_v21  ;;  %v6372_v21 = vsel %vm646_vm7, %v6367_v7, 0 }
 0x5c7   : > { %8099 = vmatpush3.bf16.msra.mxu1 %v5521_v24  ;;  %8100 = vmatprep.mubr.msk.bf16.mxu1 %vm8473_vm8, %v8472_v60 }
 0x5c8   : > { %8110 = vmatprep.subr.bf16.mxu1 %v8472_v60 }
 0x5c9   : > { %8071 = vmatmul.mubr.msk.bf16.vlgmr.msra.gmra.mrb[88].mxu0 %vm642_vm9, %v7227_v55 }
 0x5ca   : > { %8081 = vmatpush3.bf16.msra.mxu0 %v5370_v28  ;;  %8082 = vmatprep.mubr.msk.bf16.mxu0 %vm8473_vm8, %v8472_v60 }
 0x5cb   : > { %8092 = vmatprep.subr.bf16.mxu0 %v8472_v60 }
 0x5ce   : > { %8101 = vmatmul.mubr.msk.bf16.vlgmr.msra.gmra.mrb[96].mxu1 %vm642_vm9, %v7237_v30  ;;  %v6564_v30 = vpop.permute.xlu0 %6563 }
 0x5cf   : > { %8111 = vmatpush3.bf16.msra.mxu1 %v5620_v22  ;;  %8112 = vmatprep.mubr.msk.bf16.mxu1 %vm8473_vm8, %v8472_v60 }
 0x5d0   : > { %8122 = vmatprep.subr.bf16.mxu1 %v8472_v60 }
 0x5d1   : > { %8083 = vmatmul.mubr.msk.bf16.vlgmr.msra.gmra.mrb[92].mxu0 %vm642_vm9, %v5313_v34 }
 0x5d2   : > { %8093 = vmatpush3.bf16.msra.mxu0 %v5468_v61  ;;  %8094 = vmatprep.mubr.msk.bf16.mxu0 %vm8473_vm8, %v8472_v60  ;;  %v9775_v0 = vpop.permute.xlu0 %6715 }
 0x5d3   : > { %8104 = vmatprep.subr.bf16.mxu0 %v8472_v60 }
 0x5d6   : > { %8113 = vmatmul.mubr.msk.bf16.vlgmr.msra.gmra.mrb[100].mxu1 %vm642_vm9, %v7242_v29  ;;  %v9764_v29 = vpop.permute.xlu1 %6613 }
 0x5d7   : > { %8123 = vmatpush3.bf16.msra.mxu1 %v5723_v27  ;;  %8124 = vmatprep.mubr.msk.bf16.mxu1 %vm8473_vm8, %v8472_v60 }
 0x5d8   : > { %8134 = vmatprep.subr.bf16.mxu1 %v8472_v60 }
 0x5d9   : > { %8095 = vmatmul.mubr.msk.bf16.vlgmr.msra.gmra.mrb[96].mxu0 %vm642_vm9, %v7235_v35 }
 0x5da   : > { %8105 = vmatpush3.bf16.msra.mxu0 %v5571_v19  ;;  %8106 = vmatprep.mubr.msk.bf16.mxu0 %vm8473_vm8, %v8472_v60  ;;  %v9781_v41 = vpop.permute.xlu1 %6765 }
 0x5db   : > { %8116 = vmatprep.subr.bf16.mxu0 %v8472_v60 }
 0x5de   : > { %8125 = vmatmul.mubr.msk.bf16.vlgmr.msra.gmra.mrb[104].mxu1 %vm642_vm9, %v7247_v37  ;;  %v7269_v37 = vld [vmem:[%s10141_s2 + $0x4] sm:$0xf] }
 0x5df   : > { %8135 = vmatpush3.bf16.msra.mxu1 %v5894_v12  ;;  %8136 = vmatprep.mubr.msk.bf16.mxu1 %vm8473_vm8, %v8472_v60 }
 0x5e0   : > { %8146 = vmatprep.subr.bf16.mxu1 %v8472_v60 }
 0x5e1   : > { %8107 = vmatmul.mubr.msk.bf16.vlgmr.msra.gmra.mrb[100].mxu0 %vm642_vm9, %v7240_v40 }
 0x5e2   : > { %8117 = vmatpush3.bf16.msra.mxu0 %v5673_v10  ;;  %8118 = vmatprep.mubr.msk.bf16.mxu0 %vm8473_vm8, %v8472_v60 }
 0x5e3   : > { %8128 = vmatprep.subr.bf16.mxu0 %v8472_v60 }
 0x5e6   : > { %8137 = vmatmul.mubr.msk.bf16.vlgmr.msra.gmra.mrb[108].mxu1 %vm642_vm9, %v5837_v31 }
 0x5e7   : > { %8147 = vmatpush3.bf16.msra.mxu1 %v5992_v42  ;;  %8148 = vmatprep.mubr.msk.bf16.mxu1 %vm8473_vm8, %v8472_v60 }
 0x5e8   : > { %8158 = vmatprep.subr.bf16.mxu1 %v8472_v60 }
 0x5e9   : > { %8119 = vmatmul.mubr.msk.bf16.vlgmr.msra.gmra.mrb[104].mxu0 %vm642_vm9, %v7244_v43  ;;  %v6247_v43 = vsel %vm646_vm7, %v6242_v4, 0  ;;  %v7267_v4 = vld [vmem:[%s10141_s2 + $0x20] sm:$0xf] }
 0x5ea   : > { %8129 = vmatpush3.bf16.msra.mxu0 %v5848_v44  ;;  %8130 = vmatprep.mubr.msk.bf16.mxu0 %vm8473_vm8, %v8472_v60 }
 0x5eb   : > { %8140 = vmatprep.subr.bf16.mxu0 %v8472_v60 }
 0x5ec   : > { %v2717_v14 = vpop.f32.mrb[0].mxu0 }
 0x5ed   : > { %v2764_v25 = vadd.f32 %v9480_v13, %v2717_v14  ;;  %v7808_v3 = vpop.f32.mrb[1].mxu0 }
 0x5ee   : > { %v2720_v48 = vpop.f32.mrb[2].mxu0  ;;  %8149 = vmatmul.mubr.msk.bf16.vlgmr.msra.gmra.mrb[112].mxu1 %vm642_vm9, %v7255_v46  ;;  %v9792_v46 = vpop.permute.xlu0 %3132 }
 0x5ef   : > { %v7809_v50 = vpop.f32.mrb[3].mxu0  ;;  %8159 = vmatpush3.bf16.msra.mxu1 %v6095_v47  ;;  %8160 = vmatprep.mubr.msk.bf16.mxu1 %vm8473_vm8, %v8472_v60  ;;  %v9796_v47 = vpop.permute.xlu1 %3139 }
 0x5f0   : > { %8170 = vmatprep.subr.bf16.mxu1 %v8472_v60  ;;  %v6569_v50 = vsel %vm646_vm7, %v6564_v30, 0 }
 0x5f1   : > { %8131 = vmatmul.mubr.msk.bf16.vlgmr.msra.gmra.mrb[108].mxu0 %vm642_vm9, %v7249_v49  ;;  %v2968_v13 = vpop.f32.mrb[8].mxu1  ;;  %v7273_v49 = vld [vmem:[%s10141_s2 + $0x8] sm:$0xf] }
 0x5f2   : > { %8141 = vmatpush3.bf16.msra.mxu0 %v5943_v16  ;;  %8142 = vmatprep.mubr.msk.bf16.mxu0 %vm8473_vm8, %v8472_v60  ;;  %v7838_v52 = vpop.f32.mrb[9].mxu1 }
 0x5f3   : > { %8152 = vmatprep.subr.bf16.mxu0 %v8472_v60  ;;  %v2971_v54 = vpop.f32.mrb[10].mxu1 }
 0x5f4   : > { %v2813_v23 = vpop.f32.mrb[4].mxu0  ;;  %v7839_v56 = vpop.f32.mrb[11].mxu1 }
 0x5f5   : > { %v2819_v58 = vadd.f32 %v2813_v23, %v2764_v25  ;;  %v7820_v59 = vpop.f32.mrb[5].mxu0  ;;  %v8480_v25 = vmov 1966171168  }
 0x5f6   : > { %v2816_v62 = vpop.f32.mrb[6].mxu0  ;;  %8161 = vmatmul.mubr.msk.bf16.vlgmr.msra.gmra.mrb[116].mxu1 %vm642_vm9, %v7260_v53  ;;  %v3152_v3 = vunpack.c.l.s4 %v8480_v25  ;;  %v6619_v25 = vsel %vm646_vm7, %v9764_v29, 0 }
 0x5f7   : > { %v2869_v5 = vadd.f32 %v9499_v32, %v2819_v58  ;;  %v7821_v18 = vpop.f32.mrb[7].mxu0  ;;  %8171 = vmatpush3.bf16.msra.mxu1 %v6197_v2  ;;  %8172 = vmatprep.mubr.msk.bf16.mxu1 %vm8473_vm8, %v8472_v60  ;;  %v6418_v2 = vsel %vm646_vm7, %v9247_v36, 0  ;;  %v3155_v58 = vshrl.u32 %v293_v1, 7 }
 0x5f8   : > { %8182 = vmatprep.subr.bf16.mxu1 %v8472_v60  ;;  %v3153_v56 = vunpack.c.0.s8 %v3152_v3 }
 0x5f9   : > { %8143 = vmatmul.mubr.msk.bf16.vlgmr.msra.gmra.mrb[112].mxu0 %vm642_vm9, %v7253_v63  ;;  %v3072_v20 = vpop.f32.mrb[12].mxu1  ;;  %v9817_v63 = vpop.permute.xlu1 %3145 }
 0x5fa   : > { %8153 = vmatpush3.bf16.msra.mxu0 %v6045_v6  ;;  %8154 = vmatprep.mubr.msk.bf16.mxu0 %vm8473_vm8, %v8472_v60  ;;  %v7850_v11 = vpop.f32.mrb[13].mxu1  ;;  %v7277_v6 = vld [vmem:[%s10141_s2 + $0x10] sm:$0xf] }
 0x5fb   : > { %8164 = vmatprep.subr.bf16.mxu0 %v8472_v60  ;;  %v3075_v32 = vpop.f32.mrb[14].mxu1 }
 0x5fc   : > { %v2917_v17 = vpop.f32.mrb[8].mxu0  ;;  %v7851_v24 = vpop.f32.mrb[15].mxu1 }
 0x5fd   : > { %v2923_v55 = vadd.f32 %v2917_v17, %v2869_v5  ;;  %v7832_v28 = vpop.f32.mrb[9].mxu0  ;;  %v9821_v5 = vsub.s32 %v3153_v56, %v3155_v58 }
 0x5fe   : > { %v2920_v22 = vpop.f32.mrb[10].mxu0  ;;  %8173 = vmatmul.mubr.msk.bf16.vlgmr.msra.gmra.mrb[120].mxu1 %vm642_vm9, %v7264_v15 }
 0x5ff   : > { %v2974_v34 = vadd.f32 %v2968_v13, %v2923_v55  ;;  %v7833_v61 = vpop.f32.mrb[11].mxu0  ;;  %8183 = vmatpush3.bf16.msra.mxu1 %v6372_v21  ;;  %8184 = vmatprep.mubr.msk.bf16.mxu1 %vm8473_vm8, %v8472_v60  ;;  %v6361_v21 = vld [vmem:[%s10141_s2] sm:$0xf] }
 0x600   : > { %8194 = vmatprep.subr.bf16.mxu1 %v8472_v60  ;;  %v8369_v22 = vld [vmem:[#allocation2 + $0x20] sm:$0xf] }
 0x601   : > { %8155 = vmatmul.mubr.msk.bf16.vlgmr.msra.gmra.mrb[116].mxu0 %vm642_vm9, %v7257_v8  ;;  %v9770_v27 = vpop.f32.mrb[16].mxu1 }
 0x602   : > { %8165 = vmatpush3.bf16.msra.mxu0 %v6144_v57  ;;  %8166 = vmatprep.mubr.msk.bf16.mxu0 %vm8473_vm8, %v8472_v60  ;;  %v7862_v35 = vpop.f32.mrb[17].mxu1 }
 0x603   : > { %8176 = vmatprep.subr.bf16.mxu0 %v8472_v60  ;;  %v3267_v19 = vpop.f32.mrb[18].mxu1 }
 0x604   : > { %v3018_v12 = vpop.f32.mrb[12].mxu0  ;;  %v7863_v40 = vpop.f32.mrb[19].mxu1 }
 0x605   : > { %v3024_v10 = vadd.f32 %v3018_v12, %v2974_v34  ;;  %v7844_v31 = vpop.f32.mrb[13].mxu0  ;;  %v7282_v40 = vld [vmem:[%s10141_s2 + $0x18] sm:$0xf] }
 0x606   : > { %v3021_v42 = vpop.f32.mrb[14].mxu0  ;;  %8185 = vmatmul.mubr.msk.bf16.vlgmr.msra.gmra.mrb[124].mxu1 %vm642_vm9, %v7269_v37 }
 0x607   : > { %v3078_v44 = vadd.f32 %v3072_v20, %v3024_v10  ;;  %v7845_v45 = vpop.f32.mrb[15].mxu0  ;;  %8195 = vmatpush3.bf16.msra.mxu1 %v6467_v38  ;;  %8196 = vmatprep.mubr.msk.bf16.mxu1 %vm8473_vm8, %v8472_v60  ;;  %v6668_v20 = vsel %vm646_vm7, %v9255_v39, 0  ;;  %v6516_v39 = vsel %vm646_vm7, %v8369_v22, 0  ;;  %v6771_v10 = vsel %vm646_vm7, %v9781_v41, 0  ;;  %v7275_v41 = vld [vmem:[%s10141_s2 + $0xc] sm:$0xf] }
 0x608   : > { %8206 = vmatprep.subr.bf16.mxu1 %v8472_v60 }
 0x609   : > { %8167 = vmatmul.mubr.msk.bf16.vlgmr.msra.gmra.mrb[120].mxu0 %vm642_vm9, %v7262_v26  ;;  %v3359_v33 = vpop.f32.mrb[20].mxu1 }
 0x60a   : > { %8177 = vmatpush3.bf16.msra.mxu0 %v6247_v43  ;;  %8178 = vmatprep.mubr.msk.bf16.mxu0 %vm8473_vm8, %v8472_v60  ;;  %v7874_v14 = vpop.f32.mrb[21].mxu1 }
 0x60b   : > { %8188 = vmatprep.subr.bf16.mxu0 %v8472_v60  ;;  %v3362_v48 = vpop.f32.mrb[22].mxu1 }
 0x60c   : > { %v3123_v16 = vpop.f32.mrb[16].mxu0  ;;  %v7875_v13 = vpop.f32.mrb[23].mxu1 }
 0x60d   : > { %v3129_v51 = vadd.f32 %v3123_v16, %v3078_v44  ;;  %v7856_v52 = vpop.f32.mrb[17].mxu0  ;;  %v7287_v13 = vld [vmem:[%s10141_s2 + $0x20] sm:$0xf] }
 0x60e   : > { %v3126_v54 = vpop.f32.mrb[18].mxu0  ;;  %8197 = vmatmul.mubr.msk.bf16.vlgmr.msra.gmra.mrb[128].mxu1 %vm642_vm9, %v7273_v49 }
 0x60f   : > { %v3135_v53 = vadd.f32 %v9792_v46, %v3129_v51  ;;  %v7857_v23 = vpop.f32.mrb[19].mxu0  ;;  %8207 = vmatpush3.bf16.msra.mxu1 %v6569_v50  ;;  %8208 = vmatprep.mubr.msk.bf16.mxu1 %vm8473_vm8, %v8472_v60 }
 0x610   : > { %8218 = vmatprep.subr.bf16.mxu1 %v8472_v60  ;;  %v7280_v23 = vld [vmem:[%s10141_s2 + $0x14] sm:$0xf] }
 0x611   : > { %v3136_v59 = vmax.f32 %v3135_v53, 0.0  ;;  %8179 = vmatmul.mubr.msk.bf16.vlgmr.msra.gmra.mrb[124].mxu0 %vm642_vm9, %v7267_v4  ;;  %v9815_v62 = vpop.f32.mrb[24].mxu1 }
 0x612   : > { %8189 = vmatpush3.bf16.msra.mxu0 %v6418_v2  ;;  %8190 = vmatprep.mubr.msk.bf16.mxu0 %vm8473_vm8, %v8472_v60  ;;  %v7886_v36 = vpop.f32.mrb[25].mxu1  ;;  %v6721_v2 = vsel %vm646_vm7, %v9775_v0, 0  ;;  %v7284_v0 = vld [vmem:[%s10141_s2 + $0x1c] sm:$0xf] }
 0x613   : > { %v3142_v1 = vmul.f32 %v9796_v47, %v3136_v59  ;;  %8200 = vmatprep.subr.bf16.mxu0 %v8472_v60  ;;  %v3464_v18 = vpop.f32.mrb[26].mxu1 }
 0x614   : > { %v3310_v7 = vpop.f32.mrb[20].mxu0  ;;  %v7887_v9 = vpop.f32.mrb[27].mxu1 }
 0x615   : > { %v3311_v11 = vadd.f32 %v3310_v7, %v9770_v27  ;;  %v3148_v32 = vadd.f32 %v9817_v63, %v3142_v1  ;;  %v7868_v15 = vpop.f32.mrb[21].mxu0 }
 0x616   : > { %v3313_v17 = vpop.f32.mrb[22].mxu0  ;;  %8209 = vmatmul.mubr.msk.bf16.vlgmr.msra.gmra.mrb[132].mxu1 %vm642_vm9, %v7277_v6 }
 0x617   : > { %v3365_v24 = vadd.f32 %v3359_v33, %v3311_v11  ;;  %v3150_v55 = vcombine.high %v3148_v32, %v3148_v32  ;;  %v3157_v28 = vrot.slane %v3148_v32, %v9821_v5  ;;  %v7869_v30 = vpop.f32.mrb[23].mxu0  ;;  %8219 = vmatpush3.bf16.msra.mxu1 %v6668_v20  ;;  %8220 = vmatprep.mubr.msk.bf16.mxu1 %vm8473_vm8, %v8472_v60 }
 0x618   : > { %8230 = vmatprep.subr.bf16.mxu1 %v8472_v60 }
 0x619   : > { %v3164_v8 = vrot.slane %v3150_v55, %v9821_v5  ;;  %v3165_v34 = vcombine.high %v3157_v28, %v3157_v28  ;;  %v3173_v61 = vrot.slane %v3157_v28, %v9821_v5  ;;  %8191 = vmatmul.mubr.msk.bf16.vlgmr.msra.gmra.mrb[128].mxu0 %vm642_vm9, %v6361_v21  ;;  %v3560_v57 = vpop.f32.mrb[28].mxu1 }
 0x61a   : > { %8201 = vmatpush3.bf16.msra.mxu0 %v6516_v39  ;;  %8202 = vmatprep.mubr.msk.bf16.mxu0 %vm8473_vm8, %v8472_v60  ;;  %v7898_v27 = vpop.f32.mrb[29].mxu1 }
 0x61b   : > { %v3166_v35 = vcombine.high %v3164_v8, %v3164_v8  ;;  %v3180_v19 = vrot.slane %v3164_v8, %v9821_v5  ;;  %v3187_v37 = vrot.slane %v3165_v34, %v9821_v5  ;;  %v3195_v38 = vcombine.high %v3173_v61, %v3173_v61  ;;  %3208 = vst.msk [vmem:[%s8621_s21] sm:$0x1] %vm3207_vm11, %v3173_v61  ;;  %v3563_v12 = vpop.f32.mrb[30].mxu1 }
 0x61c   : > { %8212 = vmatprep.subr.bf16.mxu0 %v8472_v60  ;;  %v3408_v31 = vpop.f32.mrb[24].mxu0  ;;  %v7899_v42 = vpop.f32.mrb[31].mxu1 }
 0x61d   : > { %v3194_v26 = vrot.slane %v3166_v35, %v9821_v5  ;;  %v3196_v43 = vcombine.high %v3180_v19, %v3180_v19  ;;  %v3197_v44 = vcombine.high %v3187_v37, %v3187_v37  ;;  %3209 = vst.msk [vmem:[%s8621_s21 + $0x8] sm:$0x1] %vm3207_vm11, %v3187_v37  ;;  %3210 = vst.msk [vmem:[%s8621_s21 + $0x10] sm:$0x1] %vm3207_vm11, %v3195_v38  ;;  %v7880_v33 = vpop.f32.mrb[25].mxu0 }
 0x61e   : > { %3212 = vst.msk [vmem:[%s8621_s21 + $0x20] sm:$0x1] %vm3207_vm11, %v3180_v19  ;;  %v3414_v45 = vadd.f32 %v3408_v31, %v3365_v24  ;;  %v3411_v14 = vpop.f32.mrb[26].mxu0  ;;  %8221 = vmatmul.mubr.msk.bf16.vlgmr.msra.gmra.mrb[136].mxu1 %vm642_vm9, %v7282_v40 }
 0x61f   : > { %v3198_v3 = vcombine.high %v3194_v26, %v3194_v26  ;;  %3211 = vst.msk [vmem:[%s8621_s21 + $0x18] sm:$0x1] %vm3207_vm11, %v3197_v44  ;;  %3213 = vst.msk [vmem:[%s8621_s21 + $0x28] sm:$0x1] %vm3207_vm11, %v3194_v26  ;;  %v7881_v49 = vpop.f32.mrb[27].mxu0  ;;  %8231 = vmatpush3.bf16.msra.mxu1 %v6771_v10  ;;  %8232 = vmatprep.mubr.msk.bf16.mxu1 %vm8473_vm8, %v8472_v60 }
 0x620   : > { %3214 = vst.msk [vmem:[%s8621_s21 + $0x30] sm:$0x1] %vm3207_vm11, %v3196_v43  ;;  %v3467_v48 = vadd.f32 %v9815_v62, %v3414_v45 }
 0x621   : > { %3215 = vst.msk [vmem:[%s8621_s21 + $0x38] sm:$0x1] %vm3207_vm11, %v3198_v3  ;;  %8203 = vmatmul.mubr.msk.bf16.vlgmr.msra.gmra.mrb[132].mxu0 %vm642_vm9, %v7275_v41  ;;  %v3663_v50 = vpop.f32.mrb[32].mxu1 }
 0x622   : > { %8213 = vmatpush3.bf16.msra.mxu0 %v6619_v25  ;;  %8214 = vmatprep.mubr.msk.bf16.mxu0 %vm8473_vm8, %v8472_v60  ;;  %v7910_v29 = vpop.f32.mrb[33].mxu1 }
 0x623   : > { %8224 = vmatprep.subr.bf16.mxu0 %v8472_v60  ;;  %v3666_v16 = vpop.f32.mrb[34].mxu1 }
 0x624   : > { %v3511_v51 = vpop.f32.mrb[28].mxu0  ;;  %v7911_v52 = vpop.f32.mrb[35].mxu1 }
 0x625   : > { %v3517_v54 = vadd.f32 %v3511_v51, %v3467_v48  ;;  %v7892_v4 = vpop.f32.mrb[29].mxu0 }
 0x626   : > { %v3514_v53 = vpop.f32.mrb[30].mxu0  ;;  %8233 = vmatmul.mubr.msk.bf16.vlgmr.msra.gmra.mrb[140].mxu1 %vm642_vm9, %v7287_v13 }
 0x627   : > { %v3566_v56 = vadd.f32 %v3560_v57, %v3517_v54  ;;  %v7893_v58 = vpop.f32.mrb[31].mxu0 }
 0x629   : > { %8215 = vmatmul.mubr.msk.bf16.vlgmr.msra.gmra.mrb[136].mxu0 %vm642_vm9, %v7280_v23  ;;  %v3834_v59 = vpop.f32.mrb[36].mxu1 }
 0x62a   : > { %8225 = vmatpush3.bf16.msra.mxu0 %v6721_v2  ;;  %8226 = vmatprep.mubr.msk.bf16.mxu0 %vm8473_vm8, %v8472_v60  ;;  %v7922_v62 = vpop.f32.mrb[37].mxu1 }
 0x62b   : > { %v3837_v36 = vpop.f32.mrb[38].mxu1 }
 0x62c   : > { %v3613_v1 = vpop.f32.mrb[32].mxu0  ;;  %v7923_v18 = vpop.f32.mrb[39].mxu1 }
 0x62d   : > { %v3619_v6 = vadd.f32 %v3613_v1, %v3566_v56  ;;  %v7904_v7 = vpop.f32.mrb[33].mxu0 }
 0x62e   : > { %v3616_v9 = vpop.f32.mrb[34].mxu0 }
 0x62f   : > { %v3669_v20 = vadd.f32 %v3663_v50, %v3619_v6  ;;  %v7905_v11 = vpop.f32.mrb[35].mxu0 }
 0x631   : > { %v3670_v32 = vadd.f32 %v3669_v20, %v9792_v46  ;;  %8227 = vmatmul.mubr.msk.bf16.vlgmr.msra.gmra.mrb[140].mxu0 %vm642_vm9, %v7284_v0  ;;  %v3932_v15 = vpop.f32.mrb[40].mxu1 }
 0x632   : > { %v7934_v17 = vpop.f32.mrb[41].mxu1 }
 0x633   : > { %v3671_v60 = vmax.f32 %v3670_v32, 0.0  ;;  %v3935_v21 = vpop.f32.mrb[42].mxu1 }
 0x634   : > { %v3788_v24 = vpop.f32.mrb[36].mxu0  ;;  %v7935_v55 = vpop.f32.mrb[43].mxu1 }
 0x635   : > { %v3672_v28 = vmul.f32 %v3671_v60, %v9796_v47  ;;  %v3835_v30 = vadd.f32 %v3834_v59, %v3788_v24  ;;  %v7916_v22 = vpop.f32.mrb[37].mxu0 }
 0x636   : > { %v3791_v39 = vpop.f32.mrb[38].mxu0 }
 0x637   : > { %v3673_v8 = vadd.f32 %v3672_v28, %v9817_v63  ;;  %v7917_v34 = vpop.f32.mrb[39].mxu0 }
 0x639   : > { %v3675_v61 = vcombine.high %v3673_v8, %v3673_v8  ;;  %v3682_v57 = vrot.slane %v3673_v8, %v9821_v5  ;;  %v4035_v27 = vpop.f32.mrb[44].mxu1 }
 0x63a   : > { %v7946_v35 = vpop.f32.mrb[45].mxu1 }
 0x63b   : > { %v3689_v19 = vrot.slane %v3675_v61, %v9821_v5  ;;  %v3690_v37 = vcombine.high %v3682_v57, %v3682_v57  ;;  %v3698_v38 = vrot.slane %v3682_v57, %v9821_v5  ;;  %v4038_v12 = vpop.f32.mrb[46].mxu1 }
 0x63c   : > { %v3883_v40 = vpop.f32.mrb[40].mxu0  ;;  %v7947_v10 = vpop.f32.mrb[47].mxu1 }
 0x63d   : > { %v3691_v31 = vcombine.high %v3689_v19, %v3689_v19  ;;  %v3705_v42 = vrot.slane %v3689_v19, %v9821_v5  ;;  %v3712_v26 = vrot.slane %v3690_v37, %v9821_v5  ;;  %v3720_v43 = vcombine.high %v3698_v38, %v3698_v38  ;;  %3732 = vst.msk [vmem:[%s8621_s21 + $0x1] sm:$0x1] %vm3207_vm11, %v3698_v38  ;;  %v7928_v44 = vpop.f32.mrb[41].mxu0 }
 0x63e   : > { %v3889_v45 = vadd.f32 %v3883_v40, %v3835_v30  ;;  %v3886_v33 = vpop.f32.mrb[42].mxu0 }
 0x63f   : > { %v3719_v14 = vrot.slane %v3691_v31, %v9821_v5  ;;  %v3721_v41 = vcombine.high %v3705_v42, %v3705_v42  ;;  %v3722_v25 = vcombine.high %v3712_v26, %v3712_v26  ;;  %3733 = vst.msk [vmem:[%s8621_s21 + $0x9] sm:$0x1] %vm3207_vm11, %v3712_v26  ;;  %3734 = vst.msk [vmem:[%s8621_s21 + $0x11] sm:$0x1] %vm3207_vm11, %v3720_v43  ;;  %v7929_v3 = vpop.f32.mrb[43].mxu0 }
 0x640   : > { %3736 = vst.msk [vmem:[%s8621_s21 + $0x21] sm:$0x1] %vm3207_vm11, %v3705_v42  ;;  %v3938_v48 = vadd.f32 %v3932_v15, %v3889_v45 }
 0x641   : > { %v3723_v49 = vcombine.high %v3719_v14, %v3719_v14  ;;  %3735 = vst.msk [vmem:[%s8621_s21 + $0x19] sm:$0x1] %vm3207_vm11, %v3722_v25  ;;  %3737 = vst.msk [vmem:[%s8621_s21 + $0x29] sm:$0x1] %vm3207_vm11, %v3719_v14  ;;  %v4137_v50 = vpop.f32.mrb[48].mxu1 }
 0x642   : > { %3738 = vst.msk [vmem:[%s8621_s21 + $0x31] sm:$0x1] %vm3207_vm11, %v3721_v41  ;;  %v7958_v29 = vpop.f32.mrb[49].mxu1 }
 0x643   : > { %3739 = vst.msk [vmem:[%s8621_s21 + $0x39] sm:$0x1] %vm3207_vm11, %v3723_v49  ;;  %v4140_v16 = vpop.f32.mrb[50].mxu1 }
 0x644   : > { %v3985_v13 = vpop.f32.mrb[44].mxu0  ;;  %v7959_v51 = vpop.f32.mrb[51].mxu1 }
 0x645   : > { %v3991_v52 = vadd.f32 %v3985_v13, %v3938_v48  ;;  %v7940_v54 = vpop.f32.mrb[45].mxu0 }
 0x646   : > { %v3988_v4 = vpop.f32.mrb[46].mxu0 }
 0x647   : > { %v4041_v53 = vadd.f32 %v4035_v27, %v3991_v52  ;;  %v7941_v23 = vpop.f32.mrb[47].mxu0 }
 0x649   : > { %v4312_v2 = vpop.f32.mrb[52].mxu1 }
 0x64a   : > { %v7970_v56 = vpop.f32.mrb[53].mxu1 }
 0x64b   : > { %v4315_v58 = vpop.f32.mrb[54].mxu1 }
 0x64c   : > { %v4084_v59 = vpop.f32.mrb[48].mxu0  ;;  %v7971_v62 = vpop.f32.mrb[55].mxu1 }
 0x64d   : > { %v4090_v36 = vadd.f32 %v4084_v59, %v4041_v53  ;;  %v7952_v1 = vpop.f32.mrb[49].mxu0 }
 0x64e   : > { %v4087_v18 = vpop.f32.mrb[50].mxu0 }
 0x64f   : > { %v4143_v6 = vadd.f32 %v4137_v50, %v4090_v36  ;;  %v7953_v7 = vpop.f32.mrb[51].mxu0 }
 0x651   : > { %v4407_v9 = vpop.f32.mrb[56].mxu1 }
 0x652   : > { %v7982_v0 = vpop.f32.mrb[57].mxu1 }
 0x653   : > { %v4410_v20 = vpop.f32.mrb[58].mxu1 }
 0x654   : > { %v4187_v11 = vpop.f32.mrb[52].mxu0  ;;  %v7983_v32 = vpop.f32.mrb[59].mxu1 }
 0x655   : > { %v4193_v15 = vadd.f32 %v4187_v11, %v4143_v6  ;;  %v7964_v17 = vpop.f32.mrb[53].mxu0 }
 0x656   : > { %v4190_v60 = vpop.f32.mrb[54].mxu0 }
 0x657   : > { %v4194_v21 = vadd.f32 %v4193_v15, %v9792_v46  ;;  %v7965_v24 = vpop.f32.mrb[55].mxu0 }
 0x659   : > { %v4195_v55 = vmax.f32 %v4194_v21, 0.0  ;;  %v4509_v28 = vpop.f32.mrb[60].mxu1 }
 0x65a   : > { %v7994_v30 = vpop.f32.mrb[61].mxu1 }
 0x65b   : > { %v4196_v22 = vmul.f32 %v4195_v55, %v9796_v47  ;;  %v4512_v39 = vpop.f32.mrb[62].mxu1 }
 0x65c   : > { %v4358_v8 = vpop.f32.mrb[56].mxu0  ;;  %v7995_v34 = vpop.f32.mrb[63].mxu1 }
 0x65d   : > { %v4197_v61 = vadd.f32 %v4196_v22, %v9817_v63  ;;  %v4359_v57 = vadd.f32 %v4358_v8, %v4312_v2  ;;  %v7976_v27 = vpop.f32.mrb[57].mxu0 }
 0x65e   : > { %v4361_v35 = vpop.f32.mrb[58].mxu0 }
 0x65f   : > { %v4199_v19 = vcombine.high %v4197_v61, %v4197_v61  ;;  %v4206_v37 = vrot.slane %v4197_v61, %v9821_v5  ;;  %v4413_v38 = vadd.f32 %v4407_v9, %v4359_v57  ;;  %v7977_v12 = vpop.f32.mrb[59].mxu0 }
 0x661   : > { %v4213_v40 = vrot.slane %v4199_v19, %v9821_v5  ;;  %v4214_v10 = vcombine.high %v4206_v37, %v4206_v37  ;;  %v4222_v31 = vrot.slane %v4206_v37, %v9821_v5  ;;  %v4608_v42 = vpop.f32.mrb[64].mxu1 }
 0x662   : > { %v8006_v26 = vpop.f32.mrb[65].mxu1 }
 0x663   : > { %v4215_v43 = vcombine.high %v4213_v40, %v4213_v40  ;;  %v4229_v44 = vrot.slane %v4213_v40, %v9821_v5  ;;  %v4236_v45 = vrot.slane %v4214_v10, %v9821_v5  ;;  %v4244_v33 = vcombine.high %v4222_v31, %v4222_v31  ;;  %4256 = vst.msk [vmem:[%s8621_s21 + $0x2] sm:$0x1] %vm3207_vm11, %v4222_v31  ;;  %v4611_v14 = vpop.f32.mrb[66].mxu1 }
 0x664   : > { %v4456_v41 = vpop.f32.mrb[60].mxu0  ;;  %v8007_v25 = vpop.f32.mrb[67].mxu1 }
 0x665   : > { %v4243_v3 = vrot.slane %v4215_v43, %v9821_v5  ;;  %v4245_v48 = vcombine.high %v4229_v44, %v4229_v44  ;;  %v4246_v49 = vcombine.high %v4236_v45, %v4236_v45  ;;  %4257 = vst.msk [vmem:[%s8621_s21 + $0xa] sm:$0x1] %vm3207_vm11, %v4236_v45  ;;  %4258 = vst.msk [vmem:[%s8621_s21 + $0x12] sm:$0x1] %vm3207_vm11, %v4244_v33  ;;  %v7988_v29 = vpop.f32.mrb[61].mxu0 }
 0x666   : > { %4260 = vst.msk [vmem:[%s8621_s21 + $0x22] sm:$0x1] %vm3207_vm11, %v4229_v44  ;;  %v4462_v50 = vadd.f32 %v4456_v41, %v4413_v38  ;;  %v4459_v16 = vpop.f32.mrb[62].mxu0 }
 0x667   : > { %v4247_v13 = vcombine.high %v4243_v3, %v4243_v3  ;;  %4259 = vst.msk [vmem:[%s8621_s21 + $0x1a] sm:$0x1] %vm3207_vm11, %v4246_v49  ;;  %4261 = vst.msk [vmem:[%s8621_s21 + $0x2a] sm:$0x1] %vm3207_vm11, %v4243_v3  ;;  %v7989_v52 = vpop.f32.mrb[63].mxu0 }
 0x668   : > { %4262 = vst.msk [vmem:[%s8621_s21 + $0x32] sm:$0x1] %vm3207_vm11, %v4245_v48  ;;  %v4515_v51 = vadd.f32 %v4509_v28, %v4462_v50 }
 0x669   : > { %4263 = vst.msk [vmem:[%s8621_s21 + $0x3a] sm:$0x1] %vm3207_vm11, %v4247_v13  ;;  %v4711_v54 = vpop.f32.mrb[68].mxu1 }
 0x66a   : > { %v8018_v4 = vpop.f32.mrb[69].mxu1 }
 0x66b   : > { %v4714_v53 = vpop.f32.mrb[70].mxu1 }
 0x66c   : > { %v4559_v23 = vpop.f32.mrb[64].mxu0  ;;  %v8019_v2 = vpop.f32.mrb[71].mxu1 }
 0x66d   : > { %v4565_v56 = vadd.f32 %v4559_v23, %v4515_v51  ;;  %v8000_v58 = vpop.f32.mrb[65].mxu0 }
 0x66e   : > { %v4562_v59 = vpop.f32.mrb[66].mxu0 }
 0x66f   : > { %v4614_v62 = vadd.f32 %v4608_v42, %v4565_v56  ;;  %v8001_v36 = vpop.f32.mrb[67].mxu0 }
 0x671   : > { %v4882_v1 = vpop.f32.mrb[72].mxu1 }
 0x672   : > { %v8030_v18 = vpop.f32.mrb[73].mxu1 }
 0x673   : > { %v4885_v6 = vpop.f32.mrb[74].mxu1 }
 0x674   : > { %v4661_v7 = vpop.f32.mrb[68].mxu0  ;;  %v8031_v9 = vpop.f32.mrb[75].mxu1 }
 0x675   : > { %v4667_v0 = vadd.f32 %v4661_v7, %v4614_v62  ;;  %v8012_v20 = vpop.f32.mrb[69].mxu0 }
 0x676   : > { %v4664_v11 = vpop.f32.mrb[70].mxu0 }
 0x677   : > { %v4717_v32 = vadd.f32 %v4711_v54, %v4667_v0  ;;  %v8013_v15 = vpop.f32.mrb[71].mxu0 }
 0x679   : > { %v4718_v17 = vadd.f32 %v4717_v32, %v9792_v46  ;;  %v4980_v60 = vpop.f32.mrb[76].mxu1 }
 0x67a   : > { %v8042_v21 = vpop.f32.mrb[77].mxu1 }
 0x67b   : > { %v4719_v24 = vmax.f32 %v4718_v17, 0.0  ;;  %v4983_v55 = vpop.f32.mrb[78].mxu1 }
 0x67c   : > { %v4836_v28 = vpop.f32.mrb[72].mxu0  ;;  %v8043_v30 = vpop.f32.mrb[79].mxu1 }
 0x67d   : > { %v4720_v22 = vmul.f32 %v4719_v24, %v9796_v47  ;;  %v4883_v39 = vadd.f32 %v4882_v1, %v4836_v28  ;;  %v8024_v8 = vpop.f32.mrb[73].mxu0 }
 0x67e   : > { %v4839_v34 = vpop.f32.mrb[74].mxu0 }
 0x67f   : > { %v4721_v61 = vadd.f32 %v4720_v22, %v9817_v63  ;;  %v8025_v57 = vpop.f32.mrb[75].mxu0 }
 0x681   : > { %v4723_v27 = vcombine.high %v4721_v61, %v4721_v61  ;;  %v4730_v35 = vrot.slane %v4721_v61, %v9821_v5  ;;  %v5083_v19 = vpop.f32.mrb[80].mxu1 }
 0x682   : > { %v8054_v37 = vpop.f32.mrb[81].mxu1 }
 0x683   : > { %v4737_v38 = vrot.slane %v4723_v27, %v9821_v5  ;;  %v4738_v12 = vcombine.high %v4730_v35, %v4730_v35  ;;  %v4746_v40 = vrot.slane %v4730_v35, %v9821_v5  ;;  %v5086_v10 = vpop.f32.mrb[82].mxu1 }
 0x684   : > { %v4931_v31 = vpop.f32.mrb[76].mxu0  ;;  %v8055_v42 = vpop.f32.mrb[83].mxu1 }
 0x685   : > { %v4739_v26 = vcombine.high %v4737_v38, %v4737_v38  ;;  %v4753_v43 = vrot.slane %v4737_v38, %v9821_v5  ;;  %v4760_v44 = vrot.slane %v4738_v12, %v9821_v5  ;;  %v4768_v45 = vcombine.high %v4746_v40, %v4746_v40  ;;  %4780 = vst.msk [vmem:[%s8621_s21 + $0x3] sm:$0x1] %vm3207_vm11, %v4746_v40  ;;  %v8036_v33 = vpop.f32.mrb[77].mxu0 }
 0x686   : > { %v4937_v14 = vadd.f32 %v4931_v31, %v4883_v39  ;;  %v4934_v41 = vpop.f32.mrb[78].mxu0 }
 0x687   : > { %v4767_v25 = vrot.slane %v4739_v26, %v9821_v5  ;;  %v4769_v3 = vcombine.high %v4753_v43, %v4753_v43  ;;  %v4770_v48 = vcombine.high %v4760_v44, %v4760_v44  ;;  %4781 = vst.msk [vmem:[%s8621_s21 + $0xb] sm:$0x1] %vm3207_vm11, %v4760_v44  ;;  %4782 = vst.msk [vmem:[%s8621_s21 + $0x13] sm:$0x1] %vm3207_vm11, %v4768_v45  ;;  %v8037_v49 = vpop.f32.mrb[79].mxu0 }
 0x688   : > { %4784 = vst.msk [vmem:[%s8621_s21 + $0x23] sm:$0x1] %vm3207_vm11, %v4753_v43  ;;  %v4986_v50 = vadd.f32 %v4980_v60, %v4937_v14 }
 0x689   : > { %v4771_v29 = vcombine.high %v4767_v25, %v4767_v25  ;;  %4783 = vst.msk [vmem:[%s8621_s21 + $0x1b] sm:$0x1] %vm3207_vm11, %v4770_v48  ;;  %4785 = vst.msk [vmem:[%s8621_s21 + $0x2b] sm:$0x1] %vm3207_vm11, %v4767_v25  ;;  %v5185_v16 = vpop.f32.mrb[84].mxu1 }
 0x68a   : > { %4786 = vst.msk [vmem:[%s8621_s21 + $0x33] sm:$0x1] %vm3207_vm11, %v4769_v3  ;;  %v8066_v13 = vpop.f32.mrb[85].mxu1 }
 0x68b   : > { %4787 = vst.msk [vmem:[%s8621_s21 + $0x3b] sm:$0x1] %vm3207_vm11, %v4771_v29  ;;  %v5188_v51 = vpop.f32.mrb[86].mxu1 }
 0x68c   : > { %v5033_v52 = vpop.f32.mrb[80].mxu0  ;;  %v8067_v54 = vpop.f32.mrb[87].mxu1 }
 0x68d   : > { %v5039_v4 = vadd.f32 %v5033_v52, %v4986_v50  ;;  %v8048_v53 = vpop.f32.mrb[81].mxu0 }
 0x68e   : > { %v5036_v23 = vpop.f32.mrb[82].mxu0 }
 0x68f   : > { %v5089_v2 = vadd.f32 %v5083_v19, %v5039_v4  ;;  %v8049_v56 = vpop.f32.mrb[83].mxu0 }
 0x691   : > { %v5360_v58 = vpop.f32.mrb[88].mxu1 }
 0x692   : > { %v8078_v59 = vpop.f32.mrb[89].mxu1 }
 0x693   : > { %v5363_v62 = vpop.f32.mrb[90].mxu1 }
 0x694   : > { %v5132_v36 = vpop.f32.mrb[84].mxu0  ;;  %v8079_v1 = vpop.f32.mrb[91].mxu1 }
 0x695   : > { %v5138_v18 = vadd.f32 %v5132_v36, %v5089_v2  ;;  %v8060_v6 = vpop.f32.mrb[85].mxu0 }
 0x696   : > { %v5135_v7 = vpop.f32.mrb[86].mxu0 }
 0x697   : > { %v5191_v9 = vadd.f32 %v5185_v16, %v5138_v18  ;;  %v8061_v0 = vpop.f32.mrb[87].mxu0 }
 0x699   : > { %v5455_v20 = vpop.f32.mrb[92].mxu1 }
 0x69a   : > { %v8090_v11 = vpop.f32.mrb[93].mxu1 }
 0x69b   : > { %v5458_v32 = vpop.f32.mrb[94].mxu1 }
 0x69c   : > { %v5235_v15 = vpop.f32.mrb[88].mxu0  ;;  %v8091_v17 = vpop.f32.mrb[95].mxu1 }
 0x69d   : > { %v5241_v60 = vadd.f32 %v5235_v15, %v5191_v9  ;;  %v8072_v21 = vpop.f32.mrb[89].mxu0 }
 0x69e   : > { %v5238_v24 = vpop.f32.mrb[90].mxu0 }
 0x69f   : > { %v5242_v55 = vadd.f32 %v5241_v60, %v9792_v46  ;;  %v8073_v28 = vpop.f32.mrb[91].mxu0 }
 0x6a1   : > { %v5243_v30 = vmax.f32 %v5242_v55, 0.0  ;;  %v5557_v22 = vpop.f32.mrb[96].mxu1 }
 0x6a2   : > { %v8102_v39 = vpop.f32.mrb[97].mxu1 }
 0x6a3   : > { %v5244_v8 = vmul.f32 %v5243_v30, %v9796_v47  ;;  %v5560_v34 = vpop.f32.mrb[98].mxu1 }
 0x6a4   : > { %v5406_v61 = vpop.f32.mrb[92].mxu0  ;;  %v8103_v57 = vpop.f32.mrb[99].mxu1 }
 0x6a5   : > { %v5245_v27 = vadd.f32 %v5244_v8, %v9817_v63  ;;  %v5407_v35 = vadd.f32 %v5406_v61, %v5360_v58  ;;  %v8084_v19 = vpop.f32.mrb[93].mxu0 }
 0x6a6   : > { %v5409_v37 = vpop.f32.mrb[94].mxu0 }
 0x6a7   : > { %v5247_v38 = vcombine.high %v5245_v27, %v5245_v27  ;;  %v5254_v12 = vrot.slane %v5245_v27, %v9821_v5  ;;  %v5461_v40 = vadd.f32 %v5455_v20, %v5407_v35  ;;  %v8085_v10 = vpop.f32.mrb[95].mxu0 }
 0x6a9   : > { %v5261_v31 = vrot.slane %v5247_v38, %v9821_v5  ;;  %v5262_v42 = vcombine.high %v5254_v12, %v5254_v12  ;;  %v5270_v26 = vrot.slane %v5254_v12, %v9821_v5  ;;  %v5656_v43 = vpop.f32.mrb[100].mxu1 }
 0x6aa   : > { %v8114_v44 = vpop.f32.mrb[101].mxu1 }
 0x6ab   : > { %v5263_v45 = vcombine.high %v5261_v31, %v5261_v31  ;;  %v5277_v33 = vrot.slane %v5261_v31, %v9821_v5  ;;  %v5284_v14 = vrot.slane %v5262_v42, %v9821_v5  ;;  %v5292_v41 = vcombine.high %v5270_v26, %v5270_v26  ;;  %5304 = vst.msk [vmem:[%s8621_s21 + $0x4] sm:$0x1] %vm3207_vm11, %v5270_v26  ;;  %v5659_v25 = vpop.f32.mrb[102].mxu1 }
 0x6ac   : > { %v5504_v3 = vpop.f32.mrb[96].mxu0  ;;  %v8115_v48 = vpop.f32.mrb[103].mxu1 }
 0x6ad   : > { %v5291_v49 = vrot.slane %v5263_v45, %v9821_v5  ;;  %v5293_v50 = vcombine.high %v5277_v33, %v5277_v33  ;;  %v5294_v29 = vcombine.high %v5284_v14, %v5284_v14  ;;  %5305 = vst.msk [vmem:[%s8621_s21 + $0xc] sm:$0x1] %vm3207_vm11, %v5284_v14  ;;  %5306 = vst.msk [vmem:[%s8621_s21 + $0x14] sm:$0x1] %vm3207_vm11, %v5292_v41  ;;  %v8096_v13 = vpop.f32.mrb[97].mxu0 }
 0x6ae   : > { %5308 = vst.msk [vmem:[%s8621_s21 + $0x24] sm:$0x1] %vm3207_vm11, %v5277_v33  ;;  %v5510_v16 = vadd.f32 %v5504_v3, %v5461_v40  ;;  %v5507_v51 = vpop.f32.mrb[98].mxu0 }
 0x6af   : > { %v5295_v52 = vcombine.high %v5291_v49, %v5291_v49  ;;  %5307 = vst.msk [vmem:[%s8621_s21 + $0x1c] sm:$0x1] %vm3207_vm11, %v5294_v29  ;;  %5309 = vst.msk [vmem:[%s8621_s21 + $0x2c] sm:$0x1] %vm3207_vm11, %v5291_v49  ;;  %v8097_v4 = vpop.f32.mrb[99].mxu0 }
 0x6b0   : > { %5310 = vst.msk [vmem:[%s8621_s21 + $0x34] sm:$0x1] %vm3207_vm11, %v5293_v50  ;;  %v5563_v54 = vadd.f32 %v5557_v22, %v5510_v16 }
 0x6b1   : > { %5311 = vst.msk [vmem:[%s8621_s21 + $0x3c] sm:$0x1] %vm3207_vm11, %v5295_v52  ;;  %v5759_v53 = vpop.f32.mrb[104].mxu1 }
 0x6b2   : > { %v8126_v23 = vpop.f32.mrb[105].mxu1 }
 0x6b3   : > { %v5762_v2 = vpop.f32.mrb[106].mxu1 }
 0x6b4   : > { %v5607_v56 = vpop.f32.mrb[100].mxu0  ;;  %v8127_v58 = vpop.f32.mrb[107].mxu1 }
 0x6b5   : > { %v5613_v59 = vadd.f32 %v5607_v56, %v5563_v54  ;;  %v8108_v62 = vpop.f32.mrb[101].mxu0 }
 0x6b6   : > { %v5610_v36 = vpop.f32.mrb[102].mxu0 }
 0x6b7   : > { %v5662_v1 = vadd.f32 %v5656_v43, %v5613_v59  ;;  %v8109_v18 = vpop.f32.mrb[103].mxu0 }
 0x6b9   : > { %v5930_v6 = vpop.f32.mrb[108].mxu1 }
 0x6ba   : > { %v8138_v7 = vpop.f32.mrb[109].mxu1 }
 0x6bb   : > { %v5933_v9 = vpop.f32.mrb[110].mxu1 }
 0x6bc   : > { %v5709_v0 = vpop.f32.mrb[104].mxu0  ;;  %v8139_v20 = vpop.f32.mrb[111].mxu1 }
 0x6bd   : > { %v5715_v11 = vadd.f32 %v5709_v0, %v5662_v1  ;;  %v8120_v32 = vpop.f32.mrb[105].mxu0 }
 0x6be   : > { %v5712_v15 = vpop.f32.mrb[106].mxu0 }
 0x6bf   : > { %v5765_v17 = vadd.f32 %v5759_v53, %v5715_v11  ;;  %v8121_v60 = vpop.f32.mrb[107].mxu0 }
 0x6c1   : > { %v5766_v21 = vadd.f32 %v5765_v17, %v9792_v46  ;;  %v6028_v24 = vpop.f32.mrb[112].mxu1 }
 0x6c2   : > { %v8150_v55 = vpop.f32.mrb[113].mxu1 }
 0x6c3   : > { %v5767_v28 = vmax.f32 %v5766_v21, 0.0  ;;  %v6031_v30 = vpop.f32.mrb[114].mxu1 }
 0x6c4   : > { %v5884_v22 = vpop.f32.mrb[108].mxu0  ;;  %v8151_v39 = vpop.f32.mrb[115].mxu1 }
 0x6c5   : > { %v5768_v8 = vmul.f32 %v5767_v28, %v9796_v47  ;;  %v5931_v34 = vadd.f32 %v5930_v6, %v5884_v22  ;;  %v8132_v61 = vpop.f32.mrb[109].mxu0 }
 0x6c6   : > { %v5887_v57 = vpop.f32.mrb[110].mxu0 }
 0x6c7   : > { %v5769_v27 = vadd.f32 %v5768_v8, %v9817_v63  ;;  %v8133_v35 = vpop.f32.mrb[111].mxu0 }
 0x6c9   : > { %v5771_v19 = vcombine.high %v5769_v27, %v5769_v27  ;;  %v5778_v37 = vrot.slane %v5769_v27, %v9821_v5  ;;  %v6131_v38 = vpop.f32.mrb[116].mxu1 }
 0x6ca   : > { %v8162_v12 = vpop.f32.mrb[117].mxu1 }
 0x6cb   : > { %v5785_v40 = vrot.slane %v5771_v19, %v9821_v5  ;;  %v5786_v10 = vcombine.high %v5778_v37, %v5778_v37  ;;  %v5794_v31 = vrot.slane %v5778_v37, %v9821_v5  ;;  %v6134_v42 = vpop.f32.mrb[118].mxu1 }
 0x6cc   : > { %v5979_v26 = vpop.f32.mrb[112].mxu0  ;;  %v8163_v43 = vpop.f32.mrb[119].mxu1 }
 0x6cd   : > { %v5787_v44 = vcombine.high %v5785_v40, %v5785_v40  ;;  %v5801_v45 = vrot.slane %v5785_v40, %v9821_v5  ;;  %v5808_v33 = vrot.slane %v5786_v10, %v9821_v5  ;;  %v5816_v14 = vcombine.high %v5794_v31, %v5794_v31  ;;  %5828 = vst.msk [vmem:[%s8621_s21 + $0x5] sm:$0x1] %vm3207_vm11, %v5794_v31  ;;  %v8144_v41 = vpop.f32.mrb[113].mxu0 }
 0x6ce   : > { %v5985_v25 = vadd.f32 %v5979_v26, %v5931_v34  ;;  %v5982_v3 = vpop.f32.mrb[114].mxu0 }
 0x6cf   : > { %v5815_v48 = vrot.slane %v5787_v44, %v9821_v5  ;;  %v5817_v49 = vcombine.high %v5801_v45, %v5801_v45  ;;  %v5818_v50 = vcombine.high %v5808_v33, %v5808_v33  ;;  %5829 = vst.msk [vmem:[%s8621_s21 + $0xd] sm:$0x1] %vm3207_vm11, %v5808_v33  ;;  %5830 = vst.msk [vmem:[%s8621_s21 + $0x15] sm:$0x1] %vm3207_vm11, %v5816_v14  ;;  %v8145_v29 = vpop.f32.mrb[115].mxu0 }
 0x6d0   : > { %5832 = vst.msk [vmem:[%s8621_s21 + $0x25] sm:$0x1] %vm3207_vm11, %v5801_v45  ;;  %v6034_v16 = vadd.f32 %v6028_v24, %v5985_v25 }
 0x6d1   : > { %v5819_v13 = vcombine.high %v5815_v48, %v5815_v48  ;;  %5831 = vst.msk [vmem:[%s8621_s21 + $0x1d] sm:$0x1] %vm3207_vm11, %v5818_v50  ;;  %5833 = vst.msk [vmem:[%s8621_s21 + $0x2d] sm:$0x1] %vm3207_vm11, %v5815_v48  ;;  %v6233_v51 = vpop.f32.mrb[120].mxu1 }
 0x6d2   : > { %5834 = vst.msk [vmem:[%s8621_s21 + $0x35] sm:$0x1] %vm3207_vm11, %v5817_v49  ;;  %v8174_v52 = vpop.f32.mrb[121].mxu1 }
 0x6d3   : > { %5835 = vst.msk [vmem:[%s8621_s21 + $0x3d] sm:$0x1] %vm3207_vm11, %v5819_v13  ;;  %v6236_v54 = vpop.f32.mrb[122].mxu1 }
 0x6d4   : > { %v6081_v4 = vpop.f32.mrb[116].mxu0  ;;  %v8175_v53 = vpop.f32.mrb[123].mxu1 }
 0x6d5   : > { %v6087_v23 = vadd.f32 %v6081_v4, %v6034_v16  ;;  %v8156_v2 = vpop.f32.mrb[117].mxu0 }
 0x6d6   : > { %v6084_v56 = vpop.f32.mrb[118].mxu0 }
 0x6d7   : > { %v6137_v58 = vadd.f32 %v6131_v38, %v6087_v23  ;;  %v8157_v59 = vpop.f32.mrb[119].mxu0 }
 0x6d9   : > { %v6408_v62 = vpop.f32.mrb[124].mxu1 }
 0x6da   : > { %v8186_v36 = vpop.f32.mrb[125].mxu1 }
 0x6db   : > { %v6411_v1 = vpop.f32.mrb[126].mxu1 }
 0x6dc   : > { %v6180_v18 = vpop.f32.mrb[120].mxu0  ;;  %v8187_v6 = vpop.f32.mrb[127].mxu1 }
 0x6dd   : > { %v6186_v7 = vadd.f32 %v6180_v18, %v6137_v58  ;;  %v8168_v9 = vpop.f32.mrb[121].mxu0 }
 0x6de   : > { %v6183_v0 = vpop.f32.mrb[122].mxu0 }
 0x6df   : > { %v6239_v20 = vadd.f32 %v6233_v51, %v6186_v7  ;;  %v8169_v11 = vpop.f32.mrb[123].mxu0 }
 0x6e1   : > { %v6503_v32 = vpop.f32.mrb[128].mxu1 }
 0x6e2   : > { %v8198_v15 = vpop.f32.mrb[129].mxu1 }
 0x6e3   : > { %v6506_v17 = vpop.f32.mrb[130].mxu1 }
 0x6e4   : > { %v6283_v60 = vpop.f32.mrb[124].mxu0  ;;  %v8199_v21 = vpop.f32.mrb[131].mxu1 }
 0x6e5   : > { %v6289_v24 = vadd.f32 %v6283_v60, %v6239_v20  ;;  %v8180_v55 = vpop.f32.mrb[125].mxu0 }
 0x6e6   : > { %v6286_v28 = vpop.f32.mrb[126].mxu0 }
 0x6e7   : > { %v6290_v30 = vadd.f32 %v6289_v24, %v9792_v46  ;;  %v8181_v22 = vpop.f32.mrb[127].mxu0 }
 0x6e9   : > { %v6291_v39 = vmax.f32 %v6290_v30, 0.0  ;;  %v6605_v8 = vpop.f32.mrb[132].mxu1 }
 0x6ea   : > { %v8210_v34 = vpop.f32.mrb[133].mxu1 }
 0x6eb   : > { %v6292_v61 = vmul.f32 %v6291_v39, %v9796_v47  ;;  %v6608_v57 = vpop.f32.mrb[134].mxu1 }
 0x6ec   : > { %v6454_v27 = vpop.f32.mrb[128].mxu0  ;;  %v8211_v35 = vpop.f32.mrb[135].mxu1 }
 0x6ed   : > { %v6293_v19 = vadd.f32 %v6292_v61, %v9817_v63  ;;  %v6455_v37 = vadd.f32 %v6454_v27, %v6408_v62  ;;  %v8192_v38 = vpop.f32.mrb[129].mxu0 }
 0x6ee   : > { %v6457_v12 = vpop.f32.mrb[130].mxu0 }
 0x6ef   : > { %v6295_v40 = vcombine.high %v6293_v19, %v6293_v19  ;;  %v6302_v10 = vrot.slane %v6293_v19, %v9821_v5  ;;  %v6509_v31 = vadd.f32 %v6503_v32, %v6455_v37  ;;  %v8193_v42 = vpop.f32.mrb[131].mxu0 }
 0x6f1   : > { %v6309_v26 = vrot.slane %v6295_v40, %v9821_v5  ;;  %v6310_v43 = vcombine.high %v6302_v10, %v6302_v10  ;;  %v6318_v44 = vrot.slane %v6302_v10, %v9821_v5  ;;  %v6704_v45 = vpop.f32.mrb[136].mxu1 }
 0x6f2   : > { %v8222_v33 = vpop.f32.mrb[137].mxu1 }
 0x6f3   : > { %v6311_v14 = vcombine.high %v6309_v26, %v6309_v26  ;;  %v6325_v41 = vrot.slane %v6309_v26, %v9821_v5  ;;  %v6332_v25 = vrot.slane %v6310_v43, %v9821_v5  ;;  %v6340_v3 = vcombine.high %v6318_v44, %v6318_v44  ;;  %6352 = vst.msk [vmem:[%s8621_s21 + $0x6] sm:$0x1] %vm3207_vm11, %v6318_v44  ;;  %v6707_v48 = vpop.f32.mrb[138].mxu1 }
 0x6f4   : > { %v6552_v49 = vpop.f32.mrb[132].mxu0  ;;  %v8223_v50 = vpop.f32.mrb[139].mxu1 }
 0x6f5   : > { %v6339_v29 = vrot.slane %v6311_v14, %v9821_v5  ;;  %v6341_v16 = vcombine.high %v6325_v41, %v6325_v41  ;;  %v6342_v13 = vcombine.high %v6332_v25, %v6332_v25  ;;  %6353 = vst.msk [vmem:[%s8621_s21 + $0xe] sm:$0x1] %vm3207_vm11, %v6332_v25  ;;  %6354 = vst.msk [vmem:[%s8621_s21 + $0x16] sm:$0x1] %vm3207_vm11, %v6340_v3  ;;  %v8204_v52 = vpop.f32.mrb[133].mxu0 }
 0x6f6   : > { %6356 = vst.msk [vmem:[%s8621_s21 + $0x26] sm:$0x1] %vm3207_vm11, %v6325_v41  ;;  %v6558_v51 = vadd.f32 %v6552_v49, %v6509_v31  ;;  %v6555_v54 = vpop.f32.mrb[134].mxu0 }
 0x6f7   : > { %v6343_v4 = vcombine.high %v6339_v29, %v6339_v29  ;;  %6355 = vst.msk [vmem:[%s8621_s21 + $0x1e] sm:$0x1] %vm3207_vm11, %v6342_v13  ;;  %6357 = vst.msk [vmem:[%s8621_s21 + $0x2e] sm:$0x1] %vm3207_vm11, %v6339_v29  ;;  %v8205_v23 = vpop.f32.mrb[135].mxu0 }
 0x6f8   : > { %6358 = vst.msk [vmem:[%s8621_s21 + $0x36] sm:$0x1] %vm3207_vm11, %v6341_v16  ;;  %v6611_v53 = vadd.f32 %v6605_v8, %v6558_v51 }
 0x6f9   : > { %6359 = vst.msk [vmem:[%s8621_s21 + $0x3e] sm:$0x1] %vm3207_vm11, %v6343_v4  ;;  %v6807_v2 = vpop.f32.mrb[140].mxu1 }
 0x6fa   : > { %v8234_v56 = vpop.f32.mrb[141].mxu1 }
 0x6fb   : > { %v6810_v58 = vpop.f32.mrb[142].mxu1 }
 0x6fc   : > { %v6655_v59 = vpop.f32.mrb[136].mxu0  ;;  %v8235_v62 = vpop.f32.mrb[143].mxu1 }
 0x6fd   : > { %v6661_v36 = vadd.f32 %v6655_v59, %v6611_v53  ;;  %v8216_v1 = vpop.f32.mrb[137].mxu0 }
 0x6fe   : > { %v6658_v18 = vpop.f32.mrb[138].mxu0 }
 0x6ff   : > { %v6710_v6 = vadd.f32 %v6704_v45, %v6661_v36  ;;  %v8217_v7 = vpop.f32.mrb[139].mxu0 }
 0x704   : > { %v6757_v9 = vpop.f32.mrb[140].mxu0 }
 0x705   : > { %v6763_v0 = vadd.f32 %v6757_v9, %v6710_v6  ;;  %v8228_v20 = vpop.f32.mrb[141].mxu0 }
 0x706   : > { %v6760_v11 = vpop.f32.mrb[142].mxu0 }
 0x707   : > { %v6813_v32 = vadd.f32 %v6807_v2, %v6763_v0  ;;  %v8229_v15 = vpop.f32.mrb[143].mxu0 }
 0x709   : > { %v6814_v17 = vadd.f32 %v6813_v32, %v9792_v46 }
 0x70b   : > { %v6815_v60 = vmax.f32 %v6814_v17, 0.0 }
 0x70d   : > { %v6816_v21 = vmul.f32 %v6815_v60, %v9796_v47 }
 0x70f   : > { %v6817_v24 = vadd.f32 %v6816_v21, %v9817_v63 }
 0x711   : > { %v6819_v55 = vcombine.high %v6817_v24, %v6817_v24  ;;  %v6826_v28 = vrot.slane %v6817_v24, %v9821_v5 }
 0x713   : > { %v6833_v30 = vrot.slane %v6819_v55, %v9821_v5  ;;  %v6834_v22 = vcombine.high %v6826_v28, %v6826_v28  ;;  %v6842_v46 = vrot.slane %v6826_v28, %v9821_v5 }
 0x715   : > { %v6835_v39 = vcombine.high %v6833_v30, %v6833_v30  ;;  %v6849_v47 = vrot.slane %v6833_v30, %v9821_v5  ;;  %v6856_v63 = vrot.slane %v6834_v22, %v9821_v5  ;;  %v6864_v8 = vcombine.high %v6842_v46, %v6842_v46  ;;  %6876 = vst.msk [vmem:[%s8621_s21 + $0x7] sm:$0x1] %vm3207_vm11, %v6842_v46 }
 0x717   : > { %v6863_v34 = vrot.slane %v6835_v39, %v9821_v5  ;;  %v6865_v61 = vcombine.high %v6849_v47, %v6849_v47  ;;  %v6866_v57 = vcombine.high %v6856_v63, %v6856_v63  ;;  %6877 = vst.msk [vmem:[%s8621_s21 + $0xf] sm:$0x1] %vm3207_vm11, %v6856_v63  ;;  %6878 = vst.msk [vmem:[%s8621_s21 + $0x17] sm:$0x1] %vm3207_vm11, %v6864_v8 }
 0x718   : > { %6880 = vst.msk [vmem:[%s8621_s21 + $0x27] sm:$0x1] %vm3207_vm11, %v6849_v47 }
 0x719   : > { %v6867_v5 = vcombine.high %v6863_v34, %v6863_v34  ;;  %6879 = vst.msk [vmem:[%s8621_s21 + $0x1f] sm:$0x1] %vm3207_vm11, %v6866_v57  ;;  %6881 = vst.msk [vmem:[%s8621_s21 + $0x2f] sm:$0x1] %vm3207_vm11, %v6863_v34 }
 0x71a   : > { %6882 = vst.msk [vmem:[%s8621_s21 + $0x37] sm:$0x1] %vm3207_vm11, %v6865_v61 }
 0x71b   : > { %6883 = vst.msk [vmem:[%s8621_s21 + $0x3f] sm:$0x1] %vm3207_vm11, %v6867_v5 }
 0x71c   : > { %8383 = shalt.err (!%p8380_p9)
}
 0x71d   : > { %s8384_s21 = scalar_lea.hbm %s10073_s18, 1024  ;;  %s8388_s13 = scalar_lea.hbm %s10146_s7, 8192 }
 0x71e   : > { %p8385_p10 = scmp.ne.s32.totalorder %s10073_s18, %s8384_s21  ;;  %p8389_p13 = scmp.lt.u32.totalorder %s10073_s18, %s10146_s7 }
 0x71f   : > { %p8390_p0 = scmp.lt.u32.totalorder %s8388_s13, %s8384_s21  ;;  %p8392_p2 = scmp.lt.u32.totalorder %s8384_s21, %s10073_s18 }
 0x720   : > { %p8386_p11 = pnand %p8385_p10, %p8576_p3 }
 0x721   : > { %p8391_p1 = por %p8390_p0, %p8389_p13 }
 0x722   : > { %p8387_p12 = pneg %p8386_p11 }
 0x723   : > { %p8393_p4 = por %p8392_p2, %p8391_p1 }
 0x725   : > { %p8394_p5 = pnand %p8393_p4, %p8387_p12 }
 0x727   : > { %8397 = shalt.err (!%p8394_p5)
}
 0x728   : > { %s8482_s10 = smov 128   ;;  %s8483_s23 = smov 512  }
 0x729   : > { %s8484_s9 = smov 8  }
 0x72a   : > { %8237 = dma.vmem_to_hbm [thread:$0]  (%p8576_p3), %s10075_s27, 1024, %s10073_s18, %s10087_s22, %s8482_s10, %s8483_s23, %s8484_s9  }
 0x72b PF: > { %p8243_p6 = scmp.ge.s32.totalorder %s8464_s8, 2  ;;  %s6914_s20 = sand.u32 1, %s8436_s24  }
 0x72c   : > { %s6915_s21 = scalar_lea.sflag [#allocation4], %s6914_s20 }
 0x72d   : > { %p8240_p7 = pnand %p8243_p6, %p8585_p8 }
 0x72f   : > { %8431 = dma.done.wait (!%p8240_p7), %s6915_s21, 1024  }
 0x730   : > { %8433 = vsyncadd (!%p8240_p7), %s6915_s21, 4294966272  ;;  %s20_s8 = sadd.s32 1, %s8464_s8   ;;  %s10153_s24 = smov %s8440_s25 }
 0x731   : > { %p17_p9 = scmp.ge.s32.totalorder %s20_s8, 10   ;;  %s10154_s25 = smov %s8444_s26 }
 0x732   : > { %s10155_s26 = smov %s8594_s19  ;;  %s10156_s27 = smov %s8456_s29 }
 0x733   : > { %s10157_s28 = smov %s8460_s30  ;;  %s10158_s29 = smov %s10161_s11 }
 0x734   : > { %s10159_s30 = smov %s10165_s12  ;;  %19 = sbr.rel (!%p17_p9) target bundleno = 5 (0x5), region = 128 }
 0x73b   :  { %6920 = vsyncpa [#allocation4], 1 }
 0x73c   :  { %6922 = vsyncpa [#allocation4 + $0x1], 1 }

</bundles_post_ra>
